<compile_context>
chip_gen: v7x
topology: tpu7x:2x2x1
jax: 0.10.0
libtpu: 0.0.40
codegen_flags: <defaults>
</compile_context>

<pallas_src>
import functools

import jax
import jax.numpy as jnp
from jax.experimental import pallas as pl
from jax.experimental.pallas import tpu as pltpu

LEAKY_SLOPE = 0.2   # DCGAN-style LeakyReLU slope (Python float, not a jnp const)
NEG_FILL = -1e30    # masked-lane fill for the segment softmax (Python float)


def _round_up(x, m):
    return ((x + m - 1) // m) * m


# ------------------------------- kernels --------------------------------------
def _conv_s2d_leaky_kernel(x_ref, w_ref, o_ref, *, oh, ow):
    """4x4/stride-2 conv (bias=False) + LeakyReLU on one sample, no im2col.

    The wrapper space-to-depths the padded NHWC input (factor 2), turning the
    stride-2 k=4 conv into a stride-1 k=2 conv.  The 4 remaining taps are
    accumulated here from the VMEM-resident block (f32 MXU accumulate), so HBM
    sees the activation exactly once.

    x_ref: (S, Sw, 4*Cin) bf16, with S = oh + 1, Sw = ow + 1
    w_ref: (2, 2, 4*Cin, Cout) bf16
    o_ref: (oh*ow, Cout) bf16   (Cout padded to a multiple of 128: lane-dense)
    """
    c4 = x_ref.shape[-1]
    cout = o_ref.shape[-1]
    acc = jnp.zeros((oh * ow, cout), jnp.float32)
    for di in range(2):                      # static unroll over the 4 taps
        for dj in range(2):
            lhs = x_ref[di:di + oh, dj:dj + ow, :].reshape(oh * ow, c4)
            acc = acc + jnp.dot(lhs, w_ref[di, dj],
                                preferred_element_type=jnp.float32)
    y = jnp.maximum(acc, LEAKY_SLOPE * acc)  # LeakyReLU as a single max
    o_ref[...] = y.astype(o_ref.dtype)


def _collapse_heads_kernel(zc_ref, wc_ref, wh_ref, bh_ref, o_ref, *, cat_segments):
    """Fused: h = LeakyReLU(zc @ Wc); y = h @ Wheads + b; softmax on cat lanes.

    h stays f32 for the heads matmul (parity with a float32 PyTorch reference).
    cat_segments are static (start, end) column ranges for each categorical head.
    """
    h = jnp.dot(zc_ref[...], wc_ref[...], preferred_element_type=jnp.float32)
    h = jnp.maximum(h, LEAKY_SLOPE * h)              # final_act='leaky'
    y = jnp.dot(h, wh_ref[...], preferred_element_type=jnp.float32) + bh_ref[...]
    col = jax.lax.broadcasted_iota(jnp.int32, y.shape, 1)
    for s, e in cat_segments:                        # static unroll
        m = (col >= s) & (col < e)
        seg = jnp.where(m, y, NEG_FILL)
        mx = jnp.max(seg, axis=-1, keepdims=True)
        ex = jnp.where(m, jnp.exp(seg - mx), 0.0)
        # pl.reciprocal(..., approx=True) would be EUP-free, but exact division
        # keeps the softmax normalised to ~f32 eps (demo asserts atol=1e-5).
        y = jnp.where(m, ex / jnp.sum(ex, axis=-1, keepdims=True), y)
    o_ref[...] = y.astype(o_ref.dtype)


# ------------------------------- wrappers --------------------------------------
def conv4x4s2_leaky(x_nhwc, w_s2d, pad):
    """One strided conv layer: spatial pad -> space-to-depth -> fused Pallas kernel."""
    N, H, W, C = x_nhwc.shape
    if pad:
        x_nhwc = jnp.pad(x_nhwc, ((0, 0), (pad, pad), (pad, pad), (0, 0)))
    _, Hp, Wp, _ = x_nhwc.shape
    assert Hp % 2 == 0 and Wp % 2 == 0, "padded extent must be even for stride 2"
    S, Sw = Hp // 2, Wp // 2
    # space-to-depth: stride-2 k=4 conv becomes a stride-1 k=2 conv (4 taps).
    xs = x_nhwc.reshape(N, S, 2, Sw, 2, C)
    xs = jnp.transpose(xs, (0, 1, 3, 2, 4, 5)).reshape(N, S, Sw, 4 * C)
    oh, ow = S - 1, Sw - 1
    c4 = 4 * C
    cout = w_s2d.shape[-1]

    kernel = functools.partial(_conv_s2d_leaky_kernel, oh=oh, ow=ow)
    flops = 2 * N * 4 * oh * ow * c4 * cout
    bytes_accessed = (xs.size + w_s2d.size + N * oh * ow * cout) * 2   # bf16
    out = pl.pallas_call(
        kernel,
        out_shape=jax.ShapeDtypeStruct((N, oh * ow, cout), jnp.bfloat16),
        grid=(N,),                                   # >=2 grid steps at batch>=2
        in_specs=[pl.BlockSpec((None, S, Sw, c4), lambda n: (n, 0, 0, 0)),
                  pl.BlockSpec((2, 2, c4, cout), lambda n: (0, 0, 0, 0))],
        out_specs=pl.BlockSpec((None, oh * ow, cout), lambda n: (n, 0, 0)),
        compiler_params=pltpu.CompilerParams(dimension_semantics=("parallel",)),
        cost_estimate=pl.CostEstimate(flops=flops, transcendentals=0,
                                      bytes_accessed=bytes_accessed),
    )(xs, w_s2d)
    return out.reshape(N, oh, ow, cout)


def fused_collapse_and_heads(zc, w_collapse, w_heads, b_heads, cat_segments):
    """Single launch: collapse conv + every code head, row-tiled over the batch."""
    N, Kc = zc.shape
    H = w_collapse.shape[1]
    P = w_heads.shape[1]
    # >=2 row tiles once N > 8 (v7x megacore); capped at 128 rows; multiple of 8.
    tn = max(8, min(128, _round_up(pl.cdiv(N, 2), 8)))
    Np = _round_up(N, tn)
    if Np != N:
        zc = jnp.pad(zc, ((0, Np - N), (0, 0)))      # tiny vs. the weights
    kernel = functools.partial(_collapse_heads_kernel,
                               cat_segments=tuple(cat_segments))
    flops = 2 * Np * Kc * H + 2 * Np * H * P
    bytes_accessed = (zc.size + w_collapse.size) * 2 + \
                     (w_heads.size + b_heads.size + Np * P) * 4
    trans = Np * P * max(1, len(tuple(cat_segments)))
    out = pl.pallas_call(
        kernel,
        out_shape=jax.ShapeDtypeStruct((Np, P), jnp.float32),
        grid=(Np // tn,),
        in_specs=[pl.BlockSpec((tn, Kc), lambda i: (i, 0)),
                  pl.BlockSpec((Kc, H), lambda i: (0, 0)),
                  pl.BlockSpec((H, P), lambda i: (0, 0)),
                  pl.BlockSpec((1, P), lambda i: (0, 0))],
        out_specs=pl.BlockSpec((tn, P), lambda i: (i, 0)),
        compiler_params=pltpu.CompilerParams(dimension_semantics=("parallel",)),
        cost_estimate=pl.CostEstimate(flops=flops, transcendentals=trans,
                                      bytes_accessed=bytes_accessed),
    )(zc, w_collapse, w_heads, b_heads)
    return out[:N] if Np != N else out


# ------------------------------- parameters ------------------------------------
def build_encoder(key, channels, kernel_size, stride, padding, manifest_dim,
                  hidden_dim, reg_categorical, reg_gaussian, latent_noise_dim):
    assert kernel_size == 4 and stride == 2, "space-to-depth conv assumes k=4, s=2"
    n_conv = len(channels) - 1
    keys = iter(jax.random.split(key, n_conv + 1 + 2 * (2 + len(reg_categorical)) + 2))

    conv_cfg, conv_w = [], []
    dim = manifest_dim
    cin_p = channels[0]                        # input image channels: not padded
    for l in range(n_conv):                    # strided convs, bias=False
        cin, cout = channels[l], channels[l + 1]
        cout_p = max(128, _round_up(cout, 128))    # lane-dense stores; zero cols
        w = 0.05 * jax.random.normal(next(keys), (cout, cin, 4, 4), jnp.float32)
        w_p = jnp.zeros((cout_p, cin_p, 4, 4), jnp.float32).at[:cout, :cin].set(w)
        # torch (O,I,KH,KW) -> s2d tap layout (di, dj, p*2C + q*C + cin, cout)
        wt = jnp.transpose(w_p, (2, 3, 1, 0))              # (ki, kj, cin_p, cout_p)
        wt = wt.reshape(2, 2, 2, 2, cin_p, cout_p)         # (di, p, dj, q, ., .)
        wt = jnp.transpose(wt, (0, 2, 1, 3, 4, 5))         # (di, dj, p, q, ., .)
        conv_w.append(wt.reshape(2, 2, 4 * cin_p, cout_p).astype(jnp.bfloat16))
        conv_cfg.append(dict(pad=padding[l], cout=cout, cout_p=cout_p))
        dim = (dim + 2 * padding[l] - kernel_size) // stride + 1
        cin_p = cout_p

    # Collapse conv: kernel == remaining spatial extent, bias=False, leaky act.
    c_last, c_last_p = channels[-1], cin_p
    wc = 0.05 * jax.random.normal(next(keys),
                                  (hidden_dim, c_last, dim, dim), jnp.float32)
    wc_p = (jnp.zeros((hidden_dim, c_last_p, dim, dim), jnp.float32)
            .at[:, :c_last].set(wc))
    w_collapse = (jnp.transpose(wc_p, (2, 3, 1, 0))
                  .reshape(dim * dim * c_last_p, hidden_dim)
                  .astype(jnp.bfloat16))

    # Code heads (1x1 convs, bias=True): concat along Cout, pad lane-dense; f32.
    head_sizes = [latent_noise_dim] + list(reg_categorical)
    if reg_gaussian > 0:
        head_sizes.append(reg_gaussian)
    ws, bs = [], []
    for out_ch in head_sizes:
        w = 0.05 * jax.random.normal(next(keys), (out_ch, hidden_dim), jnp.float32)
        b = 0.01 * jax.random.normal(next(keys), (out_ch,), jnp.float32)
        ws.append(w.T)                                     # (hidden, out_ch)
        bs.append(b)
    total = sum(head_sizes)
    P = max(128, _round_up(total, 128))
    w_heads = (jnp.zeros((hidden_dim, P), jnp.float32)
               .at[:, :total].set(jnp.concatenate(ws, axis=1)))
    b_heads = (jnp.zeros((1, P), jnp.float32)
               .at[:, :total].set(jnp.concatenate(bs)[None, :]))

    offs = [0]
    for s in head_sizes:
        offs.append(offs[-1] + s)
    cat_segments = tuple((offs[1 + i], offs[2 + i])
                         for i in range(len(reg_categorical)))

    config = dict(conv=conv_cfg, cat_segments=cat_segments,
                  head_offsets=tuple(offs),
                  reg_categorical=tuple(reg_categorical),
                  reg_gaussian=reg_gaussian,
                  latent_noise_dim=latent_noise_dim)
    params = dict(conv_w=conv_w, w_collapse=w_collapse,
                  w_heads=w_heads, b_heads=b_heads)
    return config, params


# ------------------------------- forward ----------------------------------------
def regularised_encoder_forward(config, params, x_nchw):
    """Inference forward of RegularisedEncoder (Dropout(0.3) is a no-op here)."""
    x = jnp.transpose(x_nchw, (0, 2, 3, 1)).astype(jnp.bfloat16)   # NCHW -> NHWC
    for cfg, w in zip(config["conv"], params["conv_w"]):
        x = conv4x4s2_leaky(x, w, cfg["pad"])
        # TODO(synk): training-mode Dropout(0.3) omitted (inference no-op).
    N = x.shape[0]
    zc = x.reshape(N, -1)     # collapse-conv patch: kernel == remaining extent
    out = fused_collapse_and_heads(zc, params["w_collapse"], params["w_heads"],
                                   params["b_heads"], config["cat_segments"])
    offs = config["head_offsets"]
    z = out[:, offs[0]:offs[1]].reshape(N, -1, 1, 1)               # back to NCHW
    c = {"categorical": []}
    idx = 1
    for _ in config["reg_categorical"]:
        c["categorical"].append(out[:, offs[idx]:offs[idx + 1]].reshape(N, -1, 1, 1))
        idx += 1
    if config["reg_gaussian"] > 0:
        c["gaussian"] = out[:, offs[idx]:offs[idx + 1]].reshape(N, -1, 1, 1)
    return c, z


# ------------------------------- demo --------------------------------------------
if __name__ == "__main__":
    key = jax.random.PRNGKey(0)
    k_param, k_x = jax.random.split(key)

    # Small config consistent with RegularisedEncoder.__init__ (scaled-down widths).
    channels = (1, 16, 32, 64, 128)
    kernel_size, stride, padding = 4, 2, (3, 1, 1, 1)
    manifest_dim = 28
    hidden_dim = 64
    reg_categorical = (10,)
    reg_gaussian = 2
    latent_noise_dim = 32
    batch = 2

    config, params = build_encoder(k_param, channels, kernel_size, stride, padding,
                                   manifest_dim, hidden_dim, reg_categorical,
                                   reg_gaussian, latent_noise_dim)
    x = jax.random.normal(k_x, (batch, channels[0], manifest_dim, manifest_dim),
                          jnp.float32)

    fwd = jax.jit(functools.partial(regularised_encoder_forward, config, params))
    c, z = fwd(x)
    jax.block_until_ready((c, z))

    assert z.shape == (batch, latent_noise_dim, 1, 1)
    assert c["categorical"][0].shape == (batch, reg_categorical[0], 1, 1)
    assert c["gaussian"].shape == (batch, reg_gaussian, 1, 1)
    assert bool(jnp.allclose(jnp.sum(c["categorical"][0], axis=1), 1.0, atol=1e-5))
    print("KERNEL_OK")
</pallas_src>

<mosaic_0001>
module attributes {stable_mosaic.version = 11 : i64} {
  func.func @_conv_s2d_leaky_kernel(%arg0: i32, %arg1: memref<1x17x17x4xbf16, #tpu.memory_space<vmem>>, %arg2: memref<2x2x4x128xbf16, #tpu.memory_space<vmem>>, %arg3: memref<1x256x128xbf16, #tpu.memory_space<vmem>>) attributes {dimension_semantics = [#tpu.dimension_semantics<parallel>], iteration_bounds = array<i64: 2>, scalar_prefetch = 0 : i64, scratch_operands = 0 : i64, tpu.core_type = #tpu.core_type<tc>, window_params = [{transform_indices = @transform_0, window_bounds = array<i64: 1, 17, 17, 4>}, {pipeline_mode = #tpu.pipeline_mode<synchronous>, transform_indices = @transform_1, window_bounds = array<i64: 2, 2, 4, 128>}, {transform_indices = @transform_2, window_bounds = array<i64: 1, 256, 128>}]} {
    %cst = arith.constant 0.000000e+00 : f32
    %0 = vector.broadcast %cst : f32 to vector<256x128xf32>
    %c0 = arith.constant 0 : index
    %c0_0 = arith.constant 0 : index
    %c0_1 = arith.constant 0 : index
    %c0_2 = arith.constant 0 : index
    %1 = vector.load %arg1[%c0, %c0_0, %c0_1, %c0_2] : memref<1x17x17x4xbf16, #tpu.memory_space<vmem>>, vector<1x16x16x4xbf16>
    %2 = vector.shape_cast %1 : vector<1x16x16x4xbf16> to vector<16x16x4xbf16>
    %3 = vector.shape_cast %2 : vector<16x16x4xbf16> to vector<256x4xbf16>
    %c0_3 = arith.constant 0 : index
    %c0_4 = arith.constant 0 : index
    %c0_5 = arith.constant 0 : index
    %c0_6 = arith.constant 0 : index
    %4 = vector.load %arg2[%c0_3, %c0_4, %c0_5, %c0_6] : memref<2x2x4x128xbf16, #tpu.memory_space<vmem>>, vector<1x1x4x128xbf16>
    %5 = vector.shape_cast %4 : vector<1x1x4x128xbf16> to vector<4x128xbf16>
    %cst_7 = arith.constant dense<0.000000e+00> : vector<256x128xf32>
    %6 = tpu.matmul %3, %5, %cst_7 {dimension_numbers = #tpu.dot_dimension_numbers<[1], [0], [0], [1], [0, 0, 1, 1], [], []>} : vector<256x4xbf16>, vector<4x128xbf16>, vector<256x128xf32> -> vector<256x128xf32>
    %7 = arith.addf %0, %6 : vector<256x128xf32>
    %c0_8 = arith.constant 0 : index
    %c0_9 = arith.constant 0 : index
    %c1 = arith.constant 1 : index
    %c0_10 = arith.constant 0 : index
    %8 = vector.load %arg1[%c0_8, %c0_9, %c1, %c0_10] : memref<1x17x17x4xbf16, #tpu.memory_space<vmem>>, vector<1x16x16x4xbf16>
    %9 = vector.shape_cast %8 : vector<1x16x16x4xbf16> to vector<16x16x4xbf16>
    %10 = vector.shape_cast %9 : vector<16x16x4xbf16> to vector<256x4xbf16>
    %c0_11 = arith.constant 0 : index
    %c1_12 = arith.constant 1 : index
    %c0_13 = arith.constant 0 : index
    %c0_14 = arith.constant 0 : index
    %11 = vector.load %arg2[%c0_11, %c1_12, %c0_13, %c0_14] : memref<2x2x4x128xbf16, #tpu.memory_space<vmem>>, vector<1x1x4x128xbf16>
    %12 = vector.shape_cast %11 : vector<1x1x4x128xbf16> to vector<4x128xbf16>
    %cst_15 = arith.constant dense<0.000000e+00> : vector<256x128xf32>
    %13 = tpu.matmul %10, %12, %cst_15 {dimension_numbers = #tpu.dot_dimension_numbers<[1], [0], [0], [1], [0, 0, 1, 1], [], []>} : vector<256x4xbf16>, vector<4x128xbf16>, vector<256x128xf32> -> vector<256x128xf32>
    %14 = arith.addf %7, %13 : vector<256x128xf32>
    %c0_16 = arith.constant 0 : index
    %c1_17 = arith.constant 1 : index
    %c0_18 = arith.constant 0 : index
    %c0_19 = arith.constant 0 : index
    %15 = vector.load %arg1[%c0_16, %c1_17, %c0_18, %c0_19] : memref<1x17x17x4xbf16, #tpu.memory_space<vmem>>, vector<1x16x16x4xbf16>
    %16 = vector.shape_cast %15 : vector<1x16x16x4xbf16> to vector<16x16x4xbf16>
    %17 = vector.shape_cast %16 : vector<16x16x4xbf16> to vector<256x4xbf16>
    %c1_20 = arith.constant 1 : index
    %c0_21 = arith.constant 0 : index
    %c0_22 = arith.constant 0 : index
    %c0_23 = arith.constant 0 : index
    %18 = vector.load %arg2[%c1_20, %c0_21, %c0_22, %c0_23] : memref<2x2x4x128xbf16, #tpu.memory_space<vmem>>, vector<1x1x4x128xbf16>
    %19 = vector.shape_cast %18 : vector<1x1x4x128xbf16> to vector<4x128xbf16>
    %cst_24 = arith.constant dense<0.000000e+00> : vector<256x128xf32>
    %20 = tpu.matmul %17, %19, %cst_24 {dimension_numbers = #tpu.dot_dimension_numbers<[1], [0], [0], [1], [0, 0, 1, 1], [], []>} : vector<256x4xbf16>, vector<4x128xbf16>, vector<256x128xf32> -> vector<256x128xf32>
    %21 = arith.addf %14, %20 : vector<256x128xf32>
    %c0_25 = arith.constant 0 : index
    %c1_26 = arith.constant 1 : index
    %c1_27 = arith.constant 1 : index
    %c0_28 = arith.constant 0 : index
    %22 = vector.load %arg1[%c0_25, %c1_26, %c1_27, %c0_28] : memref<1x17x17x4xbf16, #tpu.memory_space<vmem>>, vector<1x16x16x4xbf16>
    %23 = vector.shape_cast %22 : vector<1x16x16x4xbf16> to vector<16x16x4xbf16>
    %24 = vector.shape_cast %23 : vector<16x16x4xbf16> to vector<256x4xbf16>
    %c1_29 = arith.constant 1 : index
    %c1_30 = arith.constant 1 : index
    %c0_31 = arith.constant 0 : index
    %c0_32 = arith.constant 0 : index
    %25 = vector.load %arg2[%c1_29, %c1_30, %c0_31, %c0_32] : memref<2x2x4x128xbf16, #tpu.memory_space<vmem>>, vector<1x1x4x128xbf16>
    %26 = vector.shape_cast %25 : vector<1x1x4x128xbf16> to vector<4x128xbf16>
    %cst_33 = arith.constant dense<0.000000e+00> : vector<256x128xf32>
    %27 = tpu.matmul %24, %26, %cst_33 {dimension_numbers = #tpu.dot_dimension_numbers<[1], [0], [0], [1], [0, 0, 1, 1], [], []>} : vector<256x4xbf16>, vector<4x128xbf16>, vector<256x128xf32> -> vector<256x128xf32>
    %28 = arith.addf %21, %27 : vector<256x128xf32>
    %cst_34 = arith.constant 2.000000e-01 : f32
    %29 = vector.broadcast %cst_34 : f32 to vector<256x128xf32>
    %30 = arith.mulf %29, %28 : vector<256x128xf32>
    %31 = arith.maximumf %28, %30 : vector<256x128xf32>
    %32 = arith.truncf %31 : vector<256x128xf32> to vector<256x128xbf16>
    %c0_35 = arith.constant 0 : index
    %c0_36 = arith.constant 0 : index
    %c0_37 = arith.constant 0 : index
    %33 = vector.load %arg3[%c0_35, %c0_36, %c0_37] : memref<1x256x128xbf16, #tpu.memory_space<vmem>>, vector<1x256x128xbf16>
    %34 = vector.shape_cast %33 : vector<1x256x128xbf16> to vector<256x128xbf16>
    %35 = vector.shape_cast %32 : vector<256x128xbf16> to vector<1x256x128xbf16>
    tpu.vector_store %arg3[%c0_35, %c0_36, %c0_37], %35 {strides = array<i32>} : memref<1x256x128xbf16, #tpu.memory_space<vmem>>, vector<1x256x128xbf16>,
    return
  }
  func.func @transform_0(%arg0: i32) -> (i32, i32, i32, i32) {
    %c0_i32 = arith.constant 0 : i32
    %c0_i32_0 = arith.constant 0 : i32
    %c0_i32_1 = arith.constant 0 : i32
    %c0_i32_2 = arith.constant 0 : i32
    return %arg0, %c0_i32, %c0_i32_0, %c0_i32_1 : i32, i32, i32, i32
  }
  func.func @transform_1(%arg0: i32) -> (i32, i32, i32, i32) {
    %c0_i32 = arith.constant 0 : i32
    %c0_i32_0 = arith.constant 0 : i32
    %c0_i32_1 = arith.constant 0 : i32
    %c0_i32_2 = arith.constant 0 : i32
    %c0_i32_3 = arith.constant 0 : i32
    return %c0_i32, %c0_i32_0, %c0_i32_1, %c0_i32_2 : i32, i32, i32, i32
  }
  func.func @transform_2(%arg0: i32) -> (i32, i32, i32) {
    %c0_i32 = arith.constant 0 : i32
    %c0_i32_0 = arith.constant 0 : i32
    %c0_i32_1 = arith.constant 0 : i32
    return %arg0, %c0_i32, %c0_i32_0 : i32, i32, i32
  }
}

module attributes {stable_mosaic.version = 11 : i64} {
  func.func @_conv_s2d_leaky_kernel(%arg0: i32, %arg1: memref<1x9x9x512xbf16, #tpu.memory_space<vmem>>, %arg2: memref<2x2x512x128xbf16, #tpu.memory_space<vmem>>, %arg3: memref<1x64x128xbf16, #tpu.memory_space<vmem>>) attributes {dimension_semantics = [#tpu.dimension_semantics<parallel>], iteration_bounds = array<i64: 2>, scalar_prefetch = 0 : i64, scratch_operands = 0 : i64, tpu.core_type = #tpu.core_type<tc>, window_params = [{transform_indices = @transform_0, window_bounds = array<i64: 1, 9, 9, 512>}, {pipeline_mode = #tpu.pipeline_mode<synchronous>, transform_indices = @transform_1, window_bounds = array<i64: 2, 2, 512, 128>}, {transform_indices = @transform_2, window_bounds = array<i64: 1, 64, 128>}]} {
    %cst = arith.constant 0.000000e+00 : f32
    %0 = vector.broadcast %cst : f32 to vector<64x128xf32>
    %c0 = arith.constant 0 : index
    %c0_0 = arith.constant 0 : index
    %c0_1 = arith.constant 0 : index
    %c0_2 = arith.constant 0 : index
    %1 = vector.load %arg1[%c0, %c0_0, %c0_1, %c0_2] : memref<1x9x9x512xbf16, #tpu.memory_space<vmem>>, vector<1x8x8x512xbf16>
    %2 = vector.shape_cast %1 : vector<1x8x8x512xbf16> to vector<8x8x512xbf16>
    %3 = vector.shape_cast %2 : vector<8x8x512xbf16> to vector<64x512xbf16>
    %c0_3 = arith.constant 0 : index
    %c0_4 = arith.constant 0 : index
    %c0_5 = arith.constant 0 : index
    %c0_6 = arith.constant 0 : index
    %4 = vector.load %arg2[%c0_3, %c0_4, %c0_5, %c0_6] : memref<2x2x512x128xbf16, #tpu.memory_space<vmem>>, vector<1x1x512x128xbf16>
    %5 = vector.shape_cast %4 : vector<1x1x512x128xbf16> to vector<512x128xbf16>
    %cst_7 = arith.constant dense<0.000000e+00> : vector<64x128xf32>
    %6 = tpu.matmul %3, %5, %cst_7 {dimension_numbers = #tpu.dot_dimension_numbers<[1], [0], [0], [1], [0, 0, 1, 1], [], []>} : vector<64x512xbf16>, vector<512x128xbf16>, vector<64x128xf32> -> vector<64x128xf32>
    %7 = arith.addf %0, %6 : vector<64x128xf32>
    %c0_8 = arith.constant 0 : index
    %c0_9 = arith.constant 0 : index
    %c1 = arith.constant 1 : index
    %c0_10 = arith.constant 0 : index
    %8 = vector.load %arg1[%c0_8, %c0_9, %c1, %c0_10] : memref<1x9x9x512xbf16, #tpu.memory_space<vmem>>, vector<1x8x8x512xbf16>
    %9 = vector.shape_cast %8 : vector<1x8x8x512xbf16> to vector<8x8x512xbf16>
    %10 = vector.shape_cast %9 : vector<8x8x512xbf16> to vector<64x512xbf16>
    %c0_11 = arith.constant 0 : index
    %c1_12 = arith.constant 1 : index
    %c0_13 = arith.constant 0 : index
    %c0_14 = arith.constant 0 : index
    %11 = vector.load %arg2[%c0_11, %c1_12, %c0_13, %c0_14] : memref<2x2x512x128xbf16, #tpu.memory_space<vmem>>, vector<1x1x512x128xbf16>
    %12 = vector.shape_cast %11 : vector<1x1x512x128xbf16> to vector<512x128xbf16>
    %cst_15 = arith.constant dense<0.000000e+00> : vector<64x128xf32>
    %13 = tpu.matmul %10, %12, %cst_15 {dimension_numbers = #tpu.dot_dimension_numbers<[1], [0], [0], [1], [0, 0, 1, 1], [], []>} : vector<64x512xbf16>, vector<512x128xbf16>, vector<64x128xf32> -> vector<64x128xf32>
    %14 = arith.addf %7, %13 : vector<64x128xf32>
    %c0_16 = arith.constant 0 : index
    %c1_17 = arith.constant 1 : index
    %c0_18 = arith.constant 0 : index
    %c0_19 = arith.constant 0 : index
    %15 = vector.load %arg1[%c0_16, %c1_17, %c0_18, %c0_19] : memref<1x9x9x512xbf16, #tpu.memory_space<vmem>>, vector<1x8x8x512xbf16>
    %16 = vector.shape_cast %15 : vector<1x8x8x512xbf16> to vector<8x8x512xbf16>
    %17 = vector.shape_cast %16 : vector<8x8x512xbf16> to vector<64x512xbf16>
    %c1_20 = arith.constant 1 : index
    %c0_21 = arith.constant 0 : index
    %c0_22 = arith.constant 0 : index
    %c0_23 = arith.constant 0 : index
    %18 = vector.load %arg2[%c1_20, %c0_21, %c0_22, %c0_23] : memref<2x2x512x128xbf16, #tpu.memory_space<vmem>>, vector<1x1x512x128xbf16>
    %19 = vector.shape_cast %18 : vector<1x1x512x128xbf16> to vector<512x128xbf16>
    %cst_24 = arith.constant dense<0.000000e+00> : vector<64x128xf32>
    %20 = tpu.matmul %17, %19, %cst_24 {dimension_numbers = #tpu.dot_dimension_numbers<[1], [0], [0], [1], [0, 0, 1, 1], [], []>} : vector<64x512xbf16>, vector<512x128xbf16>, vector<64x128xf32> -> vector<64x128xf32>
    %21 = arith.addf %14, %20 : vector<64x128xf32>
    %c0_25 = arith.constant 0 : index
    %c1_26 = arith.constant 1 : index
    %c1_27 = arith.constant 1 : index
    %c0_28 = arith.constant 0 : index
    %22 = vector.load %arg1[%c0_25, %c1_26, %c1_27, %c0_28] : memref<1x9x9x512xbf16, #tpu.memory_space<vmem>>, vector<1x8x8x512xbf16>
    %23 = vector.shape_cast %22 : vector<1x8x8x512xbf16> to vector<8x8x512xbf16>
    %24 = vector.shape_cast %23 : vector<8x8x512xbf16> to vector<64x512xbf16>
    %c1_29 = arith.constant 1 : index
    %c1_30 = arith.constant 1 : index
    %c0_31 = arith.constant 0 : index
    %c0_32 = arith.constant 0 : index
    %25 = vector.load %arg2[%c1_29, %c1_30, %c0_31, %c0_32] : memref<2x2x512x128xbf16, #tpu.memory_space<vmem>>, vector<1x1x512x128xbf16>
    %26 = vector.shape_cast %25 : vector<1x1x512x128xbf16> to vector<512x128xbf16>
    %cst_33 = arith.constant dense<0.000000e+00> : vector<64x128xf32>
    %27 = tpu.matmul %24, %26, %cst_33 {dimension_numbers = #tpu.dot_dimension_numbers<[1], [0], [0], [1], [0, 0, 1, 1], [], []>} : vector<64x512xbf16>, vector<512x128xbf16>, vector<64x128xf32> -> vector<64x128xf32>
    %28 = arith.addf %21, %27 : vector<64x128xf32>
    %cst_34 = arith.constant 2.000000e-01 : f32
    %29 = vector.broadcast %cst_34 : f32 to vector<64x128xf32>
    %30 = arith.mulf %29, %28 : vector<64x128xf32>
    %31 = arith.maximumf %28, %30 : vector<64x128xf32>
    %32 = arith.truncf %31 : vector<64x128xf32> to vector<64x128xbf16>
    %c0_35 = arith.constant 0 : index
    %c0_36 = arith.constant 0 : index
    %c0_37 = arith.constant 0 : index
    %33 = vector.load %arg3[%c0_35, %c0_36, %c0_37] : memref<1x64x128xbf16, #tpu.memory_space<vmem>>, vector<1x64x128xbf16>
    %34 = vector.shape_cast %33 : vector<1x64x128xbf16> to vector<64x128xbf16>
    %35 = vector.shape_cast %32 : vector<64x128xbf16> to vector<1x64x128xbf16>
    tpu.vector_store %arg3[%c0_35, %c0_36, %c0_37], %35 {strides = array<i32>} : memref<1x64x128xbf16, #tpu.memory_space<vmem>>, vector<1x64x128xbf16>,
    return
  }
  func.func @transform_0(%arg0: i32) -> (i32, i32, i32, i32) {
    %c0_i32 = arith.constant 0 : i32
    %c0_i32_0 = arith.constant 0 : i32
    %c0_i32_1 = arith.constant 0 : i32
    %c0_i32_2 = arith.constant 0 : i32
    return %arg0, %c0_i32, %c0_i32_0, %c0_i32_1 : i32, i32, i32, i32
  }
  func.func @transform_1(%arg0: i32) -> (i32, i32, i32, i32) {
    %c0_i32 = arith.constant 0 : i32
    %c0_i32_0 = arith.constant 0 : i32
    %c0_i32_1 = arith.constant 0 : i32
    %c0_i32_2 = arith.constant 0 : i32
    %c0_i32_3 = arith.constant 0 : i32
    return %c0_i32, %c0_i32_0, %c0_i32_1, %c0_i32_2 : i32, i32, i32, i32
  }
  func.func @transform_2(%arg0: i32) -> (i32, i32, i32) {
    %c0_i32 = arith.constant 0 : i32
    %c0_i32_0 = arith.constant 0 : i32
    %c0_i32_1 = arith.constant 0 : i32
    return %arg0, %c0_i32, %c0_i32_0 : i32, i32, i32
  }
}

module attributes {stable_mosaic.version = 11 : i64} {
  func.func @_conv_s2d_leaky_kernel(%arg0: i32, %arg1: memref<1x5x5x512xbf16, #tpu.memory_space<vmem>>, %arg2: memref<2x2x512x128xbf16, #tpu.memory_space<vmem>>, %arg3: memref<1x16x128xbf16, #tpu.memory_space<vmem>>) attributes {dimension_semantics = [#tpu.dimension_semantics<parallel>], iteration_bounds = array<i64: 2>, scalar_prefetch = 0 : i64, scratch_operands = 0 : i64, tpu.core_type = #tpu.core_type<tc>, window_params = [{transform_indices = @transform_0, window_bounds = array<i64: 1, 5, 5, 512>}, {pipeline_mode = #tpu.pipeline_mode<synchronous>, transform_indices = @transform_1, window_bounds = array<i64: 2, 2, 512, 128>}, {transform_indices = @transform_2, window_bounds = array<i64: 1, 16, 128>}]} {
    %cst = arith.constant 0.000000e+00 : f32
    %0 = vector.broadcast %cst : f32 to vector<16x128xf32>
    %c0 = arith.constant 0 : index
    %c0_0 = arith.constant 0 : index
    %c0_1 = arith.constant 0 : index
    %c0_2 = arith.constant 0 : index
    %1 = vector.load %arg1[%c0, %c0_0, %c0_1, %c0_2] : memref<1x5x5x512xbf16, #tpu.memory_space<vmem>>, vector<1x4x4x512xbf16>
    %2 = vector.shape_cast %1 : vector<1x4x4x512xbf16> to vector<4x4x512xbf16>
    %3 = vector.shape_cast %2 : vector<4x4x512xbf16> to vector<16x512xbf16>
    %c0_3 = arith.constant 0 : index
    %c0_4 = arith.constant 0 : index
    %c0_5 = arith.constant 0 : index
    %c0_6 = arith.constant 0 : index
    %4 = vector.load %arg2[%c0_3, %c0_4, %c0_5, %c0_6] : memref<2x2x512x128xbf16, #tpu.memory_space<vmem>>, vector<1x1x512x128xbf16>
    %5 = vector.shape_cast %4 : vector<1x1x512x128xbf16> to vector<512x128xbf16>
    %cst_7 = arith.constant dense<0.000000e+00> : vector<16x128xf32>
    %6 = tpu.matmul %3, %5, %cst_7 {dimension_numbers = #tpu.dot_dimension_numbers<[1], [0], [0], [1], [0, 0, 1, 1], [], []>} : vector<16x512xbf16>, vector<512x128xbf16>, vector<16x128xf32> -> vector<16x128xf32>
    %7 = arith.addf %0, %6 : vector<16x128xf32>
    %c0_8 = arith.constant 0 : index
    %c0_9 = arith.constant 0 : index
    %c1 = arith.constant 1 : index
    %c0_10 = arith.constant 0 : index
    %8 = vector.load %arg1[%c0_8, %c0_9, %c1, %c0_10] : memref<1x5x5x512xbf16, #tpu.memory_space<vmem>>, vector<1x4x4x512xbf16>
    %9 = vector.shape_cast %8 : vector<1x4x4x512xbf16> to vector<4x4x512xbf16>
    %10 = vector.shape_cast %9 : vector<4x4x512xbf16> to vector<16x512xbf16>
    %c0_11 = arith.constant 0 : index
    %c1_12 = arith.constant 1 : index
    %c0_13 = arith.constant 0 : index
    %c0_14 = arith.constant 0 : index
    %11 = vector.load %arg2[%c0_11, %c1_12, %c0_13, %c0_14] : memref<2x2x512x128xbf16, #tpu.memory_space<vmem>>, vector<1x1x512x128xbf16>
    %12 = vector.shape_cast %11 : vector<1x1x512x128xbf16> to vector<512x128xbf16>
    %cst_15 = arith.constant dense<0.000000e+00> : vector<16x128xf32>
    %13 = tpu.matmul %10, %12, %cst_15 {dimension_numbers = #tpu.dot_dimension_numbers<[1], [0], [0], [1], [0, 0, 1, 1], [], []>} : vector<16x512xbf16>, vector<512x128xbf16>, vector<16x128xf32> -> vector<16x128xf32>
    %14 = arith.addf %7, %13 : vector<16x128xf32>
    %c0_16 = arith.constant 0 : index
    %c1_17 = arith.constant 1 : index
    %c0_18 = arith.constant 0 : index
    %c0_19 = arith.constant 0 : index
    %15 = vector.load %arg1[%c0_16, %c1_17, %c0_18, %c0_19] : memref<1x5x5x512xbf16, #tpu.memory_space<vmem>>, vector<1x4x4x512xbf16>
    %16 = vector.shape_cast %15 : vector<1x4x4x512xbf16> to vector<4x4x512xbf16>
    %17 = vector.shape_cast %16 : vector<4x4x512xbf16> to vector<16x512xbf16>
    %c1_20 = arith.constant 1 : index
    %c0_21 = arith.constant 0 : index
    %c0_22 = arith.constant 0 : index
    %c0_23 = arith.constant 0 : index
    %18 = vector.load %arg2[%c1_20, %c0_21, %c0_22, %c0_23] : memref<2x2x512x128xbf16, #tpu.memory_space<vmem>>, vector<1x1x512x128xbf16>
    %19 = vector.shape_cast %18 : vector<1x1x512x128xbf16> to vector<512x128xbf16>
    %cst_24 = arith.constant dense<0.000000e+00> : vector<16x128xf32>
    %20 = tpu.matmul %17, %19, %cst_24 {dimension_numbers = #tpu.dot_dimension_numbers<[1], [0], [0], [1], [0, 0, 1, 1], [], []>} : vector<16x512xbf16>, vector<512x128xbf16>, vector<16x128xf32> -> vector<16x128xf32>
    %21 = arith.addf %14, %20 : vector<16x128xf32>
    %c0_25 = arith.constant 0 : index
    %c1_26 = arith.constant 1 : index
    %c1_27 = arith.constant 1 : index
    %c0_28 = arith.constant 0 : index
    %22 = vector.load %arg1[%c0_25, %c1_26, %c1_27, %c0_28] : memref<1x5x5x512xbf16, #tpu.memory_space<vmem>>, vector<1x4x4x512xbf16>
    %23 = vector.shape_cast %22 : vector<1x4x4x512xbf16> to vector<4x4x512xbf16>
    %24 = vector.shape_cast %23 : vector<4x4x512xbf16> to vector<16x512xbf16>
    %c1_29 = arith.constant 1 : index
    %c1_30 = arith.constant 1 : index
    %c0_31 = arith.constant 0 : index
    %c0_32 = arith.constant 0 : index
    %25 = vector.load %arg2[%c1_29, %c1_30, %c0_31, %c0_32] : memref<2x2x512x128xbf16, #tpu.memory_space<vmem>>, vector<1x1x512x128xbf16>
    %26 = vector.shape_cast %25 : vector<1x1x512x128xbf16> to vector<512x128xbf16>
    %cst_33 = arith.constant dense<0.000000e+00> : vector<16x128xf32>
    %27 = tpu.matmul %24, %26, %cst_33 {dimension_numbers = #tpu.dot_dimension_numbers<[1], [0], [0], [1], [0, 0, 1, 1], [], []>} : vector<16x512xbf16>, vector<512x128xbf16>, vector<16x128xf32> -> vector<16x128xf32>
    %28 = arith.addf %21, %27 : vector<16x128xf32>
    %cst_34 = arith.constant 2.000000e-01 : f32
    %29 = vector.broadcast %cst_34 : f32 to vector<16x128xf32>
    %30 = arith.mulf %29, %28 : vector<16x128xf32>
    %31 = arith.maximumf %28, %30 : vector<16x128xf32>
    %32 = arith.truncf %31 : vector<16x128xf32> to vector<16x128xbf16>
    %c0_35 = arith.constant 0 : index
    %c0_36 = arith.constant 0 : index
    %c0_37 = arith.constant 0 : index
    %33 = vector.load %arg3[%c0_35, %c0_36, %c0_37] : memref<1x16x128xbf16, #tpu.memory_space<vmem>>, vector<1x16x128xbf16>
    %34 = vector.shape_cast %33 : vector<1x16x128xbf16> to vector<16x128xbf16>
    %35 = vector.shape_cast %32 : vector<16x128xbf16> to vector<1x16x128xbf16>
    tpu.vector_store %arg3[%c0_35, %c0_36, %c0_37], %35 {strides = array<i32>} : memref<1x16x128xbf16, #tpu.memory_space<vmem>>, vector<1x16x128xbf16>,
    return
  }
  func.func @transform_0(%arg0: i32) -> (i32, i32, i32, i32) {
    %c0_i32 = arith.constant 0 : i32
    %c0_i32_0 = arith.constant 0 : i32
    %c0_i32_1 = arith.constant 0 : i32
    %c0_i32_2 = arith.constant 0 : i32
    return %arg0, %c0_i32, %c0_i32_0, %c0_i32_1 : i32, i32, i32, i32
  }
  func.func @transform_1(%arg0: i32) -> (i32, i32, i32, i32) {
    %c0_i32 = arith.constant 0 : i32
    %c0_i32_0 = arith.constant 0 : i32
    %c0_i32_1 = arith.constant 0 : i32
    %c0_i32_2 = arith.constant 0 : i32
    %c0_i32_3 = arith.constant 0 : i32
    return %c0_i32, %c0_i32_0, %c0_i32_1, %c0_i32_2 : i32, i32, i32, i32
  }
  func.func @transform_2(%arg0: i32) -> (i32, i32, i32) {
    %c0_i32 = arith.constant 0 : i32
    %c0_i32_0 = arith.constant 0 : i32
    %c0_i32_1 = arith.constant 0 : i32
    return %arg0, %c0_i32, %c0_i32_0 : i32, i32, i32
  }
}

module attributes {stable_mosaic.version = 11 : i64} {
  func.func @_conv_s2d_leaky_kernel(%arg0: i32, %arg1: memref<1x3x3x512xbf16, #tpu.memory_space<vmem>>, %arg2: memref<2x2x512x128xbf16, #tpu.memory_space<vmem>>, %arg3: memref<1x4x128xbf16, #tpu.memory_space<vmem>>) attributes {dimension_semantics = [#tpu.dimension_semantics<parallel>], iteration_bounds = array<i64: 2>, scalar_prefetch = 0 : i64, scratch_operands = 0 : i64, tpu.core_type = #tpu.core_type<tc>, window_params = [{transform_indices = @transform_0, window_bounds = array<i64: 1, 3, 3, 512>}, {pipeline_mode = #tpu.pipeline_mode<synchronous>, transform_indices = @transform_1, window_bounds = array<i64: 2, 2, 512, 128>}, {transform_indices = @transform_2, window_bounds = array<i64: 1, 4, 128>}]} {
    %cst = arith.constant 0.000000e+00 : f32
    %0 = vector.broadcast %cst : f32 to vector<4x128xf32>
    %c0 = arith.constant 0 : index
    %c0_0 = arith.constant 0 : index
    %c0_1 = arith.constant 0 : index
    %c0_2 = arith.constant 0 : index
    %1 = vector.load %arg1[%c0, %c0_0, %c0_1, %c0_2] : memref<1x3x3x512xbf16, #tpu.memory_space<vmem>>, vector<1x2x2x512xbf16>
    %2 = vector.shape_cast %1 : vector<1x2x2x512xbf16> to vector<2x2x512xbf16>
    %3 = vector.shape_cast %2 : vector<2x2x512xbf16> to vector<4x512xbf16>
    %c0_3 = arith.constant 0 : index
    %c0_4 = arith.constant 0 : index
    %c0_5 = arith.constant 0 : index
    %c0_6 = arith.constant 0 : index
    %4 = vector.load %arg2[%c0_3, %c0_4, %c0_5, %c0_6] : memref<2x2x512x128xbf16, #tpu.memory_space<vmem>>, vector<1x1x512x128xbf16>
    %5 = vector.shape_cast %4 : vector<1x1x512x128xbf16> to vector<512x128xbf16>
    %cst_7 = arith.constant dense<0.000000e+00> : vector<4x128xf32>
    %6 = tpu.matmul %3, %5, %cst_7 {dimension_numbers = #tpu.dot_dimension_numbers<[1], [0], [0], [1], [0, 0, 1, 1], [], []>} : vector<4x512xbf16>, vector<512x128xbf16>, vector<4x128xf32> -> vector<4x128xf32>
    %7 = arith.addf %0, %6 : vector<4x128xf32>
    %c0_8 = arith.constant 0 : index
    %c0_9 = arith.constant 0 : index
    %c1 = arith.constant 1 : index
    %c0_10 = arith.constant 0 : index
    %8 = vector.load %arg1[%c0_8, %c0_9, %c1, %c0_10] : memref<1x3x3x512xbf16, #tpu.memory_space<vmem>>, vector<1x2x2x512xbf16>
    %9 = vector.shape_cast %8 : vector<1x2x2x512xbf16> to vector<2x2x512xbf16>
    %10 = vector.shape_cast %9 : vector<2x2x512xbf16> to vector<4x512xbf16>
    %c0_11 = arith.constant 0 : index
    %c1_12 = arith.constant 1 : index
    %c0_13 = arith.constant 0 : index
    %c0_14 = arith.constant 0 : index
    %11 = vector.load %arg2[%c0_11, %c1_12, %c0_13, %c0_14] : memref<2x2x512x128xbf16, #tpu.memory_space<vmem>>, vector<1x1x512x128xbf16>
    %12 = vector.shape_cast %11 : vector<1x1x512x128xbf16> to vector<512x128xbf16>
    %cst_15 = arith.constant dense<0.000000e+00> : vector<4x128xf32>
    %13 = tpu.matmul %10, %12, %cst_15 {dimension_numbers = #tpu.dot_dimension_numbers<[1], [0], [0], [1], [0, 0, 1, 1], [], []>} : vector<4x512xbf16>, vector<512x128xbf16>, vector<4x128xf32> -> vector<4x128xf32>
    %14 = arith.addf %7, %13 : vector<4x128xf32>
    %c0_16 = arith.constant 0 : index
    %c1_17 = arith.constant 1 : index
    %c0_18 = arith.constant 0 : index
    %c0_19 = arith.constant 0 : index
    %15 = vector.load %arg1[%c0_16, %c1_17, %c0_18, %c0_19] : memref<1x3x3x512xbf16, #tpu.memory_space<vmem>>, vector<1x2x2x512xbf16>
    %16 = vector.shape_cast %15 : vector<1x2x2x512xbf16> to vector<2x2x512xbf16>
    %17 = vector.shape_cast %16 : vector<2x2x512xbf16> to vector<4x512xbf16>
    %c1_20 = arith.constant 1 : index
    %c0_21 = arith.constant 0 : index
    %c0_22 = arith.constant 0 : index
    %c0_23 = arith.constant 0 : index
    %18 = vector.load %arg2[%c1_20, %c0_21, %c0_22, %c0_23] : memref<2x2x512x128xbf16, #tpu.memory_space<vmem>>, vector<1x1x512x128xbf16>
    %19 = vector.shape_cast %18 : vector<1x1x512x128xbf16> to vector<512x128xbf16>
    %cst_24 = arith.constant dense<0.000000e+00> : vector<4x128xf32>
    %20 = tpu.matmul %17, %19, %cst_24 {dimension_numbers = #tpu.dot_dimension_numbers<[1], [0], [0], [1], [0, 0, 1, 1], [], []>} : vector<4x512xbf16>, vector<512x128xbf16>, vector<4x128xf32> -> vector<4x128xf32>
    %21 = arith.addf %14, %20 : vector<4x128xf32>
    %c0_25 = arith.constant 0 : index
    %c1_26 = arith.constant 1 : index
    %c1_27 = arith.constant 1 : index
    %c0_28 = arith.constant 0 : index
    %22 = vector.load %arg1[%c0_25, %c1_26, %c1_27, %c0_28] : memref<1x3x3x512xbf16, #tpu.memory_space<vmem>>, vector<1x2x2x512xbf16>
    %23 = vector.shape_cast %22 : vector<1x2x2x512xbf16> to vector<2x2x512xbf16>
    %24 = vector.shape_cast %23 : vector<2x2x512xbf16> to vector<4x512xbf16>
    %c1_29 = arith.constant 1 : index
    %c1_30 = arith.constant 1 : index
    %c0_31 = arith.constant 0 : index
    %c0_32 = arith.constant 0 : index
    %25 = vector.load %arg2[%c1_29, %c1_30, %c0_31, %c0_32] : memref<2x2x512x128xbf16, #tpu.memory_space<vmem>>, vector<1x1x512x128xbf16>
    %26 = vector.shape_cast %25 : vector<1x1x512x128xbf16> to vector<512x128xbf16>
    %cst_33 = arith.constant dense<0.000000e+00> : vector<4x128xf32>
    %27 = tpu.matmul %24, %26, %cst_33 {dimension_numbers = #tpu.dot_dimension_numbers<[1], [0], [0], [1], [0, 0, 1, 1], [], []>} : vector<4x512xbf16>, vector<512x128xbf16>, vector<4x128xf32> -> vector<4x128xf32>
    %28 = arith.addf %21, %27 : vector<4x128xf32>
    %cst_34 = arith.constant 2.000000e-01 : f32
    %29 = vector.broadcast %cst_34 : f32 to vector<4x128xf32>
    %30 = arith.mulf %29, %28 : vector<4x128xf32>
    %31 = arith.maximumf %28, %30 : vector<4x128xf32>
    %32 = arith.truncf %31 : vector<4x128xf32> to vector<4x128xbf16>
    %c0_35 = arith.constant 0 : index
    %c0_36 = arith.constant 0 : index
    %c0_37 = arith.constant 0 : index
    %33 = vector.load %arg3[%c0_35, %c0_36, %c0_37] : memref<1x4x128xbf16, #tpu.memory_space<vmem>>, vector<1x4x128xbf16>
    %34 = vector.shape_cast %33 : vector<1x4x128xbf16> to vector<4x128xbf16>
    %35 = vector.shape_cast %32 : vector<4x128xbf16> to vector<1x4x128xbf16>
    tpu.vector_store %arg3[%c0_35, %c0_36, %c0_37], %35 {strides = array<i32>} : memref<1x4x128xbf16, #tpu.memory_space<vmem>>, vector<1x4x128xbf16>,
    return
  }
  func.func @transform_0(%arg0: i32) -> (i32, i32, i32, i32) {
    %c0_i32 = arith.constant 0 : i32
    %c0_i32_0 = arith.constant 0 : i32
    %c0_i32_1 = arith.constant 0 : i32
    %c0_i32_2 = arith.constant 0 : i32
    return %arg0, %c0_i32, %c0_i32_0, %c0_i32_1 : i32, i32, i32, i32
  }
  func.func @transform_1(%arg0: i32) -> (i32, i32, i32, i32) {
    %c0_i32 = arith.constant 0 : i32
    %c0_i32_0 = arith.constant 0 : i32
    %c0_i32_1 = arith.constant 0 : i32
    %c0_i32_2 = arith.constant 0 : i32
    %c0_i32_3 = arith.constant 0 : i32
    return %c0_i32, %c0_i32_0, %c0_i32_1, %c0_i32_2 : i32, i32, i32, i32
  }
  func.func @transform_2(%arg0: i32) -> (i32, i32, i32) {
    %c0_i32 = arith.constant 0 : i32
    %c0_i32_0 = arith.constant 0 : i32
    %c0_i32_1 = arith.constant 0 : i32
    return %arg0, %c0_i32, %c0_i32_0 : i32, i32, i32
  }
}

module attributes {stable_mosaic.version = 11 : i64} {
  func.func @_collapse_heads_kernel(%arg0: i32, %arg1: memref<8x512xbf16, #tpu.memory_space<vmem>>, %arg2: memref<512x64xbf16, #tpu.memory_space<vmem>>, %arg3: memref<64x128xf32, #tpu.memory_space<vmem>>, %arg4: memref<1x128xf32, #tpu.memory_space<vmem>>, %arg5: memref<8x128xf32, #tpu.memory_space<vmem>>) attributes {dimension_semantics = [#tpu.dimension_semantics<parallel>], iteration_bounds = array<i64: 1>, scalar_prefetch = 0 : i64, scratch_operands = 0 : i64, tpu.core_type = #tpu.core_type<tc>, window_params = [{transform_indices = @transform_0, window_bounds = array<i64: 8, 512>}, {pipeline_mode = #tpu.pipeline_mode<synchronous>, transform_indices = @transform_1, window_bounds = array<i64: 512, 64>}, {pipeline_mode = #tpu.pipeline_mode<synchronous>, transform_indices = @transform_2, window_bounds = array<i64: 64, 128>}, {pipeline_mode = #tpu.pipeline_mode<synchronous>, transform_indices = @transform_3, window_bounds = array<i64: 1, 128>}, {transform_indices = @transform_4, window_bounds = array<i64: 8, 128>}]} {
    %c0 = arith.constant 0 : index
    %c0_0 = arith.constant 0 : index
    %0 = vector.load %arg1[%c0, %c0_0] : memref<8x512xbf16, #tpu.memory_space<vmem>>, vector<8x512xbf16>
    %c0_1 = arith.constant 0 : index
    %c0_2 = arith.constant 0 : index
    %1 = vector.load %arg2[%c0_1, %c0_2] : memref<512x64xbf16, #tpu.memory_space<vmem>>, vector<512x64xbf16>
    %cst = arith.constant dense<0.000000e+00> : vector<8x64xf32>
    %2 = tpu.matmul %0, %1, %cst {dimension_numbers = #tpu.dot_dimension_numbers<[1], [0], [0], [1], [0, 0, 1, 1], [], []>} : vector<8x512xbf16>, vector<512x64xbf16>, vector<8x64xf32> -> vector<8x64xf32>
    %cst_3 = arith.constant 2.000000e-01 : f32
    %3 = vector.broadcast %cst_3 : f32 to vector<8x64xf32>
    %4 = arith.mulf %3, %2 : vector<8x64xf32>
    %5 = arith.maximumf %2, %4 : vector<8x64xf32>
    %c0_4 = arith.constant 0 : index
    %c0_5 = arith.constant 0 : index
    %6 = vector.load %arg3[%c0_4, %c0_5] : memref<64x128xf32, #tpu.memory_space<vmem>>, vector<64x128xf32>
    %cst_6 = arith.constant dense<0.000000e+00> : vector<8x128xf32>
    %7 = tpu.matmul %5, %6, %cst_6 {dimension_numbers = #tpu.dot_dimension_numbers<[1], [0], [0], [1], [0, 0, 1, 1], [], []>} : vector<8x64xf32>, vector<64x128xf32>, vector<8x128xf32> -> vector<8x128xf32>
    %c0_7 = arith.constant 0 : index
    %c0_8 = arith.constant 0 : index
    %8 = vector.load %arg4[%c0_7, %c0_8] : memref<1x128xf32, #tpu.memory_space<vmem>>, vector<1x128xf32>
    %9 = vector.broadcast %8 : vector<1x128xf32> to vector<8x128xf32>
    %10 = arith.addf %7, %9 : vector<8x128xf32>
    %11 = tpu.iota {dimensions = array<i32: 1>} : vector<8x128xi32>
    %c32_i32 = arith.constant 32 : i32
    %12 = vector.broadcast %c32_i32 : i32 to vector<8x128xi32>
    %13 = arith.cmpi sge, %11, %12 : vector<8x128xi32>
    %c42_i32 = arith.constant 42 : i32
    %14 = vector.broadcast %c42_i32 : i32 to vector<8x128xi32>
    %15 = arith.cmpi slt, %11, %14 : vector<8x128xi32>
    %16 = arith.andi %13, %15 : vector<8x128xi1>
    %cst_9 = arith.constant -1.000000e+30 : f32
    %17 = vector.broadcast %cst_9 : f32 to vector<8x128xf32>
    %18 = arith.select %16, %10, %17 : vector<8x128xi1>, vector<8x128xf32>
    %cst_10 = arith.constant dense<0xFF800000> : vector<8xf32>
    %19 = vector.multi_reduction <maximumf>, %18, %cst_10 [1] : vector<8x128xf32> to vector<8xf32>
    %20 = vector.shape_cast %19 : vector<8xf32> to vector<8x1xf32>
    %21 = vector.broadcast %20 : vector<8x1xf32> to vector<8x128xf32>
    %22 = arith.subf %18, %21 : vector<8x128xf32>
    %23 = math.exp %22 : vector<8x128xf32>
    %cst_11 = arith.constant 0.000000e+00 : f32
    %24 = vector.broadcast %cst_11 : f32 to vector<8x128xf32>
    %25 = arith.select %16, %23, %24 : vector<8x128xi1>, vector<8x128xf32>
    %cst_12 = arith.constant dense<0.000000e+00> : vector<8xf32>
    %26 = vector.multi_reduction <add>, %25, %cst_12 [1] : vector<8x128xf32> to vector<8xf32>
    %27 = vector.shape_cast %26 : vector<8xf32> to vector<8x1xf32>
    %28 = vector.broadcast %27 : vector<8x1xf32> to vector<8x128xf32>
    %29 = arith.divf %25, %28 : vector<8x128xf32>
    %30 = arith.select %16, %29, %10 : vector<8x128xi1>, vector<8x128xf32>
    %c0_13 = arith.constant 0 : index
    %c0_14 = arith.constant 0 : index
    %31 = vector.load %arg5[%c0_13, %c0_14] : memref<8x128xf32, #tpu.memory_space<vmem>>, vector<8x128xf32>
    tpu.vector_store %arg5[%c0_13, %c0_14], %30 {strides = array<i32>} : memref<8x128xf32, #tpu.memory_space<vmem>>, vector<8x128xf32>,
    return
  }
  func.func @transform_0(%arg0: i32) -> (i32, i32) {
    %c0_i32 = arith.constant 0 : i32
    %c0_i32_0 = arith.constant 0 : i32
    return %arg0, %c0_i32 : i32, i32
  }
  func.func @transform_1(%arg0: i32) -> (i32, i32) {
    %c0_i32 = arith.constant 0 : i32
    %c0_i32_0 = arith.constant 0 : i32
    %c0_i32_1 = arith.constant 0 : i32
    return %c0_i32, %c0_i32_0 : i32, i32
  }
  func.func @transform_2(%arg0: i32) -> (i32, i32) {
    %c0_i32 = arith.constant 0 : i32
    %c0_i32_0 = arith.constant 0 : i32
    %c0_i32_1 = arith.constant 0 : i32
    return %c0_i32, %c0_i32_0 : i32, i32
  }
  func.func @transform_3(%arg0: i32) -> (i32, i32) {
    %c0_i32 = arith.constant 0 : i32
    %c0_i32_0 = arith.constant 0 : i32
    %c0_i32_1 = arith.constant 0 : i32
    return %c0_i32, %c0_i32_0 : i32, i32
  }
  func.func @transform_4(%arg0: i32) -> (i32, i32) {
    %c0_i32 = arith.constant 0 : i32
    %c0_i32_0 = arith.constant 0 : i32
    return %arg0, %c0_i32 : i32, i32
  }
}

</mosaic_0001>

<bundles_post_ra>
// kernel: regularised_encoder_forward.5
= control target key start
LH: loop header
LB: loop body
LE: loop exit
PB: predicated region body
PF: predicated region fallthrough
CT: control target
= control target key end

     0   :  { %s3250_s9 = smov 0   ;;  %s3790_s0 = inlined_call_operand.vmem [shape: bf16[2,17,17,4], index: 0, kind: input, shape index: {}]   ;;  %s3791_s1 = inlined_call_operand.vmem [shape: bf16[2,2,4,128], index: 1, kind: input, shape index: {}]   ;;  %s3792_s2 = inlined_call_operand.vmem [shape: bf16[2,256,128], index: 2, kind: output, shape index: {}]  }
   0x1 LB: > { %s2501_s10 = sadd.s32 4294967295, %s3233_s9   ;;  %p2505_p0 = scmp.ge.s32.totalorder %s3233_s9, 1  ;;  %s3233_s9 = sphi %s3250_s9, %s12_s9  }
   0x2   : > { %p112_p1 = scmp.lt.s32.totalorder %s3233_s9, 3 }
   0x4   : > { %p113_p2 = pnand %p2505_p0, %p112_p1 }
   0x5   : > { %vm680_vm0 = vcmask (!%p113_p2), 1041408   ;;  %v2606_v0 = vld [vmem:[%s3791_s1 + $0x4] sm:$0x3] (!%p113_p2)  ;;  %p134_p3 = scmp.lt.s32.totalorder (!%p113_p2), %s2501_s10, 1  ;;  %v2509_v2 = vld [vmem:[%s3791_s1 + $0x2] sm:$0x3] (!%p113_p2) }
   0x6   : > { %116 = sbr.rel (%p113_p2) target bundleno = 391 (0x187), region = 28  ;;  %3184 = vmatprep.subr.msk.bf16.mxu0 (!%p113_p2), %vm680_vm0, %v2606_v0  ;;  %v1301_v1 = vsel (!%p113_p2), %vm680_vm0, %v2606_v0, 0  ;;  %3182 = vmatprep.subr.msk.bf16.mxu1 (!%p113_p2), %vm680_vm0, %v2509_v2  ;;  %v682_v3 = vsel (!%p113_p2), %vm680_vm0, %v2509_v2, 0  ;;  %v177_v4 = vld [vmem:[%s3791_s1] sm:$0x3] (!%p113_p2)  ;;  %vm631_vm1 = vcmask (!%p113_p2), 31744  }
   0x7   : > { %3019 = vmatpush3.bf16.msra.mxu0 (!%p113_p2), %v1301_v1  ;;  %2951 = vmatpush3.bf16.msra.mxu1 (!%p113_p2), %v682_v3  ;;  %v2687_v5 = vld [vmem:[%s3791_s1 + $0x6] sm:$0x3] (!%p113_p2)  ;;  %vm194_vm2 = vsmask.f32 (!%p113_p2), 3328  ;;  %vm195_vm3 = vsmask.f32 (!%p113_p2), 7440 }
   0x8   : > { %3183 = vmatprep.subr.msk.bf16.mxu1 (!%p113_p2), %vm680_vm0, %v177_v4  ;;  %3185 = vmatprep.subr.msk.bf16.mxu0 (!%p113_p2), %vm680_vm0, %v2687_v5  ;;  %v2027_v8 = vsel (!%p113_p2), %vm680_vm0, %v2687_v5, 0  ;;  %v3290_v10 = vsel (!%p113_p2), %vm680_vm0, %v177_v4, 0  ;;  %vm3321_vm4 = vmor (!%p113_p2), %vm194_vm2, %vm195_vm3 }
   0xd   : > { %s3796_s10 = smov (!%p134_p3, %s2501_s10), 1 }
   0xe   : > { %s3186_s19 = smul.u32 204, %s3796_s10  ;;  %s2754_s23 = sshll.u32 %s3796_s10, 7 }
   0xf   : > { %s3769_s26 = scalar_lea.vmem %s3792_s2, %s2754_s23 }
  0x10   : > { %s3282_s22 = scalar_lea.vmem %s3790_s0, %s3186_s19 }
  0x11   : > { %v3195_v6 = vld [vmem:[%s3282_s22 + $0xc] sm:$0xff]   ;;  %v3196_v7 = vld [vmem:[%s3282_s22 + $0x18] sm:$0xff]   ;;  %v3197_v9 = vld [vmem:[%s3282_s22 + $0x24] sm:$0xff]  }
  0x12   : > { %3020 = vmatprep.mubr.msk.bf16.mxu0 %vm631_vm1, %v3195_v6  ;;  %v3294_v11 = vld [vmem:[%s3282_s22] sm:$0xf]  ;;  %v3297_v12 = vld [vmem:[%s3282_s22 + $0x4] sm:$0xf]  ;;  %v178_v13 = vld [vmem:[%s3282_s22 + $0x8] sm:$0x1] }
  0x13   : > { %3021 = vmatmul.mubr.msk.bf16.vlgmr.msra.gmra.mrb[0].mxu0 %vm631_vm1, %v3196_v7  ;;  %v198_v14 = vshrl.u32 %v3294_v11, 16  ;;  %v201_v15 = vshll.u32 %v3294_v11, 16  ;;  %v207_v16 = vshll.u32 %v3297_v12, 16  ;;  %v211_v17 = vshrl.u32 %v3297_v12, 16  ;;  %v3198_v19 = vld [vmem:[%s3282_s22 + $0x30] sm:$0xff]   ;;  %v3199_v40 = vld [vmem:[%s3282_s22 + $0x3c] sm:$0xff]  }
  0x14   : > { %3024 = vmatprep.mubr.msk.bf16.mxu0 %vm631_vm1, %v3197_v9  ;;  %3053 = vmatpush3.bf16.msra.mxu0 %v2027_v8  ;;  %v217_v18 = vshll.u32 %v178_v13, 16  ;;  %v3307_v20 = vld [vmem:[%s3282_s22 + $0xc] sm:$0xf]  ;;  %v2542_v21 = vcombine.low %v3294_v11, %v3297_v12  ;;  %v3312_v26 = vld [vmem:[%s3282_s22 + $0x10] sm:$0xf]  ;;  %v3201_v4 = vld [vmem:[%s3282_s22 + $0x54] sm:$0xff]  }
  0x15   : > { %v200_v22 = vrot.slane %v198_v14, 4  ;;  %v203_v23 = vrot.slane %v201_v15, 5  ;;  %v209_v24 = vrot.slane %v207_v16, 5  ;;  %v213_v25 = vrot.slane %v211_v17, 4  ;;  %v179_v28 = vld [vmem:[%s3282_s22 + $0x14] sm:$0x1] }
  0x16   : > { %v219_v27 = vrot.slane %v217_v18, 5  ;;  %v222_v29 = vshrl.u32 %v3307_v20, 16  ;;  %v225_v30 = vshll.u32 %v3307_v20, 16  ;;  %v231_v31 = vshll.u32 %v3312_v26, 16  ;;  %v3327_v41 = vld [vmem:[%s3282_s22 + $0x18] sm:$0xf] }
  0x17   : > { %v204_v32 = vor.u32 %v203_v23, %v200_v22  ;;  %v214_v33 = vor.u32 %v213_v25, %v209_v24  ;;  %v235_v34 = vshrl.u32 %v3312_v26, 16  ;;  %v241_v35 = vshll.u32 %v179_v28, 16  ;;  %v3332_v47 = vld [vmem:[%s3282_s22 + $0x1c] sm:$0xf]  ;;  %v180_v49 = vld [vmem:[%s3282_s22 + $0x20] sm:$0x1] }
  0x18   : > { %v224_v37 = vrot.slane %v222_v29, 4  ;;  %v227_v38 = vrot.slane %v225_v30, 5  ;;  %v233_v39 = vrot.slane %v231_v31, 5  ;;  %v2543_v42 = vcombine.low %v3307_v20, %v3312_v26  ;;  %v3200_v61 = vld [vmem:[%s3282_s22 + $0x48] sm:$0xff]   ;;  %v3347_v62 = vld [vmem:[%s3282_s22 + $0x24] sm:$0xf] }
  0x19   : > { %v205_v43 = vrot.slane %v204_v32, 4  ;;  %v215_v44 = vrot.slane %v214_v33, 4  ;;  %v237_v45 = vrot.slane %v235_v34, 4  ;;  %v243_v46 = vrot.slane %v241_v35, 5  ;;  %v3350_v3 = vld [vmem:[%s3282_s22 + $0x28] sm:$0xf] }
  0x1a   : > { %v228_v48 = vor.u32 %v227_v38, %v224_v37  ;;  %v246_v50 = vshrl.u32 %v3327_v41, 16  ;;  %v249_v51 = vshll.u32 %v3327_v41, 16  ;;  %v255_v52 = vshll.u32 %v3332_v47, 16  ;;  %v181_v7 = vld [vmem:[%s3282_s22 + $0x2c] sm:$0x1] }
  0x1b   : > { %3025 = vmatmul.mubr.msk.bf16.gmra.mrb[4].mxu0 %vm631_vm1, %v3198_v19  ;;  %v210_v53 = vsel %vm3321_vm4, %v205_v43, %v209_v24  ;;  %v220_v54 = vsel %vm3321_vm4, %v215_v44, %v219_v27  ;;  %v238_v55 = vor.u32 %v237_v45, %v233_v39  ;;  %v259_v56 = vshrl.u32 %v3332_v47, 16  ;;  %v3363_v17 = vld [vmem:[%s3282_s22 + $0x30] sm:$0xf]  ;;  %v3366_v24 = vld [vmem:[%s3282_s22 + $0x34] sm:$0xf] }
  0x1c   : > { %3028 = vmatprep.mubr.msk.bf16.mxu0 %vm631_vm1, %v3199_v40  ;;  %v2510_v57 = vcombine.low %v210_v53, %v220_v54  ;;  %v229_v58 = vrot.slane %v228_v48, 4  ;;  %v248_v59 = vrot.slane %v246_v50, 4  ;;  %v251_v60 = vrot.slane %v249_v51, 5  ;;  %v182_v30 = vld [vmem:[%s3282_s22 + $0x38] sm:$0x1] }
  0x1d   : > { %v239_v63 = vrot.slane %v238_v55, 4  ;;  %v257_v0 = vrot.slane %v255_v52, 5  ;;  %v261_v1 = vrot.slane %v259_v56, 4  ;;  %v265_v2 = vshll.u32 %v180_v49, 16  ;;  %v3382_v40 = vld [vmem:[%s3282_s22 + $0x3c] sm:$0xf] }
  0x1e   : > { %2952 = vmatprep.mubr.msk.bf16.mxu1 %vm631_vm1, %v2510_v57  ;;  %v234_v5 = vsel %vm3321_vm4, %v229_v58, %v233_v39  ;;  %v252_v6 = vor.u32 %v251_v60, %v248_v59  ;;  %v270_v8 = vshrl.u32 %v3347_v62, 16  ;;  %v273_v9 = vshll.u32 %v3347_v62, 16  ;;  %v3385_v48 = vld [vmem:[%s3282_s22 + $0x40] sm:$0xf]  ;;  %v183_v53 = vld [vmem:[%s3282_s22 + $0x44] sm:$0x1] }
  0x1f   : > { %v244_v13 = vsel %vm3321_vm4, %v239_v63, %v243_v46  ;;  %v262_v14 = vor.u32 %v261_v1, %v257_v0  ;;  %v267_v15 = vrot.slane %v265_v2, 5  ;;  %v279_v16 = vshll.u32 %v3350_v3, 16  ;;  %v3202_v52 = vld [vmem:[%s3282_s22 + $0x60] sm:$0xff]   ;;  %v3203_v63 = vld [vmem:[%s3282_s22 + $0x6c] sm:$0xff]  }
  0x20   : > { %v2511_v18 = vcombine.low %v234_v5, %v244_v13  ;;  %v253_v19 = vrot.slane %v252_v6, 4  ;;  %v272_v22 = vrot.slane %v270_v8, 4  ;;  %v275_v23 = vrot.slane %v273_v9, 5  ;;  %v3399_v5 = vld [vmem:[%s3282_s22 + $0x48] sm:$0xf] }
  0x21   : > { %v263_v25 = vrot.slane %v262_v14, 4  ;;  %v281_v27 = vrot.slane %v279_v16, 5  ;;  %v283_v28 = vshrl.u32 %v3350_v3, 16  ;;  %v289_v29 = vshll.u32 %v181_v7, 16  ;;  %v3404_v13 = vld [vmem:[%s3282_s22 + $0x4c] sm:$0xf] }
  0x22   : > { %2953 = vmatmul.mubr.msk.bf16.vlgmr.msra.gmra.mrb[0].mxu1 %vm631_vm1, %v2511_v18  ;;  %v258_v31 = vsel %vm3321_vm4, %v253_v19, %v257_v0  ;;  %v276_v32 = vor.u32 %v275_v23, %v272_v22  ;;  %v294_v33 = vshrl.u32 %v3363_v17, 16  ;;  %v297_v34 = vshll.u32 %v3363_v17, 16  ;;  %v184_v19 = vld [vmem:[%s3282_s22 + $0x50] sm:$0x1] }
  0x23   : > { %3029 = vmatmul.mubr.msk.bf16.gmra.mrb[8].mxu0 %vm631_vm1, %v3200_v61  ;;  %2985 = vmatpush3.bf16.msra.mxu1 %v3290_v10  ;;  %v268_v35 = vsel %vm3321_vm4, %v263_v25, %v267_v15  ;;  %v285_v37 = vrot.slane %v283_v28, 4  ;;  %v291_v38 = vrot.slane %v289_v29, 5  ;;  %v303_v39 = vshll.u32 %v3366_v24, 16  ;;  %v3414_v28 = vld [vmem:[%s3282_s22 + $0x54] sm:$0xf] }
  0x24   : > { %3032 = vmatprep.mubr.msk.bf16.mxu0 %vm631_vm1, %v3201_v4  ;;  %v2512_v43 = vcombine.low %v258_v31, %v268_v35  ;;  %v277_v44 = vrot.slane %v276_v32, 4  ;;  %v296_v45 = vrot.slane %v294_v33, 4  ;;  %v299_v46 = vrot.slane %v297_v34, 5  ;;  %v3420_v33 = vld [vmem:[%s3282_s22 + $0x58] sm:$0xf] }
  0x25   : > { %v286_v10 = vor.u32 %v285_v37, %v281_v27  ;;  %v305_v49 = vrot.slane %v303_v39, 5  ;;  %v307_v50 = vshrl.u32 %v3366_v24, 16  ;;  %v313_v51 = vshll.u32 %v182_v30, 16  ;;  %v3204_v39 = vld [vmem:[%s3282_s22 + $0x78] sm:$0xff]  }
  0x26   : > { %2956 = vmatprep.mubr.msk.bf16.mxu1 %vm631_vm1, %v2512_v43  ;;  %v282_v54 = vsel %vm3321_vm4, %v277_v44, %v281_v27  ;;  %v300_v55 = vor.u32 %v299_v46, %v296_v45  ;;  %v318_v56 = vshrl.u32 %v3382_v40, 16  ;;  %v321_v57 = vshll.u32 %v3382_v40, 16 }
  0x27   : > { %v287_v58 = vrot.slane %v286_v10, 4  ;;  %v309_v59 = vrot.slane %v307_v50, 4  ;;  %v315_v60 = vrot.slane %v313_v51, 5  ;;  %v327_v61 = vshll.u32 %v3385_v48, 16  ;;  %v185_v10 = vld [vmem:[%s3282_s22 + $0x5c] sm:$0x1] }
  0x28   : > { %v301_v0 = vrot.slane %v300_v55, 4  ;;  %v320_v1 = vrot.slane %v318_v56, 4  ;;  %v323_v2 = vrot.slane %v321_v57, 5  ;;  %v331_v4 = vshrl.u32 %v3385_v48, 16 }
  0x29   : > { %v292_v6 = vsel %vm3321_vm4, %v287_v58, %v291_v38  ;;  %v310_v7 = vor.u32 %v309_v59, %v305_v49  ;;  %v329_v8 = vrot.slane %v327_v61, 5  ;;  %v337_v9 = vshll.u32 %v183_v53, 16  ;;  %v3205_v53 = vld [vmem:[%s3282_s22 + $0x84] sm:$0xff]  }
  0x2a   : > { %v2513_v14 = vcombine.low %v282_v54, %v292_v6  ;;  %v306_v15 = vsel %vm3321_vm4, %v301_v0, %v305_v49  ;;  %v324_v16 = vor.u32 %v323_v2, %v320_v1  ;;  %v333_v18 = vrot.slane %v331_v4, 4  ;;  %v3431_v54 = vld [vmem:[%s3282_s22 + $0x60] sm:$0xf]  ;;  %v3440_v59 = vld [vmem:[%s3282_s22 + $0x64] sm:$0xf] }
  0x2b   : > { %3033 = vmatmul.mubr.msk.bf16.gmra.mrb[12].mxu0 %vm631_vm1, %v3202_v52  ;;  %v311_v22 = vrot.slane %v310_v7, 4  ;;  %v339_v23 = vrot.slane %v337_v9, 5  ;;  %v342_v25 = vshrl.u32 %v3399_v5, 16  ;;  %v345_v27 = vshll.u32 %v3399_v5, 16  ;;  %v186_v7 = vld [vmem:[%s3282_s22 + $0x68] sm:$0x1] }
  0x2c   : > { %3036 = vmatprep.mubr.msk.bf16.mxu0 %vm631_vm1, %v3203_v63  ;;  %2957 = vmatmul.mubr.msk.bf16.gmra.mrb[4].mxu1 %vm631_vm1, %v2513_v14  ;;  %v325_v29 = vrot.slane %v324_v16, 4  ;;  %v334_v30 = vor.u32 %v333_v18, %v329_v8  ;;  %v351_v31 = vshll.u32 %v3404_v13, 16  ;;  %v355_v32 = vshrl.u32 %v3404_v13, 16  ;;  %v3450_v16 = vld [vmem:[%s3282_s22 + $0x6c] sm:$0xf] }
  0x2d   : > { %v316_v34 = vsel %vm3321_vm4, %v311_v22, %v315_v60  ;;  %v344_v35 = vrot.slane %v342_v25, 4  ;;  %v347_v37 = vrot.slane %v345_v27, 5  ;;  %v361_v38 = vshll.u32 %v184_v19, 16  ;;  %v3455_v25 = vld [vmem:[%s3282_s22 + $0x70] sm:$0xf] }
  0x2e   : > { %v2514_v43 = vcombine.low %v306_v15, %v316_v34  ;;  %v330_v44 = vsel %vm3321_vm4, %v325_v29, %v329_v8  ;;  %v335_v45 = vrot.slane %v334_v30, 4  ;;  %v353_v46 = vrot.slane %v351_v31, 5 }
  0x2f   : > { %v348_v49 = vor.u32 %v347_v37, %v344_v35  ;;  %v357_v50 = vrot.slane %v355_v32, 4  ;;  %v363_v51 = vrot.slane %v361_v38, 5  ;;  %v366_v52 = vshrl.u32 %v3414_v28, 16  ;;  %v3206_v38 = vld [vmem:[%s3282_s22 + $0x90] sm:$0xff]  }
  0x30   : > { %2960 = vmatprep.mubr.msk.bf16.mxu1 %vm631_vm1, %v2514_v43  ;;  %v340_v55 = vsel %vm3321_vm4, %v335_v45, %v339_v23  ;;  %v369_v56 = vshll.u32 %v3414_v28, 16  ;;  %v375_v57 = vshll.u32 %v3420_v33, 16  ;;  %v379_v58 = vshrl.u32 %v3420_v33, 16  ;;  %v187_v45 = vld [vmem:[%s3282_s22 + $0x74] sm:$0x1] }
  0x31   : > { %v2515_v60 = vcombine.low %v330_v44, %v340_v55  ;;  %v349_v61 = vrot.slane %v348_v49, 4  ;;  %v358_v63 = vor.u32 %v357_v50, %v353_v46  ;;  %v368_v0 = vrot.slane %v366_v52, 4 }
  0x32   : > { %v371_v1 = vrot.slane %v369_v56, 5  ;;  %v377_v2 = vrot.slane %v375_v57, 5  ;;  %v381_v4 = vrot.slane %v379_v58, 4  ;;  %v385_v6 = vshll.u32 %v185_v10, 16  ;;  %v3207_v10 = vld [vmem:[%s3282_s22 + $0x9c] sm:$0xff]  }
  0x33   : > { %3037 = vmatmul.mubr.msk.bf16.gmra.mrb[16].mxu0 %vm631_vm1, %v3204_v39  ;;  %v354_v8 = vsel %vm3321_vm4, %v349_v61, %v353_v46  ;;  %v359_v9 = vrot.slane %v358_v63, 4  ;;  %v390_v14 = vshrl.u32 %v3431_v54, 16  ;;  %v393_v15 = vshll.u32 %v3431_v54, 16 }
  0x34   : > { %3040 = vmatprep.mubr.msk.bf16.mxu0 %vm631_vm1, %v3205_v53  ;;  %2961 = vmatmul.mubr.msk.bf16.gmra.mrb[8].mxu1 %vm631_vm1, %v2515_v60  ;;  %v372_v18 = vor.u32 %v371_v1, %v368_v0  ;;  %v382_v19 = vor.u32 %v381_v4, %v377_v2  ;;  %v387_v22 = vrot.slane %v385_v6, 5  ;;  %v399_v23 = vshll.u32 %v3440_v59, 16  ;;  %v3472_v53 = vld [vmem:[%s3282_s22 + $0x78] sm:$0xf]  ;;  %v3475_v60 = vld [vmem:[%s3282_s22 + $0x7c] sm:$0xf] }
  0x35   : > { %v364_v27 = vsel %vm3321_vm4, %v359_v9, %v363_v51  ;;  %v392_v29 = vrot.slane %v390_v14, 4  ;;  %v395_v30 = vrot.slane %v393_v15, 5  ;;  %v403_v31 = vshrl.u32 %v3440_v59, 16  ;;  %v3485_v9 = vld [vmem:[%s3282_s22 + $0x84] sm:$0xf] }
  0x36   : > { %v2516_v32 = vcombine.low %v354_v8, %v364_v27  ;;  %v373_v34 = vrot.slane %v372_v18, 4  ;;  %v383_v35 = vrot.slane %v382_v19, 4  ;;  %v401_v37 = vrot.slane %v399_v23, 5 }
  0x37   : > { %v396_v39 = vor.u32 %v395_v30, %v392_v29  ;;  %v405_v43 = vrot.slane %v403_v31, 4  ;;  %v409_v44 = vshll.u32 %v186_v7, 16  ;;  %v414_v46 = vshrl.u32 %v3450_v16, 16 }
  0x38   : > { %2964 = vmatprep.mubr.msk.bf16.mxu1 %vm631_vm1, %v2516_v32  ;;  %v378_v49 = vsel %vm3321_vm4, %v373_v34, %v377_v2  ;;  %v388_v50 = vsel %vm3321_vm4, %v383_v35, %v387_v22  ;;  %v417_v51 = vshll.u32 %v3450_v16, 16  ;;  %v423_v52 = vshll.u32 %v3455_v25, 16  ;;  %v188_v2 = vld [vmem:[%s3282_s22 + $0x80] sm:$0x1]  ;;  %v3208_v35 = vld [vmem:[%s3282_s22 + $0xa8] sm:$0xff]  }
  0x39   : > { %v2517_v55 = vcombine.low %v378_v49, %v388_v50  ;;  %v397_v56 = vrot.slane %v396_v39, 4  ;;  %v406_v57 = vor.u32 %v405_v43, %v401_v37  ;;  %v411_v58 = vrot.slane %v409_v44, 5 }
  0x3a   : > { %v416_v61 = vrot.slane %v414_v46, 4  ;;  %v419_v63 = vrot.slane %v417_v51, 5  ;;  %v425_v0 = vrot.slane %v423_v52, 5  ;;  %v427_v1 = vshrl.u32 %v3455_v25, 16 }
  0x3b   : > { %3041 = vmatmul.mubr.msk.bf16.gmra.mrb[20].mxu0 %vm631_vm1, %v3206_v38  ;;  %v402_v4 = vsel %vm3321_vm4, %v397_v56, %v401_v37  ;;  %v407_v6 = vrot.slane %v406_v57, 4  ;;  %v433_v7 = vshll.u32 %v187_v45, 16  ;;  %v438_v8 = vshrl.u32 %v3472_v53, 16  ;;  %v3495_v37 = vld [vmem:[%s3282_s22 + $0x88] sm:$0xf]  ;;  %v3209_v38 = vld [vmem:[%s3282_s22 + $0xb4] sm:$0xff]  }
  0x3c   : > { %3044 = vmatprep.mubr.msk.bf16.mxu0 %vm631_vm1, %v3207_v10  ;;  %2965 = vmatmul.mubr.msk.bf16.gmra.mrb[12].mxu1 %vm631_vm1, %v2517_v55  ;;  %v420_v14 = vor.u32 %v419_v63, %v416_v61  ;;  %v429_v15 = vrot.slane %v427_v1, 4  ;;  %v441_v18 = vshll.u32 %v3472_v53, 16  ;;  %v447_v19 = vshll.u32 %v3475_v60, 16  ;;  %v189_v45 = vld [vmem:[%s3282_s22 + $0x8c] sm:$0x1] }
  0x3d   : > { %v412_v22 = vsel %vm3321_vm4, %v407_v6, %v411_v58  ;;  %v435_v23 = vrot.slane %v433_v7, 5  ;;  %v440_v27 = vrot.slane %v438_v8, 4  ;;  %v451_v29 = vshrl.u32 %v3475_v60, 16  ;;  %v3506_v58 = vld [vmem:[%s3282_s22 + $0x90] sm:$0xf] }
  0x3e   : > { %v2518_v30 = vcombine.low %v402_v4, %v412_v22  ;;  %v421_v31 = vrot.slane %v420_v14, 4  ;;  %v430_v32 = vor.u32 %v429_v15, %v425_v0  ;;  %v443_v34 = vrot.slane %v441_v18, 5 }
  0x3f   : > { %v449_v39 = vrot.slane %v447_v19, 5  ;;  %v453_v43 = vrot.slane %v451_v29, 4  ;;  %v457_v44 = vshll.u32 %v188_v2, 16  ;;  %v462_v46 = vshrl.u32 %v3485_v9, 16  ;;  %v3513_v2 = vld [vmem:[%s3282_s22 + $0x94] sm:$0xf] }
  0x40   : > { %2968 = vmatprep.mubr.msk.bf16.mxu1 %vm631_vm1, %v2518_v30  ;;  %v426_v10 = vsel %vm3321_vm4, %v421_v31, %v425_v0  ;;  %v431_v49 = vrot.slane %v430_v32, 4  ;;  %v444_v50 = vor.u32 %v443_v34, %v440_v27  ;;  %v465_v51 = vshll.u32 %v3485_v9, 16  ;;  %v190_v19 = vld [vmem:[%s3282_s22 + $0x98] sm:$0x1]  ;;  %v3526_v31 = vld [vmem:[%s3282_s22 + $0x9c] sm:$0xf] }
  0x41   : > { %v454_v52 = vor.u32 %v453_v43, %v449_v39  ;;  %v459_v55 = vrot.slane %v457_v44, 5  ;;  %v464_v56 = vrot.slane %v462_v46, 4  ;;  %v471_v57 = vshll.u32 %v3495_v37, 16  ;;  %v3530_v43 = vld [vmem:[%s3282_s22 + $0xa0] sm:$0xf] }
  0x42   : > { %v436_v61 = vsel %vm3321_vm4, %v431_v49, %v435_v23  ;;  %v445_v63 = vrot.slane %v444_v50, 4  ;;  %v467_v1 = vrot.slane %v465_v51, 5  ;;  %v475_v0 = vshrl.u32 %v3495_v37, 16  ;;  %v191_v51 = vld [vmem:[%s3282_s22 + $0xa4] sm:$0x1] }
  0x43   : > { %3045 = vmatmul.mubr.msk.bf16.gmra.mrb[24].mxu0 %vm631_vm1, %v3208_v35  ;;  %v2519_v4 = vcombine.low %v426_v10, %v436_v61  ;;  %v455_v6 = vrot.slane %v454_v52, 4  ;;  %v473_v7 = vrot.slane %v471_v57, 5  ;;  %v481_v8 = vshll.u32 %v189_v45, 16 }
  0x44   : > { %3048 = vmatprep.mubr.msk.bf16.mxu0 %vm631_vm1, %v3209_v38  ;;  %v450_v14 = vsel %vm3321_vm4, %v445_v63, %v449_v39  ;;  %v468_v15 = vor.u32 %v467_v1, %v464_v56  ;;  %v477_v18 = vrot.slane %v475_v0, 4  ;;  %v486_v22 = vshrl.u32 %v3506_v58, 16  ;;  %v3210_v39 = vld [vmem:[%s3282_s22 + $0xc0] sm:$0xff]   ;;  %v2639_v1 = vld [vmem:[%s3282_s22 + $0xc] sm:$0xf] }
  0x45   : > { %2969 = vmatmul.mubr.msk.bf16.gmra.mrb[16].mxu1 %vm631_vm1, %v2519_v4  ;;  %v460_v23 = vsel %vm3321_vm4, %v455_v6, %v459_v55  ;;  %v483_v27 = vrot.slane %v481_v8, 5  ;;  %v489_v29 = vshll.u32 %v3506_v58, 16  ;;  %v495_v30 = vshll.u32 %v3513_v2, 16  ;;  %v2640_v8 = vld [vmem:[%s3282_s22 + $0x10] sm:$0xf] }
  0x46   : > { %v2520_v32 = vcombine.low %v450_v14, %v460_v23  ;;  %v469_v34 = vrot.slane %v468_v15, 4  ;;  %v478_v35 = vor.u32 %v477_v18, %v473_v7  ;;  %v488_v38 = vrot.slane %v486_v22, 4 }
  0x47   : > { %v491_v44 = vrot.slane %v489_v29, 5  ;;  %v497_v45 = vrot.slane %v495_v30, 5  ;;  %v499_v46 = vshrl.u32 %v3513_v2, 16  ;;  %v505_v10 = vshll.u32 %v190_v19, 16 }
  0x48   : > { %2972 = vmatprep.mubr.msk.bf16.mxu1 %vm631_vm1, %v2520_v32  ;;  %v474_v49 = vsel %vm3321_vm4, %v469_v34, %v473_v7  ;;  %v479_v50 = vrot.slane %v478_v35, 4  ;;  %v510_v52 = vshrl.u32 %v3526_v31, 16  ;;  %v513_v55 = vshll.u32 %v3526_v31, 16  ;;  %v2641_v34 = vld [vmem:[%s3282_s22 + $0x14] sm:$0x1] }
  0x49   : > { %v492_v56 = vor.u32 %v491_v44, %v488_v38  ;;  %v501_v57 = vrot.slane %v499_v46, 4  ;;  %v507_v61 = vrot.slane %v505_v10, 5  ;;  %v519_v63 = vshll.u32 %v3530_v43, 16 }
  0x4a   : > { %v484_v0 = vsel %vm3321_vm4, %v479_v50, %v483_v27  ;;  %v512_v4 = vrot.slane %v510_v52, 4  ;;  %v515_v6 = vrot.slane %v513_v55, 5  ;;  %v523_v7 = vshrl.u32 %v3530_v43, 16 }
  0x4b   : > { %3049 = vmatmul.mubr.msk.bf16.gmra.mrb[28].mxu0 %vm631_vm1, %v3210_v39  ;;  %v2521_v14 = vcombine.low %v474_v49, %v484_v0  ;;  %v493_v15 = vrot.slane %v492_v56, 4  ;;  %v502_v18 = vor.u32 %v501_v57, %v497_v45  ;;  %v521_v19 = vrot.slane %v519_v63, 5  ;;  %v3551_v49 = vld [vmem:[%s3282_s22 + $0xa8] sm:$0xf]  ;;  %v3556_v56 = vld [vmem:[%s3282_s22 + $0xac] sm:$0xf] }
  0x4c   : > { %v516_v22 = vor.u32 %v515_v6, %v512_v4  ;;  %v525_v23 = vrot.slane %v523_v7, 4  ;;  %v529_v29 = vshll.u32 %v191_v51, 16  ;;  %v1545_v30 = vshrl.u32 %v2639_v1, 16  ;;  %v192_v6 = vld [vmem:[%s3282_s22 + $0xb0] sm:$0x1] }
  0x4d   : > { %2973 = vmatmul.mubr.msk.bf16.gmra.mrb[20].mxu1 %vm631_vm1, %v2521_v14  ;;  %v498_v27 = vsel %vm3321_vm4, %v493_v15, %v497_v45  ;;  %v503_v32 = vrot.slane %v502_v18, 4  ;;  %v1548_v35 = vshll.u32 %v2639_v1, 16  ;;  %v1554_v38 = vshll.u32 %v2640_v8, 16 }
  0x4e   : > { %v517_v39 = vrot.slane %v516_v22, 4  ;;  %v526_v44 = vor.u32 %v525_v23, %v521_v19  ;;  %v531_v46 = vrot.slane %v529_v29, 5  ;;  %v1547_v10 = vrot.slane %v1545_v30, 4 }
  0x4f   : > { %v508_v50 = vsel %vm3321_vm4, %v503_v32, %v507_v61  ;;  %v1550_v51 = vrot.slane %v1548_v35, 5  ;;  %v1556_v52 = vrot.slane %v1554_v38, 5  ;;  %v1558_v55 = vshrl.u32 %v2640_v8, 16 }
  0x50   : > { %v2522_v45 = vcombine.low %v498_v27, %v508_v50  ;;  %v522_v57 = vsel %vm3321_vm4, %v517_v39, %v521_v19  ;;  %v527_v63 = vrot.slane %v526_v44, 4  ;;  %v1564_v1 = vshll.u32 %v2641_v34, 16  ;;  %v2642_v19 = vld [vmem:[%s3282_s22 + $0x18] sm:$0xf]  ;;  %v2643_v27 = vld [vmem:[%s3282_s22 + $0x1c] sm:$0xf] }
  0x51   : > { %v1551_v0 = vor.u32 %v1550_v51, %v1547_v10  ;;  %v1560_v4 = vrot.slane %v1558_v55, 4  ;;  %v534_v7 = vshrl.u32 %v3551_v49, 16  ;;  %v537_v61 = vshll.u32 %v3551_v49, 16 }
  0x52   : > { %2976 = vmatprep.mubr.msk.bf16.mxu1 %vm631_vm1, %v2522_v45  ;;  %v532_v8 = vsel %vm3321_vm4, %v527_v63, %v531_v46  ;;  %v1566_v14 = vrot.slane %v1564_v1, 5  ;;  %v543_v15 = vshll.u32 %v3556_v56, 16  ;;  %v547_v18 = vshrl.u32 %v3556_v56, 16  ;;  %v2644_v45 = vld [vmem:[%s3282_s22 + $0x20] sm:$0x1] }
  0x53   : > { %v2523_v22 = vcombine.low %v522_v57, %v532_v8  ;;  %v1552_v23 = vrot.slane %v1551_v0, 4  ;;  %v1561_v29 = vor.u32 %v1560_v4, %v1556_v52  ;;  %v536_v30 = vrot.slane %v534_v7, 4  ;;  %v3575_v63 = vld [vmem:[%s3282_s22 + $0xb4] sm:$0xf]  ;;  %v3580_v7 = vld [vmem:[%s3282_s22 + $0xb8] sm:$0xf] }
  0x54   : > { %v539_v32 = vrot.slane %v537_v61, 5  ;;  %v545_v34 = vrot.slane %v543_v15, 5  ;;  %v549_v35 = vrot.slane %v547_v18, 4  ;;  %v553_v38 = vshll.u32 %v192_v6, 16 }
  0x55   : > { %2977 = vmatmul.mubr.msk.bf16.gmra.mrb[24].mxu1 %vm631_vm1, %v2523_v22  ;;  %v1557_v39 = vsel %vm3321_vm4, %v1552_v23, %v1556_v52  ;;  %v1562_v44 = vrot.slane %v1561_v29, 4  ;;  %v1569_v46 = vshrl.u32 %v2642_v19, 16  ;;  %v1572_v10 = vshll.u32 %v2642_v19, 16 }
  0x56   : > { %v540_v50 = vor.u32 %v539_v32, %v536_v30  ;;  %v550_v51 = vor.u32 %v549_v35, %v545_v34  ;;  %v555_v55 = vrot.slane %v553_v38, 5  ;;  %v1578_v57 = vshll.u32 %v2643_v27, 16  ;;  %v193_v30 = vld [vmem:[%s3282_s22 + $0xbc] sm:$0x1]  ;;  %v2645_v35 = vld [vmem:[%s3282_s22 + $0x24] sm:$0xf] }
  0x57   : > { %v1567_v1 = vsel %vm3321_vm4, %v1562_v44, %v1566_v14  ;;  %v1571_v0 = vrot.slane %v1569_v46, 4  ;;  %v1574_v4 = vrot.slane %v1572_v10, 5  ;;  %v1582_v6 = vshrl.u32 %v2643_v27, 16  ;;  %v2646_v10 = vld [vmem:[%s3282_s22 + $0x28] sm:$0xf] }
  0x58   : > { %v2688_v52 = vcombine.low %v1557_v39, %v1567_v1  ;;  %v541_v61 = vrot.slane %v540_v50, 4  ;;  %v551_v8 = vrot.slane %v550_v51, 4  ;;  %v1580_v15 = vrot.slane %v1578_v57, 5 }
  0x59   : > { %v1575_v18 = vor.u32 %v1574_v4, %v1571_v0  ;;  %v1584_v19 = vrot.slane %v1582_v6, 4  ;;  %v1588_v22 = vshll.u32 %v2644_v45, 16  ;;  %v558_v23 = vshrl.u32 %v3575_v63, 16  ;;  %v2647_v0 = vld [vmem:[%s3282_s22 + $0x2c] sm:$0x1] }
  0x5a   : > { %3054 = vmatprep.mubr.msk.bf16.mxu0 %vm631_vm1, %v2688_v52  ;;  %v546_v14 = vsel %vm3321_vm4, %v541_v61, %v545_v34  ;;  %v556_v29 = vsel %vm3321_vm4, %v551_v8, %v555_v55  ;;  %v561_v27 = vshll.u32 %v3575_v63, 16  ;;  %v567_v32 = vshll.u32 %v3580_v7, 16 }
  0x5b   : > { %v2524_v38 = vcombine.low %v546_v14, %v556_v29  ;;  %v1576_v39 = vrot.slane %v1575_v18, 4  ;;  %v1585_v44 = vor.u32 %v1584_v19, %v1580_v15  ;;  %v1590_v46 = vrot.slane %v1588_v22, 5  ;;  %v2648_v18 = vld [vmem:[%s3282_s22 + $0x30] sm:$0xf] }
  0x5c   : > { %v560_v50 = vrot.slane %v558_v23, 4  ;;  %v563_v51 = vrot.slane %v561_v27, 5  ;;  %v569_v45 = vrot.slane %v567_v32, 5  ;;  %v571_v34 = vshrl.u32 %v3580_v7, 16 }
  0x5d   : > { %2980 = vmatprep.mubr.msk.bf16.mxu1 %vm631_vm1, %v2524_v38  ;;  %v1581_v55 = vsel %vm3321_vm4, %v1576_v39, %v1580_v15  ;;  %v1586_v57 = vrot.slane %v1585_v44, 4  ;;  %v577_v1 = vshll.u32 %v193_v30, 16  ;;  %v1593_v4 = vshrl.u32 %v2645_v35, 16  ;;  %v2649_v30 = vld [vmem:[%s3282_s22 + $0x34] sm:$0xf] }
  0x5e   : > { %v564_v6 = vor.u32 %v563_v51, %v560_v50  ;;  %v573_v52 = vrot.slane %v571_v34, 4  ;;  %v1596_v61 = vshll.u32 %v2645_v35, 16  ;;  %v1602_v8 = vshll.u32 %v2646_v10, 16  ;;  %v2650_v34 = vld [vmem:[%s3282_s22 + $0x38] sm:$0x1] }
  0x5f   : > { %v1591_v19 = vsel %vm3321_vm4, %v1586_v57, %v1590_v46  ;;  %v579_v22 = vrot.slane %v577_v1, 5  ;;  %v1595_v23 = vrot.slane %v1593_v4, 4  ;;  %v1606_v14 = vshrl.u32 %v2646_v10, 16 }
  0x60   : > { %v2689_v29 = vcombine.low %v1581_v55, %v1591_v19  ;;  %v565_v27 = vrot.slane %v564_v6, 4  ;;  %v574_v15 = vor.u32 %v573_v52, %v569_v45  ;;  %v1598_v32 = vrot.slane %v1596_v61, 5  ;;  %v2651_v6 = vld [vmem:[%s3282_s22 + $0x3c] sm:$0xf]  ;;  %v2652_v19 = vld [vmem:[%s3282_s22 + $0x40] sm:$0xf] }
  0x61   : > { %v1604_v38 = vrot.slane %v1602_v8, 5  ;;  %v1608_v39 = vrot.slane %v1606_v14, 4  ;;  %v1612_v44 = vshll.u32 %v2647_v0, 16  ;;  %v1617_v50 = vshrl.u32 %v2648_v18, 16 }
  0x62   : > { %3055 = vmatmul.mubr.msk.bf16.vlgmr.msra.gmra.mrb[0].mxu0 %vm631_vm1, %v2689_v29  ;;  %v570_v35 = vsel %vm3321_vm4, %v565_v27, %v569_v45  ;;  %v575_v46 = vrot.slane %v574_v15, 4  ;;  %v1599_v51 = vor.u32 %v1598_v32, %v1595_v23  ;;  %v1620_v10 = vshll.u32 %v2648_v18, 16  ;;  %v2653_v32 = vld [vmem:[%s3282_s22 + $0x44] sm:$0x1] }
  0x63   : > { %v1609_v55 = vor.u32 %v1608_v39, %v1604_v38  ;;  %v1614_v57 = vrot.slane %v1612_v44, 5  ;;  %v1619_v1 = vrot.slane %v1617_v50, 4  ;;  %v1626_v4 = vshll.u32 %v2649_v30, 16 }
  0x64   : > { %v580_v0 = vsel %vm3321_vm4, %v575_v46, %v579_v22  ;;  %v1600_v52 = vrot.slane %v1599_v51, 4  ;;  %v1622_v61 = vrot.slane %v1620_v10, 5  ;;  %v1630_v8 = vshrl.u32 %v2649_v30, 16 }
  0x65   : > { %v2525_v14 = vcombine.low %v570_v35, %v580_v0  ;;  %v1610_v45 = vrot.slane %v1609_v55, 4  ;;  %v1628_v29 = vrot.slane %v1626_v4, 5  ;;  %v1636_v23 = vshll.u32 %v2650_v34, 16  ;;  %v2654_v35 = vld [vmem:[%s3282_s22 + $0x48] sm:$0xf] }
  0x66   : > { %v1605_v18 = vsel %vm3321_vm4, %v1600_v52, %v1604_v38  ;;  %v1623_v27 = vor.u32 %v1622_v61, %v1619_v1  ;;  %v1632_v15 = vrot.slane %v1630_v8, 4  ;;  %v1641_v39 = vshrl.u32 %v2651_v6, 16  ;;  %v2656_v8 = vld [vmem:[%s3282_s22 + $0x50] sm:$0x1] }
  0x67   : > { %2981 = vmatmul.mubr.msk.bf16.gmra.mrb[28].mxu1 %vm631_vm1, %v2525_v14  ;;  %v1615_v22 = vsel %vm3321_vm4, %v1610_v45, %v1614_v57  ;;  %v1638_v30 = vrot.slane %v1636_v23, 5  ;;  %v1644_v44 = vshll.u32 %v2651_v6, 16  ;;  %v1650_v50 = vshll.u32 %v2652_v19, 16  ;;  %v2655_v57 = vld [vmem:[%s3282_s22 + $0x4c] sm:$0xf] }
  0x68   : > { %v2690_v46 = vcombine.low %v1605_v18, %v1615_v22  ;;  %2986 = vmatprep.mubr.msk.bf16.mxu1 %vm631_vm1, %v2542_v21  ;;  %v1624_v38 = vrot.slane %v1623_v27, 4  ;;  %v1633_v51 = vor.u32 %v1632_v15, %v1628_v29  ;;  %v1643_v34 = vrot.slane %v1641_v39, 4  ;;  %v2657_v27 = vld [vmem:[%s3282_s22 + $0x54] sm:$0xf] }
  0x69   : > { %v1646_v10 = vrot.slane %v1644_v44, 5  ;;  %v1652_v55 = vrot.slane %v1650_v50, 5  ;;  %v1654_v1 = vshrl.u32 %v2652_v19, 16  ;;  %v1660_v4 = vshll.u32 %v2653_v32, 16 }
  0x6a   : > { %3058 = vmatprep.mubr.msk.bf16.mxu0 %vm631_vm1, %v2690_v46  ;;  %v1629_v6 = vsel %vm3321_vm4, %v1624_v38, %v1628_v29  ;;  %v1634_v0 = vrot.slane %v1633_v51, 4  ;;  %v2544_v11 = vcombine.low %v3327_v41, %v3332_v47  ;;  %v1665_v12 = vshrl.u32 %v2654_v35, 16  ;;  %v2658_v41 = vld [vmem:[%s3282_s22 + $0x58] sm:$0xf] }
  0x6b   : > { %v1647_v21 = vor.u32 %v1646_v10, %v1643_v34  ;;  %v1656_v52 = vrot.slane %v1654_v1, 4  ;;  %v1662_v61 = vrot.slane %v1660_v4, 5  ;;  %v1668_v14 = vshll.u32 %v2654_v35, 16  ;;  %v2660_v4 = vld [vmem:[%s3282_s22 + $0x60] sm:$0xf] }
  0x6c   : > { %v1639_v19 = vsel %vm3321_vm4, %v1634_v0, %v1638_v30  ;;  %v1667_v45 = vrot.slane %v1665_v12, 4  ;;  %v1674_v23 = vshll.u32 %v2655_v57, 16  ;;  %v1678_v18 = vshrl.u32 %v2655_v57, 16  ;;  %v2661_v12 = vld [vmem:[%s3282_s22 + $0x64] sm:$0xf] }
  0x6d   : > { %v2691_v15 = vcombine.low %v1629_v6, %v1639_v19  ;;  %v1648_v29 = vrot.slane %v1647_v21, 4  ;;  %v1657_v32 = vor.u32 %v1656_v52, %v1652_v55  ;;  %v1670_v39 = vrot.slane %v1668_v14, 5  ;;  %v2662_v19 = vld [vmem:[%s3282_s22 + $0x68] sm:$0x1] }
  0x6e   : > { %v1676_v47 = vrot.slane %v1674_v23, 5  ;;  %v1680_v22 = vrot.slane %v1678_v18, 4  ;;  %v1684_v44 = vshll.u32 %v2656_v8, 16  ;;  %v2545_v50 = vcombine.low %v3347_v62, %v3350_v3  ;;  %v2659_v62 = vld [vmem:[%s3282_s22 + $0x5c] sm:$0x1] }
  0x6f   : > { %3059 = vmatmul.mubr.msk.bf16.gmra.mrb[4].mxu0 %vm631_vm1, %v2691_v15  ;;  %2987 = vmatmul.mubr.msk.bf16.vlgmr.msra.gmra.mrb[0].mxu1 %vm631_vm1, %v2543_v42  ;;  %v1653_v30 = vsel %vm3321_vm4, %v1648_v29, %v1652_v55  ;;  %v1658_v35 = vrot.slane %v1657_v32, 4  ;;  %v1671_v46 = vor.u32 %v1670_v39, %v1667_v45  ;;  %v1689_v38 = vshrl.u32 %v2657_v27, 16  ;;  %v2663_v32 = vld [vmem:[%s3282_s22 + $0x6c] sm:$0xf] }
  0x70   : > { %2990 = vmatprep.mubr.msk.bf16.mxu1 %vm631_vm1, %v2544_v11  ;;  %v1681_v51 = vor.u32 %v1680_v22, %v1676_v47  ;;  %v1686_v34 = vrot.slane %v1684_v44, 5  ;;  %v1692_v3 = vshll.u32 %v2657_v27, 16  ;;  %v1698_v10 = vshll.u32 %v2658_v41, 16 }
  0x71   : > { %v1663_v20 = vsel %vm3321_vm4, %v1658_v35, %v1662_v61  ;;  %v1672_v26 = vrot.slane %v1671_v46, 4  ;;  %v1691_v42 = vrot.slane %v1689_v38, 4  ;;  %v1702_v1 = vshrl.u32 %v2658_v41, 16 }
  0x72   : > { %v2692_v55 = vcombine.low %v1653_v30, %v1663_v20  ;;  %v1682_v57 = vrot.slane %v1681_v51, 4  ;;  %v1694_v6 = vrot.slane %v1692_v3, 5  ;;  %v1700_v0 = vrot.slane %v1698_v10, 5 }
  0x73   : > { %v1677_v11 = vsel %vm3321_vm4, %v1672_v26, %v1676_v47  ;;  %v1704_v21 = vrot.slane %v1702_v1, 4  ;;  %v1708_v52 = vshll.u32 %v2659_v62, 16  ;;  %v2546_v8 = vcombine.low %v3363_v17, %v3366_v24  ;;  %v2664_v24 = vld [vmem:[%s3282_s22 + $0x70] sm:$0xf]  ;;  %v2666_v26 = vld [vmem:[%s3282_s22 + $0x78] sm:$0xf] }
  0x74   : > { %3062 = vmatprep.mubr.msk.bf16.mxu0 %vm631_vm1, %v2692_v55  ;;  %v1687_v61 = vsel %vm3321_vm4, %v1682_v57, %v1686_v34  ;;  %v1695_v14 = vor.u32 %v1694_v6, %v1691_v42  ;;  %v1713_v45 = vshrl.u32 %v2660_v4, 16  ;;  %v1716_v23 = vshll.u32 %v2660_v4, 16  ;;  %v2665_v34 = vld [vmem:[%s3282_s22 + $0x74] sm:$0x1] }
  0x75   : > { %v2693_v18 = vcombine.low %v1677_v11, %v1687_v61  ;;  %v1705_v27 = vor.u32 %v1704_v21, %v1700_v0  ;;  %v1710_v15 = vrot.slane %v1708_v52, 5  ;;  %v1722_v29 = vshll.u32 %v2661_v12, 16 }
  0x76   : > { %v1696_v39 = vrot.slane %v1695_v14, 4  ;;  %v1715_v41 = vrot.slane %v1713_v45, 4  ;;  %v1718_v47 = vrot.slane %v1716_v23, 5  ;;  %v1726_v17 = vshrl.u32 %v2661_v12, 16 }
  0x77   : > { %3063 = vmatmul.mubr.msk.bf16.gmra.mrb[8].mxu0 %vm631_vm1, %v2693_v18  ;;  %2991 = vmatmul.mubr.msk.bf16.gmra.mrb[4].mxu1 %vm631_vm1, %v2545_v50  ;;  %v1706_v22 = vrot.slane %v1705_v27, 4  ;;  %v1724_v44 = vrot.slane %v1722_v29, 5  ;;  %v1732_v30 = vshll.u32 %v2662_v19, 16  ;;  %v2547_v35 = vcombine.low %v3382_v40, %v3385_v48  ;;  %v2668_v19 = vld [vmem:[%s3282_s22 + $0x80] sm:$0x1] }
  0x78   : > { %v1701_v46 = vsel %vm3321_vm4, %v1696_v39, %v1700_v0  ;;  %2994 = vmatprep.mubr.msk.bf16.mxu1 %vm631_vm1, %v2546_v8  ;;  %v1719_v38 = vor.u32 %v1718_v47, %v1715_v41  ;;  %v1728_v51 = vrot.slane %v1726_v17, 4  ;;  %v1737_v62 = vshrl.u32 %v2663_v32, 16  ;;  %v2667_v0 = vld [vmem:[%s3282_s22 + $0x7c] sm:$0xf]  ;;  %v2669_v29 = vld [vmem:[%s3282_s22 + $0x84] sm:$0xf] }
  0x79   : > { %v1711_v3 = vsel %vm3321_vm4, %v1706_v22, %v1710_v15  ;;  %v1734_v50 = vrot.slane %v1732_v30, 5  ;;  %v1740_v10 = vshll.u32 %v2663_v32, 16  ;;  %v1746_v20 = vshll.u32 %v2664_v24, 16  ;;  %v2670_v41 = vld [vmem:[%s3282_s22 + $0x88] sm:$0xf] }
  0x7a   : > { %v2694_v42 = vcombine.low %v1701_v46, %v1711_v3  ;;  %v1720_v1 = vrot.slane %v1719_v38, 4  ;;  %v1729_v40 = vor.u32 %v1728_v51, %v1724_v44  ;;  %v1739_v48 = vrot.slane %v1737_v62, 4 }
  0x7b   : > { %v1742_v4 = vrot.slane %v1740_v10, 5  ;;  %v1748_v55 = vrot.slane %v1746_v20, 5  ;;  %v1750_v57 = vshrl.u32 %v2664_v24, 16  ;;  %v1756_v6 = vshll.u32 %v2665_v34, 16  ;;  %v2671_v34 = vld [vmem:[%s3282_s22 + $0x8c] sm:$0x1] }
  0x7c   : > { %3066 = vmatprep.mubr.msk.bf16.mxu0 %vm631_vm1, %v2694_v42  ;;  %v1725_v12 = vsel %vm3321_vm4, %v1720_v1, %v1724_v44  ;;  %v1730_v11 = vrot.slane %v1729_v40, 4  ;;  %v2548_v21 = vcombine.low %v3399_v5, %v3404_v13  ;;  %v1761_v52 = vshrl.u32 %v2666_v26, 16  ;;  %v2672_v20 = vld [vmem:[%s3282_s22 + $0x90] sm:$0xf] }
  0x7d   : > { %v1743_v8 = vor.u32 %v1742_v4, %v1739_v48  ;;  %v1752_v61 = vrot.slane %v1750_v57, 4  ;;  %v1758_v14 = vrot.slane %v1756_v6, 5  ;;  %v1764_v45 = vshll.u32 %v2666_v26, 16  ;;  %v2673_v48 = vld [vmem:[%s3282_s22 + $0x94] sm:$0xf] }
  0x7e   : > { %v1735_v23 = vsel %vm3321_vm4, %v1730_v11, %v1734_v50  ;;  %v1763_v18 = vrot.slane %v1761_v52, 4  ;;  %v1770_v27 = vshll.u32 %v2667_v0, 16  ;;  %v1774_v15 = vshrl.u32 %v2667_v0, 16  ;;  %v2674_v11 = vld [vmem:[%s3282_s22 + $0x98] sm:$0x1] }
  0x7f   : > { %v2695_v32 = vcombine.low %v1725_v12, %v1735_v23  ;;  %2995 = vmatmul.mubr.msk.bf16.gmra.mrb[8].mxu1 %vm631_vm1, %v2547_v35  ;;  %v1744_v39 = vrot.slane %v1743_v8, 4  ;;  %v1753_v5 = vor.u32 %v1752_v61, %v1748_v55  ;;  %v1766_v13 = vrot.slane %v1764_v45, 5  ;;  %v2675_v45 = vld [vmem:[%s3282_s22 + $0x9c] sm:$0xf] }
  0x80   : > { %2998 = vmatprep.mubr.msk.bf16.mxu1 %vm631_vm1, %v2548_v21  ;;  %v1772_v47 = vrot.slane %v1770_v27, 5  ;;  %v1776_v17 = vrot.slane %v1774_v15, 4  ;;  %v1780_v24 = vshll.u32 %v2668_v19, 16  ;;  %v2549_v22 = vcombine.low %v3414_v28, %v3420_v33  ;;  %v2676_v27 = vld [vmem:[%s3282_s22 + $0xa0] sm:$0xf] }
  0x81   : > { %3067 = vmatmul.mubr.msk.bf16.gmra.mrb[12].mxu0 %vm631_vm1, %v2695_v32  ;;  %v1749_v44 = vsel %vm3321_vm4, %v1744_v39, %v1748_v55  ;;  %v1754_v30 = vrot.slane %v1753_v5, 4  ;;  %v1767_v35 = vor.u32 %v1766_v13, %v1763_v18  ;;  %v1785_v46 = vshrl.u32 %v2669_v29, 16 }
  0x82   : > { %v1777_v38 = vor.u32 %v1776_v17, %v1772_v47  ;;  %v1782_v51 = vrot.slane %v1780_v24, 5  ;;  %v1788_v62 = vshll.u32 %v2669_v29, 16  ;;  %v1794_v3 = vshll.u32 %v2670_v41, 16 }
  0x83   : > { %v1759_v50 = vsel %vm3321_vm4, %v1754_v30, %v1758_v14  ;;  %v1768_v10 = vrot.slane %v1767_v35, 4  ;;  %v1787_v28 = vrot.slane %v1785_v46, 4  ;;  %v1798_v33 = vshrl.u32 %v2670_v41, 16  ;;  %v2678_v35 = vld [vmem:[%s3282_s22 + $0xa8] sm:$0xf] }
  0x84   : > { %v2696_v26 = vcombine.low %v1749_v44, %v1759_v50  ;;  %v1778_v42 = vrot.slane %v1777_v38, 4  ;;  %v1790_v1 = vrot.slane %v1788_v62, 5  ;;  %v1796_v40 = vrot.slane %v1794_v3, 5  ;;  %v2679_v50 = vld [vmem:[%s3282_s22 + $0xac] sm:$0xf] }
  0x85   : > { %v1773_v4 = vsel %vm3321_vm4, %v1768_v10, %v1772_v47  ;;  %v1800_v55 = vrot.slane %v1798_v33, 4  ;;  %v1804_v57 = vshll.u32 %v2671_v34, 16  ;;  %v2550_v6 = vcombine.low %v3431_v54, %v3440_v59  ;;  %v2677_v47 = vld [vmem:[%s3282_s22 + $0xa4] sm:$0x1] }
  0x86   : > { %3070 = vmatprep.mubr.msk.bf16.mxu0 %vm631_vm1, %v2696_v26  ;;  %v1783_v0 = vsel %vm3321_vm4, %v1778_v42, %v1782_v51  ;;  %v1791_v12 = vor.u32 %v1790_v1, %v1787_v28  ;;  %v1809_v21 = vshrl.u32 %v2672_v20, 16  ;;  %v1812_v52 = vshll.u32 %v2672_v20, 16 }
  0x87   : > { %v2697_v8 = vcombine.low %v1773_v4, %v1783_v0  ;;  %2999 = vmatmul.mubr.msk.bf16.gmra.mrb[12].mxu1 %vm631_vm1, %v2549_v22  ;;  %v1801_v61 = vor.u32 %v1800_v55, %v1796_v40  ;;  %v1806_v14 = vrot.slane %v1804_v57, 5  ;;  %v1818_v19 = vshll.u32 %v2673_v48, 16  ;;  %v2681_v0 = vld [vmem:[%s3282_s22 + $0xb4] sm:$0xf] }
  0x88   : > { %v1792_v23 = vrot.slane %v1791_v12, 4  ;;  %3002 = vmatprep.mubr.msk.bf16.mxu1 %vm631_vm1, %v2550_v6  ;;  %v1811_v54 = vrot.slane %v1809_v21, 4  ;;  %v1814_v59 = vrot.slane %v1812_v52, 5  ;;  %v1822_v18 = vshrl.u32 %v2673_v48, 16  ;;  %v2682_v21 = vld [vmem:[%s3282_s22 + $0xb8] sm:$0xf] }
  0x89   : > { %3071 = vmatmul.mubr.msk.bf16.gmra.mrb[16].mxu0 %vm631_vm1, %v2697_v8  ;;  %v1802_v15 = vrot.slane %v1801_v61, 4  ;;  %v1820_v29 = vrot.slane %v1818_v19, 5  ;;  %v1828_v32 = vshll.u32 %v2674_v11, 16  ;;  %v2551_v39 = vcombine.low %v3450_v16, %v3455_v25 }
  0x8a   : > { %v1797_v5 = vsel %vm3321_vm4, %v1792_v23, %v1796_v40  ;;  %v1815_v13 = vor.u32 %v1814_v59, %v1811_v54  ;;  %v1824_v41 = vrot.slane %v1822_v18, 4  ;;  %v1833_v17 = vshrl.u32 %v2675_v45, 16  ;;  %v2680_v40 = vld [vmem:[%s3282_s22 + $0xb0] sm:$0x1] }
  0x8b   : > { %v1807_v24 = vsel %vm3321_vm4, %v1802_v15, %v1806_v14  ;;  %v1830_v22 = vrot.slane %v1828_v32, 5  ;;  %v1836_v44 = vshll.u32 %v2675_v45, 16  ;;  %v1842_v30 = vshll.u32 %v2676_v27, 16 }
  0x8c   : > { %v2698_v46 = vcombine.low %v1797_v5, %v1807_v24  ;;  %v1816_v38 = vrot.slane %v1815_v13, 4  ;;  %v1825_v51 = vor.u32 %v1824_v41, %v1820_v29  ;;  %v1835_v16 = vrot.slane %v1833_v17, 4  ;;  %v2685_v24 = vld [vmem:[%s3282_s22 + $0xc4] sm:$0xf] }
  0x8d   : > { %v1838_v25 = vrot.slane %v1836_v44, 5  ;;  %v1844_v34 = vrot.slane %v1842_v30, 5  ;;  %v1846_v62 = vshrl.u32 %v2676_v27, 16  ;;  %v1852_v3 = vshll.u32 %v2677_v47, 16  ;;  %v2683_v27 = vld [vmem:[%s3282_s22 + $0xbc] sm:$0x1] }
  0x8e   : > { %3074 = vmatprep.mubr.msk.bf16.mxu0 %vm631_vm1, %v2698_v46  ;;  %v1821_v10 = vsel %vm3321_vm4, %v1816_v38, %v1820_v29  ;;  %v1826_v28 = vrot.slane %v1825_v51, 4  ;;  %v2552_v33 = vcombine.low %v3472_v53, %v3475_v60  ;;  %v1857_v20 = vshrl.u32 %v2678_v35, 16  ;;  %v2686_v51 = vld [vmem:[%s3282_s22 + $0xc8] sm:$0x1] }
  0x8f   : > { %3003 = vmatmul.mubr.msk.bf16.gmra.mrb[16].mxu1 %vm631_vm1, %v2551_v39  ;;  %v1839_v26 = vor.u32 %v1838_v25, %v1835_v16  ;;  %v1848_v42 = vrot.slane %v1846_v62, 4  ;;  %v1854_v1 = vrot.slane %v1852_v3, 5  ;;  %v1860_v48 = vshll.u32 %v2678_v35, 16 }
  0x90   : > { %v1831_v4 = vsel %vm3321_vm4, %v1826_v28, %v1830_v22  ;;  %3006 = vmatprep.mubr.msk.bf16.mxu1 %vm631_vm1, %v2552_v33  ;;  %v1859_v55 = vrot.slane %v1857_v20, 4  ;;  %v1866_v57 = vshll.u32 %v2679_v50, 16  ;;  %v1870_v6 = vshrl.u32 %v2679_v50, 16 }
  0x91   : > { %v2699_v12 = vcombine.low %v1821_v10, %v1831_v4  ;;  %v1840_v53 = vrot.slane %v1839_v26, 4  ;;  %v1849_v60 = vor.u32 %v1848_v42, %v1844_v34  ;;  %v1862_v11 = vrot.slane %v1860_v48, 5 }
  0x92   : > { %v1868_v52 = vrot.slane %v1866_v57, 5  ;;  %v1872_v8 = vrot.slane %v1870_v6, 4  ;;  %v1876_v61 = vshll.u32 %v2680_v40, 16  ;;  %v2553_v14 = vcombine.low %v3485_v9, %v3495_v37  ;;  %v2684_v37 = vld [vmem:[%s3282_s22 + $0xc0] sm:$0xf] }
  0x93   : > { %3075 = vmatmul.mubr.msk.bf16.gmra.mrb[20].mxu0 %vm631_vm1, %v2699_v12  ;;  %v1845_v19 = vsel %vm3321_vm4, %v1840_v53, %v1844_v34  ;;  %v1850_v45 = vrot.slane %v1849_v60, 4  ;;  %v1863_v23 = vor.u32 %v1862_v11, %v1859_v55  ;;  %v1881_v54 = vshrl.u32 %v2681_v0, 16 }
  0x94   : > { %v1873_v59 = vor.u32 %v1872_v8, %v1868_v52  ;;  %v1878_v18 = vrot.slane %v1876_v61, 5  ;;  %v1884_v15 = vshll.u32 %v2681_v0, 16  ;;  %v1890_v29 = vshll.u32 %v2682_v21, 16 }
  0x95   : > { %v1855_v32 = vsel %vm3321_vm4, %v1850_v45, %v1854_v1  ;;  %v1864_v39 = vrot.slane %v1863_v23, 4  ;;  %v1883_v5 = vrot.slane %v1881_v54, 4  ;;  %v1894_v9 = vshrl.u32 %v2682_v21, 16 }
  0x96   : > { %v2700_v13 = vcombine.low %v1845_v19, %v1855_v32  ;;  %v1874_v41 = vrot.slane %v1873_v59, 4  ;;  %v1886_v47 = vrot.slane %v1884_v15, 5  ;;  %v1892_v17 = vrot.slane %v1890_v29, 5 }
  0x97   : > { %v1869_v22 = vsel %vm3321_vm4, %v1864_v39, %v1868_v52  ;;  %3007 = vmatmul.mubr.msk.bf16.gmra.mrb[20].mxu1 %vm631_vm1, %v2553_v14  ;;  %v1896_v44 = vrot.slane %v1894_v9, 4  ;;  %v1900_v30 = vshll.u32 %v2683_v27, 16  ;;  %v2554_v35 = vcombine.low %v3506_v58, %v3513_v2 }
  0x98   : > { %3078 = vmatprep.mubr.msk.bf16.mxu0 %vm631_vm1, %v2700_v13  ;;  %v1879_v46 = vsel %vm3321_vm4, %v1874_v41, %v1878_v18  ;;  %v1887_v38 = vor.u32 %v1886_v47, %v1883_v5  ;;  %v1905_v16 = vshrl.u32 %v2684_v37, 16  ;;  %v1908_v25 = vshll.u32 %v2684_v37, 16 }
  0x99   : > { %v2701_v34 = vcombine.low %v1869_v22, %v1879_v46  ;;  %v1897_v62 = vor.u32 %v1896_v44, %v1892_v17  ;;  %v1902_v3 = vrot.slane %v1900_v30, 5  ;;  %3010 = vmatprep.mubr.msk.bf16.mxu1 %vm631_vm1, %v2554_v35  ;;  %v1914_v50 = vshll.u32 %v2685_v24, 16 }
  0x9a   : > { %v1888_v10 = vrot.slane %v1887_v38, 4  ;;  %v1907_v28 = vrot.slane %v1905_v16, 4  ;;  %v1910_v33 = vrot.slane %v1908_v25, 5  ;;  %v1918_v20 = vshrl.u32 %v2685_v24, 16 }
  0x9b   : > { %3079 = vmatmul.mubr.msk.bf16.gmra.mrb[24].mxu0 %vm631_vm1, %v2701_v34  ;;  %v1898_v58 = vrot.slane %v1897_v62, 4  ;;  %v1916_v2 = vrot.slane %v1914_v50, 5  ;;  %v1924_v26 = vshll.u32 %v2686_v51, 16  ;;  %v2555_v42 = vcombine.low %v3526_v31, %v3530_v43 }
  0x9c   : > { %v1893_v1 = vsel %vm3321_vm4, %v1888_v10, %v1892_v17  ;;  %v1911_v40 = vor.u32 %v1910_v33, %v1907_v28  ;;  %v1920_v48 = vrot.slane %v1918_v20, 4  ;;  %v2556_v4 = vcombine.low %v3551_v49, %v3556_v56 }
  0x9d   : > { %v1903_v55 = vsel %vm3321_vm4, %v1898_v58, %v1902_v3  ;;  %v1926_v12 = vrot.slane %v1924_v26, 5  ;;  %v2557_v53 = vcombine.low %v3575_v63, %v3580_v7 }
  0x9e   : > { %v2702_v57 = vcombine.low %v1893_v1, %v1903_v55  ;;  %v1912_v6 = vrot.slane %v1911_v40, 4  ;;  %v1921_v0 = vor.u32 %v1920_v48, %v1916_v2 }
  0x9f   : > { %3011 = vmatmul.mubr.msk.bf16.gmra.mrb[24].mxu1 %vm631_vm1, %v2555_v42 }
  0xa0   : > { %3082 = vmatprep.mubr.msk.bf16.mxu0 %vm631_vm1, %v2702_v57  ;;  %v1917_v31 = vsel %vm3321_vm4, %v1912_v6, %v1916_v2  ;;  %v1922_v43 = vrot.slane %v1921_v0, 4  ;;  %3014 = vmatprep.mubr.msk.bf16.mxu1 %vm631_vm1, %v2556_v4 }
  0xa2   : > { %v1927_v49 = vsel %vm3321_vm4, %v1922_v43, %v1926_v12 }
  0xa3   : > { %v2703_v56 = vcombine.low %v1917_v31, %v1927_v49 }
  0xa5   : > { %3083 = vmatmul.mubr.msk.bf16.gmra.mrb[28].mxu0 %vm631_vm1, %v2703_v56 }
  0xa7   : > { %3015 = vmatmul.mubr.msk.bf16.gmra.mrb[28].mxu1 %vm631_vm1, %v2557_v53 }
 0x135   : > { %v3056_v60 = vpop.f32.mrb[0].mxu0 }
 0x136   : > { %v2063_v11 = vpop.f32.mrb[1].mxu0 }
 0x137   : > { %v3057_v21 = vpop.f32.mrb[2].mxu0 }
 0x138   : > { %v2066_v52 = vpop.f32.mrb[3].mxu0 }
 0x142   : > { %v3060_v8 = vpop.f32.mrb[4].mxu0  ;;  %v2988_v61 = vpop.f32.mrb[0].mxu1 }
 0x143   : > { %v3086_v14 = vadd.f32 %v3056_v60, %v2988_v61  ;;  %v2079_v19 = vpop.f32.mrb[5].mxu0  ;;  %v1010_v45 = vpop.f32.mrb[1].mxu1 }
 0x144   : > { %v3087_v36 = vadd.f32 %v2063_v11, %v1010_v45  ;;  %v3061_v23 = vpop.f32.mrb[6].mxu0  ;;  %v2989_v54 = vpop.f32.mrb[2].mxu1 }
 0x145   : > { %v2224_v59 = vmul.f32 0.2, %v3086_v14  ;;  %v3088_v18 = vadd.f32 %v3057_v21, %v2989_v54  ;;  %v2082_v63 = vpop.f32.mrb[7].mxu0  ;;  %v1013_v7 = vpop.f32.mrb[3].mxu1 }
 0x146   : > { %v2222_v27 = vmul.f32 0.2, %v3087_v36  ;;  %v3089_v15 = vadd.f32 %v2066_v52, %v1013_v7 }
 0x147   : > { %v2225_v29 = vmul.f32 0.2, %v3088_v18  ;;  %v2256_v39 = vmax.f32 %v3086_v14, %v2224_v59 }
 0x148   : > { %v2223_v32 = vmul.f32 0.2, %v3089_v15  ;;  %v2254_v9 = vmax.f32 %v3087_v36, %v2222_v27 }
 0x149   : > { %v2257_v5 = vmax.f32 %v3088_v18, %v2225_v29 }
 0x14a   : > { %v2255_v37 = vmax.f32 %v3089_v15, %v2223_v32  ;;  %v3064_v13 = vpop.f32.mrb[8].mxu0  ;;  %v2992_v41 = vpop.f32.mrb[4].mxu1 }
 0x14b   : > { %v2795_v47 = vpack.c.bf16 %v2257_v5, %v2256_v39  ;;  %v3090_v17 = vadd.f32 %v3060_v8, %v2992_v41  ;;  %v2095_v24 = vpop.f32.mrb[9].mxu0  ;;  %v1026_v22 = vpop.f32.mrb[5].mxu1 }
 0x14c   : > { %v2790_v44 = vpack.c.bf16 %v2255_v37, %v2254_v9  ;;  %v3091_v30 = vadd.f32 %v2079_v19, %v1026_v22  ;;  %v3065_v35 = vpop.f32.mrb[10].mxu0  ;;  %v2993_v46 = vpop.f32.mrb[6].mxu1 }
 0x14d   : > { %2867 = vst [vmem:[%s3769_s26 + $0x8] sm:$0xff] %v2795_v47   ;;  %v2228_v38 = vmul.f32 0.2, %v3090_v17  ;;  %v3092_v51 = vadd.f32 %v3061_v23, %v2993_v46  ;;  %v2098_v16 = vpop.f32.mrb[11].mxu0  ;;  %v1029_v25 = vpop.f32.mrb[7].mxu1 }
 0x14e   : > { %2791 = vst [vmem:[%s3769_s26] sm:$0xff] %v2790_v44   ;;  %v2226_v34 = vmul.f32 0.2, %v3091_v30  ;;  %v3093_v62 = vadd.f32 %v2082_v63, %v1029_v25 }
 0x14f   : > { %v2229_v3 = vmul.f32 0.2, %v3092_v51  ;;  %v2260_v10 = vmax.f32 %v3090_v17, %v2228_v38 }
 0x150   : > { %v2227_v50 = vmul.f32 0.2, %v3093_v62  ;;  %v2258_v33 = vmax.f32 %v3091_v30, %v2226_v34 }
 0x151   : > { %v2261_v28 = vmax.f32 %v3092_v51, %v2229_v3 }
 0x152   : > { %v2259_v20 = vmax.f32 %v3093_v62, %v2227_v50  ;;  %v2996_v58 = vpop.f32.mrb[8].mxu1 }
 0x153   : > { %v2805_v2 = vpack.c.bf16 %v2261_v28, %v2260_v10  ;;  %v3094_v26 = vadd.f32 %v3064_v13, %v2996_v58  ;;  %v1042_v42 = vpop.f32.mrb[9].mxu1 }
 0x154   : > { %v2800_v1 = vpack.c.bf16 %v2259_v20, %v2258_v33  ;;  %v3068_v40 = vpop.f32.mrb[12].mxu0  ;;  %v3095_v48 = vadd.f32 %v2095_v24, %v1042_v42  ;;  %v2997_v4 = vpop.f32.mrb[10].mxu1 }
 0x155   : > { %2869 = vst [vmem:[%s3769_s26 + $0x18] sm:$0xff] %v2805_v2   ;;  %v2232_v55 = vmul.f32 0.2, %v3094_v26  ;;  %v2111_v57 = vpop.f32.mrb[13].mxu0  ;;  %v3096_v6 = vadd.f32 %v3065_v35, %v2997_v4  ;;  %v1045_v0 = vpop.f32.mrb[11].mxu1 }
 0x156   : > { %2868 = vst [vmem:[%s3769_s26 + $0x10] sm:$0xff] %v2800_v1   ;;  %v2230_v12 = vmul.f32 0.2, %v3095_v48  ;;  %v3069_v31 = vpop.f32.mrb[14].mxu0  ;;  %v3097_v43 = vadd.f32 %v2098_v16, %v1045_v0 }
 0x157   : > { %v2233_v49 = vmul.f32 0.2, %v3096_v6  ;;  %v2114_v56 = vpop.f32.mrb[15].mxu0  ;;  %v2264_v60 = vmax.f32 %v3094_v26, %v2232_v55 }
 0x158   : > { %v2231_v53 = vmul.f32 0.2, %v3097_v43  ;;  %v2262_v21 = vmax.f32 %v3095_v48, %v2230_v12 }
 0x159   : > { %v2265_v11 = vmax.f32 %v3096_v6, %v2233_v49 }
 0x15a   : > { %v2263_v52 = vmax.f32 %v3097_v43, %v2231_v53  ;;  %v3000_v8 = vpop.f32.mrb[12].mxu1 }
 0x15b   : > { %v2815_v61 = vpack.c.bf16 %v2265_v11, %v2264_v60  ;;  %v3098_v14 = vadd.f32 %v3068_v40, %v3000_v8  ;;  %v1058_v19 = vpop.f32.mrb[13].mxu1 }
 0x15c   : > { %v2810_v45 = vpack.c.bf16 %v2263_v52, %v2262_v21  ;;  %v3072_v36 = vpop.f32.mrb[16].mxu0  ;;  %v3099_v23 = vadd.f32 %v2111_v57, %v1058_v19  ;;  %v3001_v54 = vpop.f32.mrb[14].mxu1 }
 0x15d   : > { %2871 = vst [vmem:[%s3769_s26 + $0x28] sm:$0xff] %v2815_v61   ;;  %v2236_v59 = vmul.f32 0.2, %v3098_v14  ;;  %v2127_v18 = vpop.f32.mrb[17].mxu0  ;;  %v3100_v63 = vadd.f32 %v3069_v31, %v3001_v54  ;;  %v1061_v7 = vpop.f32.mrb[15].mxu1 }
 0x15e   : > { %2870 = vst [vmem:[%s3769_s26 + $0x20] sm:$0xff] %v2810_v45   ;;  %v2234_v27 = vmul.f32 0.2, %v3099_v23  ;;  %v3073_v15 = vpop.f32.mrb[18].mxu0  ;;  %v3101_v29 = vadd.f32 %v2114_v56, %v1061_v7 }
 0x15f   : > { %v2237_v32 = vmul.f32 0.2, %v3100_v63  ;;  %v2130_v39 = vpop.f32.mrb[19].mxu0  ;;  %v2268_v9 = vmax.f32 %v3098_v14, %v2236_v59 }
 0x160   : > { %v2235_v5 = vmul.f32 0.2, %v3101_v29  ;;  %v2266_v13 = vmax.f32 %v3099_v23, %v2234_v27 }
 0x161   : > { %v2269_v37 = vmax.f32 %v3100_v63, %v2237_v32 }
 0x162   : > { %v2267_v41 = vmax.f32 %v3101_v29, %v2235_v5  ;;  %v3004_v47 = vpop.f32.mrb[16].mxu1 }
 0x163   : > { %v2825_v17 = vpack.c.bf16 %v2269_v37, %v2268_v9  ;;  %v3102_v24 = vadd.f32 %v3072_v36, %v3004_v47  ;;  %v1074_v22 = vpop.f32.mrb[17].mxu1 }
 0x164   : > { %v2820_v44 = vpack.c.bf16 %v2267_v41, %v2266_v13  ;;  %v3103_v30 = vadd.f32 %v2127_v18, %v1074_v22  ;;  %v3005_v35 = vpop.f32.mrb[18].mxu1 }
 0x165   : > { %2873 = vst [vmem:[%s3769_s26 + $0x38] sm:$0xff] %v2825_v17   ;;  %v2240_v46 = vmul.f32 0.2, %v3102_v24  ;;  %v3104_v38 = vadd.f32 %v3073_v15, %v3005_v35  ;;  %v1077_v51 = vpop.f32.mrb[19].mxu1 }
 0x166   : > { %2872 = vst [vmem:[%s3769_s26 + $0x30] sm:$0xff] %v2820_v44   ;;  %v3076_v16 = vpop.f32.mrb[20].mxu0  ;;  %v2238_v25 = vmul.f32 0.2, %v3103_v30  ;;  %v3105_v34 = vadd.f32 %v2130_v39, %v1077_v51 }
 0x167   : > { %v2143_v62 = vpop.f32.mrb[21].mxu0  ;;  %v2241_v3 = vmul.f32 0.2, %v3104_v38  ;;  %v2272_v28 = vmax.f32 %v3102_v24, %v2240_v46 }
 0x168   : > { %v3077_v50 = vpop.f32.mrb[22].mxu0  ;;  %v2239_v10 = vmul.f32 0.2, %v3105_v34  ;;  %v2270_v58 = vmax.f32 %v3103_v30, %v2238_v25 }
 0x169   : > { %v2273_v33 = vmax.f32 %v3104_v38, %v2241_v3  ;;  %v2146_v20 = vpop.f32.mrb[23].mxu0 }
 0x16a   : > { %v2271_v2 = vmax.f32 %v3105_v34, %v2239_v10  ;;  %v3008_v26 = vpop.f32.mrb[20].mxu1 }
 0x16b   : > { %v2835_v42 = vpack.c.bf16 %v2273_v33, %v2272_v28  ;;  %v3106_v1 = vadd.f32 %v3076_v16, %v3008_v26  ;;  %v1090_v40 = vpop.f32.mrb[21].mxu1 }
 0x16c   : > { %v2830_v48 = vpack.c.bf16 %v2271_v2, %v2270_v58  ;;  %v3107_v4 = vadd.f32 %v2143_v62, %v1090_v40  ;;  %v3009_v55 = vpop.f32.mrb[22].mxu1 }
 0x16d   : > { %2875 = vst [vmem:[%s3769_s26 + $0x48] sm:$0xff] %v2835_v42   ;;  %v2244_v57 = vmul.f32 0.2, %v3106_v1  ;;  %v3108_v6 = vadd.f32 %v3077_v50, %v3009_v55  ;;  %v1093_v0 = vpop.f32.mrb[23].mxu1 }
 0x16e   : > { %2874 = vst [vmem:[%s3769_s26 + $0x40] sm:$0xff] %v2830_v48   ;;  %v3080_v12 = vpop.f32.mrb[24].mxu0  ;;  %v2242_v31 = vmul.f32 0.2, %v3107_v4  ;;  %v3109_v43 = vadd.f32 %v2146_v20, %v1093_v0 }
 0x16f   : > { %v2159_v49 = vpop.f32.mrb[25].mxu0  ;;  %v2245_v56 = vmul.f32 0.2, %v3108_v6  ;;  %v2276_v11 = vmax.f32 %v3106_v1, %v2244_v57 }
 0x170   : > { %v3081_v53 = vpop.f32.mrb[26].mxu0  ;;  %v2243_v60 = vmul.f32 0.2, %v3109_v43  ;;  %v2274_v8 = vmax.f32 %v3107_v4, %v2242_v31 }
 0x171   : > { %v2277_v21 = vmax.f32 %v3108_v6, %v2245_v56  ;;  %v2162_v52 = vpop.f32.mrb[27].mxu0 }
 0x172   : > { %v2275_v61 = vmax.f32 %v3109_v43, %v2243_v60  ;;  %v3012_v14 = vpop.f32.mrb[24].mxu1 }
 0x173   : > { %v2845_v19 = vpack.c.bf16 %v2277_v21, %v2276_v11  ;;  %v3110_v45 = vadd.f32 %v3080_v12, %v3012_v14  ;;  %v1106_v36 = vpop.f32.mrb[25].mxu1 }
 0x174   : > { %v2840_v23 = vpack.c.bf16 %v2275_v61, %v2274_v8  ;;  %v3111_v54 = vadd.f32 %v2159_v49, %v1106_v36  ;;  %v3013_v59 = vpop.f32.mrb[26].mxu1 }
 0x175   : > { %2877 = vst [vmem:[%s3769_s26 + $0x58] sm:$0xff] %v2845_v19   ;;  %v2248_v18 = vmul.f32 0.2, %v3110_v45  ;;  %v3112_v63 = vadd.f32 %v3081_v53, %v3013_v59  ;;  %v1109_v7 = vpop.f32.mrb[27].mxu1 }
 0x176   : > { %2876 = vst [vmem:[%s3769_s26 + $0x50] sm:$0xff] %v2840_v23   ;;  %v2246_v27 = vmul.f32 0.2, %v3111_v54  ;;  %v3113_v15 = vadd.f32 %v2162_v52, %v1109_v7 }
 0x177   : > { %v2249_v29 = vmul.f32 0.2, %v3112_v63  ;;  %v2280_v5 = vmax.f32 %v3110_v45, %v2248_v18 }
 0x178   : > { %v3084_v32 = vpop.f32.mrb[28].mxu0  ;;  %v2247_v39 = vmul.f32 0.2, %v3113_v15  ;;  %v2278_v13 = vmax.f32 %v3111_v54, %v2246_v27 }
 0x179   : > { %v2175_v9 = vpop.f32.mrb[29].mxu0  ;;  %v2281_v37 = vmax.f32 %v3112_v63, %v2249_v29 }
 0x17a   : > { %v3085_v41 = vpop.f32.mrb[30].mxu0  ;;  %v2279_v47 = vmax.f32 %v3113_v15, %v2247_v39  ;;  %v3016_v17 = vpop.f32.mrb[28].mxu1 }
 0x17b   : > { %v2855_v24 = vpack.c.bf16 %v2281_v37, %v2280_v5  ;;  %v2178_v22 = vpop.f32.mrb[31].mxu0  ;;  %v3114_v44 = vadd.f32 %v3084_v32, %v3016_v17  ;;  %v1122_v30 = vpop.f32.mrb[29].mxu1 }
 0x17c   : > { %v2850_v35 = vpack.c.bf16 %v2279_v47, %v2278_v13  ;;  %v3115_v46 = vadd.f32 %v2175_v9, %v1122_v30  ;;  %v3017_v38 = vpop.f32.mrb[30].mxu1 }
 0x17d   : > { %2879 = vst [vmem:[%s3769_s26 + $0x68] sm:$0xff] %v2855_v24   ;;  %v2252_v51 = vmul.f32 0.2, %v3114_v44  ;;  %v3116_v16 = vadd.f32 %v3085_v41, %v3017_v38  ;;  %v1125_v25 = vpop.f32.mrb[31].mxu1 }
 0x17e   : > { %2878 = vst [vmem:[%s3769_s26 + $0x60] sm:$0xff] %v2850_v35   ;;  %v2250_v34 = vmul.f32 0.2, %v3115_v46  ;;  %v3117_v62 = vadd.f32 %v2178_v22, %v1125_v25 }
 0x17f   : > { %v2253_v3 = vmul.f32 0.2, %v3116_v16  ;;  %v2284_v10 = vmax.f32 %v3114_v44, %v2252_v51 }
 0x180   : > { %v2251_v50 = vmul.f32 0.2, %v3117_v62  ;;  %v2282_v33 = vmax.f32 %v3115_v46, %v2250_v34 }
 0x181   : > { %v2285_v28 = vmax.f32 %v3116_v16, %v2253_v3 }
 0x182   : > { %v2283_v20 = vmax.f32 %v3117_v62, %v2251_v50 }
 0x183   : > { %v2865_v58 = vpack.c.bf16 %v2285_v28, %v2284_v10 }
 0x184   : > { %v2860_v2 = vpack.c.bf16 %v2283_v20, %v2282_v33 }
 0x185   : > { %2881 = vst [vmem:[%s3769_s26 + $0x78] sm:$0xff] %v2865_v58  }
 0x186   : > { %2880 = vst [vmem:[%s3769_s26 + $0x70] sm:$0xff] %v2860_v2  }
 0x187 PF: > { %s12_s9 = sadd.s32 1, %s3233_s9  }
 0x188   : > { %p9_p4 = scmp.ge.s32.totalorder %s12_s9, 4  }
 0x18a   :  { %11 = sbr.rel (!%p9_p4) target bundleno = 1 (0x1), region = 62 }

// kernel: regularised_encoder_forward.6
= control target key start
LH: loop header
LB: loop body
LE: loop exit
PB: predicated region body
PF: predicated region fallthrough
CT: control target
= control target key end

     0   :  { %s3601_s9 = smov 0   ;;  %s4354_s0 = inlined_call_operand.vmem [shape: bf16[2,9,9,512], index: 0, kind: input, shape index: {}]   ;;  %s4355_s1 = inlined_call_operand.vmem [shape: bf16[2,2,512,128], index: 1, kind: input, shape index: {}]   ;;  %s4356_s2 = inlined_call_operand.vmem [shape: bf16[2,64,128], index: 2, kind: output, shape index: {}]  }
   0x1 LB: > { %s2639_s10 = sadd.s32 4294967295, %s3584_s9   ;;  %p2643_p0 = scmp.ge.s32.totalorder %s3584_s9, 1  ;;  %s3584_s9 = sphi %s3601_s9, %s12_s9  }
   0x2   : > { %p112_p1 = scmp.lt.s32.totalorder %s3584_s9, 3 }
   0x4   : > { %p113_p2 = pnand %p2643_p0, %p112_p1 }
   0x5   : > { %v3450_v0 = vld [vmem:[%s4355_s1 + $0x140] sm:$0xff] (!%p113_p2)   ;;  %v3454_v4 = vld [vmem:[%s4355_s1 + $0x148] sm:$0xff] (!%p113_p2)   ;;  %v3458_v8 = vld [vmem:[%s4355_s1 + $0x150] sm:$0xff] (!%p113_p2)   ;;  %p134_p3 = scmp.lt.s32.totalorder (!%p113_p2), %s2639_s10, 1  ;;  %vm241_vm0 = vsmask.f32 (!%p113_p2), 3328 }
   0x6   : > { %116 = sbr.rel (%p113_p2) target bundleno = 394 (0x18a), region = 28  ;;  %v3451_v1 = vld [vmem:[%s4355_s1 + $0x1c0] sm:$0xff] (!%p113_p2)   ;;  %3121 = vmatprep.subr.bf16.mxu0 (!%p113_p2), %v3450_v0  ;;  %v3455_v5 = vld [vmem:[%s4355_s1 + $0x1c8] sm:$0xff] (!%p113_p2)   ;;  %v3459_v9 = vld [vmem:[%s4355_s1 + $0x1d0] sm:$0xff] (!%p113_p2)   ;;  %vm242_vm1 = vsmask.f32 (!%p113_p2), 7440 }
   0x7   : > { %v3452_v2 = vld [vmem:[%s4355_s1 + $0x100] sm:$0xff] (!%p113_p2)   ;;  %3161 = vmatprep.subr.bf16.mxu1 (!%p113_p2), %v3451_v1  ;;  %v3456_v6 = vld [vmem:[%s4355_s1 + $0x108] sm:$0xff] (!%p113_p2)   ;;  %v3460_v10 = vld [vmem:[%s4355_s1 + $0x110] sm:$0xff] (!%p113_p2)  }
   0x8   : > { %v3453_v3 = vld [vmem:[%s4355_s1 + $0x180] sm:$0xff] (!%p113_p2)   ;;  %3122 = vmatpush3.bf16.msra.mxu0 (!%p113_p2), %v3452_v2  ;;  %v3457_v7 = vld [vmem:[%s4355_s1 + $0x188] sm:$0xff] (!%p113_p2)   ;;  %v3461_v11 = vld [vmem:[%s4355_s1 + $0x190] sm:$0xff] (!%p113_p2)  }
   0x9   : > { %3162 = vmatpush3.bf16.msra.mxu1 (!%p113_p2), %v3453_v3  ;;  %3123 = vmatprep.subr.bf16.mxu0 (!%p113_p2), %v3454_v4  ;;  %v3462_v12 = vld [vmem:[%s4355_s1 + $0x158] sm:$0xff] (!%p113_p2)   ;;  %v3466_v16 = vld [vmem:[%s4355_s1 + $0x160] sm:$0xff] (!%p113_p2)   ;;  %v3470_v20 = vld [vmem:[%s4355_s1 + $0x168] sm:$0xff] (!%p113_p2)  }
   0xa   : > { %3163 = vmatprep.subr.bf16.mxu1 (!%p113_p2), %v3455_v5  ;;  %v3463_v13 = vld [vmem:[%s4355_s1 + $0x1d8] sm:$0xff] (!%p113_p2)   ;;  %v3467_v17 = vld [vmem:[%s4355_s1 + $0x1e0] sm:$0xff] (!%p113_p2)   ;;  %v3471_v21 = vld [vmem:[%s4355_s1 + $0x1e8] sm:$0xff] (!%p113_p2)  }
   0xb   : > { %v3464_v14 = vld [vmem:[%s4355_s1 + $0x118] sm:$0xff] (!%p113_p2)   ;;  %v3468_v18 = vld [vmem:[%s4355_s1 + $0x120] sm:$0xff] (!%p113_p2)   ;;  %v3472_v22 = vld [vmem:[%s4355_s1 + $0x128] sm:$0xff] (!%p113_p2)  }
   0xc   : > { %3124 = vmatpush3.bf16.msra.mxu0 (!%p113_p2), %v3456_v6  ;;  %v3465_v15 = vld [vmem:[%s4355_s1 + $0x198] sm:$0xff] (!%p113_p2)   ;;  %v3469_v19 = vld [vmem:[%s4355_s1 + $0x1a0] sm:$0xff] (!%p113_p2)   ;;  %v3473_v23 = vld [vmem:[%s4355_s1 + $0x1a8] sm:$0xff] (!%p113_p2)  }
   0xd   : > { %3164 = vmatpush3.bf16.msra.mxu1 %v3457_v7  ;;  %3125 = vmatprep.subr.bf16.mxu0 %v3458_v8  ;;  %s4360_s10 = smov (!%p134_p3, %s2639_s10), 1  ;;  %v3474_v24 = vld [vmem:[%s4355_s1 + $0x170] sm:$0xff]   ;;  %v3478_v28 = vld [vmem:[%s4355_s1 + $0x178] sm:$0xff]   ;;  %v3482_v56 = vld [vmem:[%s4355_s1 + $0x40] sm:$0xff]  }
   0xe   : > { %3165 = vmatprep.subr.bf16.mxu1 %v3459_v9  ;;  %v3475_v25 = vld [vmem:[%s4355_s1 + $0x1f0] sm:$0xff]   ;;  %s3441_s11 = smul.u32 288, %s4360_s10  ;;  %v3479_v29 = vld [vmem:[%s4355_s1 + $0x1f8] sm:$0xff]   ;;  %vm3744_vm2 = vmor %vm241_vm0, %vm242_vm1 }
   0xf   : > { %v3476_v26 = vld [vmem:[%s4355_s1 + $0x130] sm:$0xff]   ;;  %v3480_v30 = vld [vmem:[%s4355_s1 + $0x138] sm:$0xff]   ;;  %v3483_v62 = vld [vmem:[%s4355_s1 + $0xc0] sm:$0xff]  }
  0x10   : > { %3126 = vmatpush3.bf16.msra.mxu0 %v3460_v10  ;;  %v3477_v27 = vld [vmem:[%s4355_s1 + $0x1b0] sm:$0xff]   ;;  %s3709_s22 = scalar_lea.vmem %s4354_s0, %s3441_s11  ;;  %v3481_v31 = vld [vmem:[%s4355_s1 + $0x1b8] sm:$0xff]  }
  0x11   : > { %3166 = vmatpush3.bf16.msra.mxu1 %v3461_v11  ;;  %3127 = vmatprep.subr.bf16.mxu0 %v3462_v12  ;;  %v3718_v32 = vld [vmem:[%s3709_s22] sm:$0xff]  ;;  %v225_v34 = vld [vmem:[%s3709_s22 + $0x10] sm:$0x11]  ;;  %v3730_v42 = vld [vmem:[%s3709_s22 + $0x8] sm:$0xff] }
  0x12   : > { %3167 = vmatprep.subr.bf16.mxu1 %v3463_v13  ;;  %v3721_v33 = vld [vmem:[%s3709_s22 + $0x20] sm:$0xff]  ;;  %v227_v35 = vld [vmem:[%s3709_s22 + $0x30] sm:$0x11]  ;;  %v245_v36 = vshrl.u32 %v3718_v32, 16  ;;  %v248_v37 = vshll.u32 %v3718_v32, 16  ;;  %v254_v38 = vshll.u32 %v225_v34, 16 }
  0x13   : > { %v273_v39 = vshrl.u32 %v3721_v33, 16  ;;  %v276_v40 = vshll.u32 %v3721_v33, 16  ;;  %v282_v41 = vshll.u32 %v227_v35, 16  ;;  %v3733_v43 = vld [vmem:[%s3709_s22 + $0x28] sm:$0xff]  ;;  %v226_v46 = vld [vmem:[%s3709_s22 + $0x18] sm:$0x11] }
  0x14   : > { %3128 = vmatpush3.bf16.msra.mxu0 %v3464_v14  ;;  %v247_v44 = vrot.slane %v245_v36, 4  ;;  %v250_v45 = vrot.slane %v248_v37, 5  ;;  %v228_v47 = vld [vmem:[%s3709_s22 + $0x38] sm:$0x11]  ;;  %v256_v48 = vrot.slane %v254_v38, 5  ;;  %v259_v53 = vshrl.u32 %v3730_v42, 16 }
  0x15   : > { %3168 = vmatpush3.bf16.msra.mxu1 %v3465_v15  ;;  %3129 = vmatprep.subr.bf16.mxu0 %v3466_v16  ;;  %v275_v49 = vrot.slane %v273_v39, 4  ;;  %v278_v50 = vrot.slane %v276_v40, 5  ;;  %v284_v51 = vrot.slane %v282_v41, 5  ;;  %v262_v54 = vshll.u32 %v3730_v42, 16  ;;  %v3484_v14 = vld [vmem:[%s4355_s1] sm:$0xff]   ;;  %v3486_v16 = vld [vmem:[%s4355_s1 + $0x48] sm:$0xff]  }
  0x16   : > { %3169 = vmatprep.subr.bf16.mxu1 %v3467_v17  ;;  %v251_v52 = vor.u32 %v250_v45, %v247_v44  ;;  %v268_v55 = vshll.u32 %v226_v46, 16  ;;  %v287_v59 = vshrl.u32 %v3733_v43, 16  ;;  %v290_v60 = vshll.u32 %v3733_v43, 16  ;;  %v3791_v36 = vld [vmem:[%s3709_s22 + $0x48] sm:$0xff]  ;;  %v230_v41 = vld [vmem:[%s3709_s22 + $0x58] sm:$0x11] }
  0x17   : > { %v279_v58 = vor.u32 %v278_v50, %v275_v49  ;;  %v296_v61 = vshll.u32 %v228_v47, 16  ;;  %v261_v0 = vrot.slane %v259_v53, 4  ;;  %v264_v1 = vrot.slane %v262_v54, 5  ;;  %v3794_v37 = vld [vmem:[%s3709_s22 + $0x68] sm:$0xff]  ;;  %v232_v44 = vld [vmem:[%s3709_s22 + $0x78] sm:$0x11] }
  0x18   : > { %3130 = vmatpush3.bf16.msra.mxu0 %v3468_v18  ;;  %v252_v63 = vrot.slane %v251_v52, 4  ;;  %v289_v3 = vrot.slane %v287_v59, 4  ;;  %v292_v4 = vrot.slane %v290_v60, 5  ;;  %v270_v7 = vrot.slane %v268_v55, 5  ;;  %v3485_v18 = vld [vmem:[%s4355_s1 + $0x80] sm:$0xff]   ;;  %v3489_v38 = vld [vmem:[%s4355_s1 + $0x88] sm:$0xff]  }
  0x19   : > { %3170 = vmatpush3.bf16.msra.mxu1 %v3469_v19  ;;  %3131 = vmatprep.subr.bf16.mxu0 %v3470_v20  ;;  %v280_v2 = vrot.slane %v279_v58, 4  ;;  %v265_v6 = vor.u32 %v264_v1, %v261_v0  ;;  %v298_v10 = vrot.slane %v296_v61, 5  ;;  %v3487_v20 = vld [vmem:[%s4355_s1 + $0xc8] sm:$0xff]   ;;  %v315_v50 = vshrl.u32 %v3791_v36, 16  ;;  %v3490_v58 = vld [vmem:[%s4355_s1 + $0x50] sm:$0xff]  }
  0x1a   : > { %3171 = vmatprep.subr.bf16.mxu1 %v3471_v21  ;;  %v257_v5 = vsel %vm3744_vm2, %v252_v63, %v256_v48  ;;  %v293_v9 = vor.u32 %v292_v4, %v289_v3  ;;  %v3488_v21 = vld [vmem:[%s4355_s1 + $0x8] sm:$0xff]   ;;  %v324_v52 = vshll.u32 %v230_v41, 16  ;;  %v343_v55 = vshrl.u32 %v3794_v37, 16  ;;  %v3491_v59 = vld [vmem:[%s4355_s1 + $0xd0] sm:$0xff]  }
  0x1b   : > { %v285_v8 = vsel %vm3744_vm2, %v280_v2, %v284_v51  ;;  %v266_v13 = vrot.slane %v265_v6, 4  ;;  %v318_v51 = vshll.u32 %v3791_v36, 16  ;;  %v317_v60 = vrot.slane %v315_v50, 4  ;;  %v3492_v6 = vld [vmem:[%s4355_s1 + $0x10] sm:$0xff]   ;;  %v236_v50 = vld [vmem:[%s3709_s22 + $0xb8] sm:$0x11] }
  0x1c   : > { %3132 = vmatpush3.bf16.msra.mxu0 %v3472_v22  ;;  %v2711_v11 = vcombine.low %v257_v5, %v285_v8  ;;  %v2712_v12 = vcombine.high %v257_v5, %v285_v8  ;;  %v294_v15 = vrot.slane %v293_v9, 4  ;;  %v3777_v22 = vld [vmem:[%s3709_s22 + $0x40] sm:$0xff]  ;;  %v352_v63 = vshll.u32 %v232_v44, 16 }
  0x1d   : > { %3172 = vmatpush3.bf16.msra.mxu1 %v3473_v23  ;;  %3133 = vmatprep.subr.bf16.mxu0 %v3474_v24  ;;  %v271_v17 = vsel %vm3744_vm2, %v266_v13, %v270_v7  ;;  %v320_v61 = vrot.slane %v318_v51, 5  ;;  %v345_v2 = vrot.slane %v343_v55, 4 }
  0x1e   : > { %3173 = vmatprep.subr.bf16.mxu1 %v3475_v25  ;;  %821 = vmatprep.mubr.bf16.mxu0 %v2712_v12  ;;  %v299_v19 = vsel %vm3744_vm2, %v294_v15, %v298_v10  ;;  %v3780_v25 = vld [vmem:[%s3709_s22 + $0x60] sm:$0xff]  ;;  %v354_v5 = vrot.slane %v352_v63, 5  ;;  %v3493_v10 = vld [vmem:[%s4355_s1 + $0x90] sm:$0xff]   ;;  %v3494_v15 = vld [vmem:[%s4355_s1 + $0x58] sm:$0xff]  }
  0x1f   : > { %v2713_v23 = vcombine.low %v271_v17, %v299_v19  ;;  %v2714_v24 = vcombine.high %v271_v17, %v299_v19  ;;  %v329_v34 = vshrl.u32 %v3780_v25, 16  ;;  %v332_v35 = vshll.u32 %v3780_v25, 16 }
  0x20   : > { %3134 = vmatpush3.bf16.msra.mxu0 %v3476_v26  ;;  %v229_v26 = vld [vmem:[%s3709_s22 + $0x50] sm:$0x11]  ;;  %v321_v4 = vor.u32 %v320_v61, %v317_v60  ;;  %v2890_v19 = vcombine.high %v3733_v43, %v3791_v36 }
  0x21   : > { %3174 = vmatpush3.bf16.msra.mxu1 %v3477_v27  ;;  %3135 = vmatprep.subr.bf16.mxu0 %v3478_v28  ;;  %v231_v27 = vld [vmem:[%s3709_s22 + $0x70] sm:$0x11]  ;;  %v301_v28 = vshrl.u32 %v3777_v22, 16  ;;  %v331_v47 = vrot.slane %v329_v34, 4  ;;  %v334_v48 = vrot.slane %v332_v35, 5 }
  0x22   : > { %3175 = vmatprep.subr.bf16.mxu1 %v3479_v29  ;;  %v2887_v29 = vcombine.low %v3721_v33, %v3777_v22  ;;  %886 = vmatprep.mubr.bf16.mxu1 %v2714_v24  ;;  %v338_v40 = vshll.u32 %v231_v27, 16  ;;  %v322_v13 = vrot.slane %v321_v4, 4  ;;  %v3497_v24 = vld [vmem:[%s4355_s1 + $0x98] sm:$0xff]   ;;  %v235_v34 = vld [vmem:[%s3709_s22 + $0xb0] sm:$0x11] }
  0x23   : > { %v303_v39 = vrot.slane %v301_v28, 4  ;;  %v335_v54 = vor.u32 %v334_v48, %v331_v47  ;;  %v394_v48 = vshll.u32 %v235_v34, 16  ;;  %v3503_v34 = vld [vmem:[%s4355_s1 + $0xe8] sm:$0xff]  }
  0x24   : > { %3136 = vmatpush3.bf16.msra.mxu0 %v3480_v30  ;;  %v304_v30 = vshll.u32 %v3777_v22, 16  ;;  %v340_v49 = vrot.slane %v338_v40, 5 }
  0x25   : > { %3176 = vmatpush3.bf16.msra.mxu1 %v3481_v31  ;;  %3201 = vmatprep.subr.bf16.mxu0 %v3482_v56  ;;  %v310_v31 = vshll.u32 %v229_v26, 16  ;;  %v346_v56 = vshll.u32 %v3794_v37, 16  ;;  %v336_v1 = vrot.slane %v335_v54, 4  ;;  %v3844_v26 = vld [vmem:[%s3709_s22 + $0x80] sm:$0xff]  ;;  %v396_v55 = vrot.slane %v394_v48, 5 }
  0x26   : > { %3241 = vmatprep.subr.bf16.mxu1 %v3483_v62  ;;  %v306_v45 = vrot.slane %v304_v30, 5  ;;  %v326_v62 = vrot.slane %v324_v52, 5  ;;  %v3847_v30 = vld [vmem:[%s3709_s22 + $0xa0] sm:$0xff]  ;;  %v357_v35 = vshrl.u32 %v3844_v26, 16 }
  0x27   : > { %822 = vmatmul.mubr.bf16.vlgmr.msra.gmra.mrb[0].mxu0 %v2711_v11  ;;  %v312_v46 = vrot.slane %v310_v31, 5  ;;  %v348_v3 = vrot.slane %v346_v56, 5  ;;  %v341_v8 = vsel %vm3744_vm2, %v336_v1, %v340_v49  ;;  %v2888_v11 = vcombine.high %v3721_v33, %v3777_v22  ;;  %v233_v31 = vld [vmem:[%s3709_s22 + $0x90] sm:$0x11]  ;;  %v234_v49 = vld [vmem:[%s3709_s22 + $0x98] sm:$0x11] }
  0x28   : > { %3202 = vmatpush3.bf16.msra.mxu0 %v3484_v14  ;;  %887 = vmatmul.mubr.bf16.vlgmr.msra.gmra.mrb[0].mxu1 %v2713_v23  ;;  %v307_v53 = vor.u32 %v306_v45, %v303_v39  ;;  %v360_v39 = vshll.u32 %v3844_v26, 16  ;;  %v366_v40 = vshll.u32 %v233_v31, 16  ;;  %v385_v41 = vshrl.u32 %v3847_v30, 16  ;;  %v3858_v45 = vld [vmem:[%s3709_s22 + $0x88] sm:$0xff]  ;;  %v3499_v1 = vld [vmem:[%s4355_s1 + $0xe0] sm:$0xff]  }
  0x29   : > { %3203 = vmatprep.subr.bf16.mxu0 %v3486_v16  ;;  %3242 = vmatpush3.bf16.msra.mxu1 %v3485_v18  ;;  %v349_v9 = vor.u32 %v348_v3, %v345_v2  ;;  %v2889_v16 = vcombine.low %v3733_v43, %v3791_v36  ;;  %v3495_v18 = vld [vmem:[%s4355_s1 + $0xd8] sm:$0xff]   ;;  %v388_v44 = vshll.u32 %v3847_v30, 16  ;;  %v359_v47 = vrot.slane %v357_v35, 4 }
  0x2a   : > { %3243 = vmatprep.subr.bf16.mxu1 %v3487_v20  ;;  %v308_v0 = vrot.slane %v307_v53, 4  ;;  %v327_v20 = vsel %vm3744_vm2, %v322_v13, %v326_v62  ;;  %v362_v51 = vrot.slane %v360_v39, 5  ;;  %v368_v52 = vrot.slane %v366_v40, 5  ;;  %v3500_v13 = vld [vmem:[%s4355_s1 + $0x20] sm:$0xff]   ;;  %v3504_v40 = vld [vmem:[%s4355_s1 + $0x28] sm:$0xff]  }
  0x2b   : > { %v350_v17 = vrot.slane %v349_v9, 4  ;;  %v387_v53 = vrot.slane %v385_v41, 4  ;;  %v390_v54 = vrot.slane %v388_v44, 5  ;;  %v371_v56 = vshrl.u32 %v3858_v45, 16  ;;  %v3505_v44 = vld [vmem:[%s4355_s1 + $0xa8] sm:$0xff]  }
  0x2c   : > { %3204 = vmatpush3.bf16.msra.mxu0 %v3488_v21  ;;  %v313_v7 = vsel %vm3744_vm2, %v308_v0, %v312_v46  ;;  %v3496_v21 = vld [vmem:[%s4355_s1 + $0x18] sm:$0xff]   ;;  %v3861_v46 = vld [vmem:[%s3709_s22 + $0xa8] sm:$0xff]  ;;  %v363_v60 = vor.u32 %v362_v51, %v359_v47  ;;  %v3498_v0 = vld [vmem:[%s4355_s1 + $0x60] sm:$0xff]   ;;  %v2893_v35 = vcombine.low %v3794_v37, %v3858_v45 }
  0x2d   : > { %3205 = vmatprep.subr.bf16.mxu0 %v3490_v58  ;;  %3244 = vmatpush3.bf16.msra.mxu1 %v3489_v38  ;;  %v2716_v12 = vcombine.high %v313_v7, %v341_v8  ;;  %v2715_v14 = vcombine.low %v313_v7, %v341_v8  ;;  %v355_v23 = vsel %vm3744_vm2, %v350_v17, %v354_v5  ;;  %v374_v58 = vshll.u32 %v3858_v45, 16  ;;  %v3908_v47 = vld [vmem:[%s3709_s22 + $0xc0] sm:$0xff]  ;;  %v237_v51 = vld [vmem:[%s3709_s22 + $0xd0] sm:$0x11] }
  0x2e   : > { %3245 = vmatprep.subr.bf16.mxu1 %v3491_v59  ;;  %v2718_v27 = vcombine.high %v327_v20, %v355_v23  ;;  %v2717_v28 = vcombine.low %v327_v20, %v355_v23  ;;  %v2892_v38 = vcombine.high %v3780_v25, %v3844_v26  ;;  %v380_v59 = vshll.u32 %v234_v49, 16 }
  0x2f   : > { %829 = vmatprep.mubr.bf16.mxu0 %v2716_v12  ;;  %v391_v61 = vor.u32 %v390_v54, %v387_v53  ;;  %v399_v62 = vshrl.u32 %v3861_v46, 16  ;;  %v402_v63 = vshll.u32 %v3861_v46, 16  ;;  %v373_v2 = vrot.slane %v371_v56, 4 }
  0x30   : > { %3206 = vmatpush3.bf16.msra.mxu0 %v3492_v6  ;;  %894 = vmatprep.mubr.bf16.mxu1 %v2718_v27  ;;  %v376_v3 = vrot.slane %v374_v58, 5  ;;  %v382_v4 = vrot.slane %v380_v59, 5  ;;  %v408_v5 = vshll.u32 %v236_v50, 16  ;;  %v364_v6 = vrot.slane %v363_v60, 4  ;;  %v3502_v27 = vld [vmem:[%s4355_s1 + $0x68] sm:$0xff]   ;;  %v3911_v50 = vld [vmem:[%s3709_s22 + $0xe0] sm:$0xff] }
  0x31   : > { %3246 = vmatpush3.bf16.msra.mxu1 %v3493_v10  ;;  %830 = vmatmul.mubr.bf16.gmra.mrb[4].mxu0 %v2715_v14  ;;  %v392_v7 = vrot.slane %v391_v61, 4  ;;  %v401_v8 = vrot.slane %v399_v62, 4  ;;  %v404_v9 = vrot.slane %v402_v63, 5  ;;  %v2894_v20 = vcombine.high %v3794_v37, %v3858_v45  ;;  %v3920_v59 = vld [vmem:[%s3709_s22 + $0xc8] sm:$0xff]  ;;  %v238_v63 = vld [vmem:[%s3709_s22 + $0xd8] sm:$0x11] }
  0x32   : > { %3207 = vmatprep.subr.bf16.mxu0 %v3494_v15  ;;  %3247 = vmatprep.subr.bf16.mxu1 %v3495_v18  ;;  %v377_v10 = vor.u32 %v376_v3, %v373_v2  ;;  %v410_v12 = vrot.slane %v408_v5, 5  ;;  %v369_v14 = vsel %vm3744_vm2, %v364_v6, %v368_v52  ;;  %v3501_v18 = vld [vmem:[%s4355_s1 + $0xa0] sm:$0xff]   ;;  %v239_v52 = vld [vmem:[%s3709_s22 + $0xf0] sm:$0x11]  ;;  %v413_v53 = vshrl.u32 %v3908_v47, 16  ;;  %v3923_v60 = vld [vmem:[%s3709_s22 + $0xe8] sm:$0xff] }
  0x33   : > { %895 = vmatmul.mubr.bf16.gmra.mrb[4].mxu1 %v2717_v28  ;;  %v397_v15 = vsel %vm3744_vm2, %v392_v7, %v396_v55  ;;  %v405_v17 = vor.u32 %v404_v9, %v401_v8  ;;  %v2891_v28 = vcombine.low %v3780_v25, %v3844_v26  ;;  %v416_v54 = vshll.u32 %v3908_v47, 16 }
  0x34   : > { %3208 = vmatpush3.bf16.msra.mxu0 %v3496_v21  ;;  %v2720_v21 = vcombine.high %v369_v14, %v397_v15  ;;  %v378_v23 = vrot.slane %v377_v10, 4  ;;  %v422_v55 = vshll.u32 %v237_v51, 16  ;;  %v441_v56 = vshrl.u32 %v3911_v50, 16 }
  0x35   : > { %3248 = vmatpush3.bf16.msra.mxu1 %v3497_v24  ;;  %3209 = vmatprep.subr.bf16.mxu0 %v3498_v0  ;;  %v2719_v24 = vcombine.low %v369_v14, %v397_v15  ;;  %v406_v31 = vrot.slane %v405_v17, 4  ;;  %v444_v58 = vshll.u32 %v3911_v50, 16  ;;  %v415_v61 = vrot.slane %v413_v53, 4  ;;  %v240_v0 = vld [vmem:[%s3709_s22 + $0xf8] sm:$0x11]  ;;  %v3506_v14 = vld [vmem:[%s4355_s1 + $0x70] sm:$0xff]  }
  0x36   : > { %3249 = vmatprep.subr.bf16.mxu1 %v3499_v1  ;;  %837 = vmatprep.mubr.bf16.mxu0 %v2720_v21  ;;  %v383_v39 = vsel %vm3744_vm2, %v378_v23, %v382_v4  ;;  %v450_v62 = vshll.u32 %v239_v52, 16  ;;  %v418_v1 = vrot.slane %v416_v54, 5  ;;  %v424_v2 = vrot.slane %v422_v55, 5  ;;  %v3507_v15 = vld [vmem:[%s4355_s1 + $0xf0] sm:$0xff]  }
  0x37   : > { %v411_v41 = vsel %vm3744_vm2, %v406_v31, %v410_v12  ;;  %v443_v3 = vrot.slane %v441_v56, 4  ;;  %v446_v4 = vrot.slane %v444_v58, 5  ;;  %v427_v6 = vshrl.u32 %v3920_v59, 16  ;;  %v3509_v52 = vld [vmem:[%s4355_s1 + $0xb0] sm:$0xff]   ;;  %v3510_v56 = vld [vmem:[%s4355_s1 + $0x78] sm:$0xff]  }
  0x38   : > { %3210 = vmatpush3.bf16.msra.mxu0 %v3500_v13  ;;  %v2722_v48 = vcombine.high %v383_v39, %v411_v41  ;;  %v2721_v49 = vcombine.low %v383_v39, %v411_v41  ;;  %v452_v5 = vrot.slane %v450_v62, 5  ;;  %v430_v7 = vshll.u32 %v3920_v59, 16  ;;  %v3511_v62 = vld [vmem:[%s4355_s1 + $0xf8] sm:$0xff]  }
  0x39   : > { %3250 = vmatpush3.bf16.msra.mxu1 %v3501_v18  ;;  %3211 = vmatprep.subr.bf16.mxu0 %v3502_v27  ;;  %v436_v8 = vshll.u32 %v238_v63, 16  ;;  %v419_v9 = vor.u32 %v418_v1, %v415_v61  ;;  %v447_v10 = vor.u32 %v446_v4, %v443_v3  ;;  %v455_v12 = vshrl.u32 %v3923_v60, 16  ;;  %v3512_v1 = vld [vmem:[%s4355_s1 + $0x38] sm:$0xff]  }
  0x3a   : > { %838 = vmatmul.mubr.bf16.gmra.mrb[8].mxu0 %v2719_v24  ;;  %3251 = vmatprep.subr.bf16.mxu1 %v3503_v34  ;;  %v458_v13 = vshll.u32 %v3923_v60, 16  ;;  %v429_v17 = vrot.slane %v427_v6, 4  ;;  %v432_v18 = vrot.slane %v430_v7, 5  ;;  %v464_v21 = vshll.u32 %v240_v0, 16  ;;  %v3513_v3 = vld [vmem:[%s4355_s1 + $0xb8] sm:$0xff]   ;;  %v3514_v7 = vld [vmem:[%s4355_s1 + $0x240] sm:$0xff]  }
  0x3b   : > { %902 = vmatprep.mubr.bf16.mxu1 %v2722_v48  ;;  %v420_v23 = vrot.slane %v419_v9, 4  ;;  %v448_v24 = vrot.slane %v447_v10, 4  ;;  %v457_v27 = vrot.slane %v455_v12, 4  ;;  %v438_v39 = vrot.slane %v436_v8, 5  ;;  %v3515_v8 = vld [vmem:[%s4355_s1 + $0x2c0] sm:$0xff]  }
  0x3c   : > { %3212 = vmatpush3.bf16.msra.mxu0 %v3504_v40  ;;  %903 = vmatmul.mubr.bf16.gmra.mrb[8].mxu1 %v2721_v49  ;;  %v460_v31 = vrot.slane %v458_v13, 5  ;;  %v433_v34 = vor.u32 %v432_v18, %v429_v17  ;;  %v3508_v40 = vld [vmem:[%s4355_s1 + $0x30] sm:$0xff]   ;;  %v2760_v41 = vcombine.high %v3718_v32, %v3721_v33  ;;  %v466_v51 = vrot.slane %v464_v21, 5  ;;  %v3516_v10 = vld [vmem:[%s4355_s1 + $0x200] sm:$0xff]   ;;  %v3518_v13 = vld [vmem:[%s4355_s1 + $0x248] sm:$0xff]  }
  0x3d   : > { %3252 = vmatpush3.bf16.msra.mxu1 %v3505_v44  ;;  %3213 = vmatprep.subr.bf16.mxu0 %v3506_v14  ;;  %v425_v44 = vsel %vm3744_vm2, %v420_v23, %v424_v2  ;;  %v453_v48 = vsel %vm3744_vm2, %v448_v24, %v452_v5  ;;  %v2895_v58 = vcombine.low %v3847_v30, %v3908_v47  ;;  %v3519_v17 = vld [vmem:[%s4355_s1 + $0x2c8] sm:$0xff]   ;;  %v3522_v21 = vld [vmem:[%s4355_s1 + $0x250] sm:$0xff]  }
  0x3e   : > { %3253 = vmatprep.subr.bf16.mxu1 %v3507_v15  ;;  %v461_v49 = vor.u32 %v460_v31, %v457_v27  ;;  %v2724_v53 = vcombine.high %v425_v44, %v453_v48  ;;  %v434_v54 = vrot.slane %v433_v34, 4  ;;  %v2723_v55 = vcombine.low %v425_v44, %v453_v48  ;;  %v3520_v15 = vld [vmem:[%s4355_s1 + $0x208] sm:$0xff]   ;;  %v3523_v24 = vld [vmem:[%s4355_s1 + $0x2d0] sm:$0xff]   ;;  %v3526_v31 = vld [vmem:[%s4355_s1 + $0x258] sm:$0xff]  }
  0x3f   : > { %v2897_v63 = vcombine.low %v3861_v46, %v3920_v59  ;;  %v2762_v6 = vcombine.high %v3730_v42, %v3733_v43  ;;  %v2759_v9 = vcombine.low %v3718_v32, %v3721_v33  ;;  %v2764_v12 = vcombine.high %v3777_v22, %v3780_v25  ;;  %v3517_v32 = vld [vmem:[%s4355_s1 + $0x280] sm:$0xff]   ;;  %v3524_v27 = vld [vmem:[%s4355_s1 + $0x210] sm:$0xff]   ;;  %v3527_v44 = vld [vmem:[%s4355_s1 + $0x2d8] sm:$0xff]  }
  0x40   : > { %3214 = vmatpush3.bf16.msra.mxu0 %v3508_v40  ;;  %v462_v61 = vrot.slane %v461_v49, 4  ;;  %845 = vmatprep.mubr.bf16.mxu0 %v2724_v53  ;;  %v439_v0 = vsel %vm3744_vm2, %v434_v54, %v438_v39  ;;  %v2761_v14 = vcombine.low %v3730_v42, %v3733_v43  ;;  %v2766_v18 = vcombine.high %v3791_v36, %v3794_v37  ;;  %v3521_v42 = vld [vmem:[%s4355_s1 + $0x288] sm:$0xff]   ;;  %v3525_v40 = vld [vmem:[%s4355_s1 + $0x290] sm:$0xff]   ;;  %v3529_v49 = vld [vmem:[%s4355_s1 + $0x298] sm:$0xff]  }
  0x41   : > { %3254 = vmatpush3.bf16.msra.mxu1 %v3509_v52  ;;  %3215 = vmatprep.subr.bf16.mxu0 %v3510_v56  ;;  %v2763_v23 = vcombine.low %v3777_v22, %v3780_v25  ;;  %v2768_v34 = vcombine.high %v3844_v26, %v3847_v30  ;;  %v2765_v39 = vcombine.low %v3791_v36, %v3794_v37  ;;  %v3531_v53 = vld [vmem:[%s4355_s1 + $0x2e0] sm:$0xff]   ;;  %v3553_v33 = vld [vmem:[%s4355_s1 + $0x388] sm:$0xff]   ;;  %v3554_v22 = vld [vmem:[%s4355_s1 + $0x350] sm:$0xff]  }
  0x42   : > { %v467_v2 = vsel %vm3744_vm2, %v462_v61, %v466_v51  ;;  %846 = vmatmul.mubr.bf16.gmra.mrb[12].mxu0 %v2723_v55  ;;  %3255 = vmatprep.subr.bf16.mxu1 %v3511_v62  ;;  %v2770_v48 = vcombine.high %v3858_v45, %v3861_v46  ;;  %v3530_v51 = vld [vmem:[%s4355_s1 + $0x260] sm:$0xff]   ;;  %v2767_v52 = vcombine.low %v3844_v26, %v3847_v30  ;;  %v3534_v55 = vld [vmem:[%s4355_s1 + $0x268] sm:$0xff]   ;;  %v3558_v43 = vld [vmem:[%s4355_s1 + $0x358] sm:$0xff]  }
  0x43   : > { %v2726_v4 = vcombine.high %v439_v0, %v467_v2  ;;  %v2725_v5 = vcombine.low %v439_v0, %v467_v2  ;;  %1223 = vmatprep.mubr.bf16.mxu0 %v2760_v41  ;;  %v3528_v41 = vld [vmem:[%s4355_s1 + $0x218] sm:$0xff]   ;;  %v3532_v54 = vld [vmem:[%s4355_s1 + $0x220] sm:$0xff]   ;;  %v2772_v56 = vcombine.high %v3908_v47, %v3911_v50  ;;  %v2769_v61 = vcombine.low %v3858_v45, %v3861_v46  ;;  %v3536_v0 = vld [vmem:[%s4355_s1 + $0x228] sm:$0xff]  }
  0x44   : > { %3216 = vmatpush3.bf16.msra.mxu0 %v3512_v1  ;;  %v3533_v62 = vld [vmem:[%s4355_s1 + $0x2a0] sm:$0xff]   ;;  %v3535_v1 = vld [vmem:[%s4355_s1 + $0x2e8] sm:$0xff]   ;;  %v2774_v2 = vcombine.high %v3920_v59, %v3923_v60  ;;  %v2896_v36 = vcombine.high %v3847_v30, %v3908_v47  ;;  %v2898_v25 = vcombine.high %v3861_v46, %v3920_v59  ;;  %v3561_v26 = vld [vmem:[%s4355_s1 + $0x398] sm:$0xff]  }
  0x45   : > { %3256 = vmatpush3.bf16.msra.mxu1 %v3513_v3  ;;  %910 = vmatprep.mubr.bf16.mxu1 %v2726_v4  ;;  %v3537_v3 = vld [vmem:[%s4355_s1 + $0x2a8] sm:$0xff]   ;;  %v3538_v4 = vld [vmem:[%s4355_s1 + $0x270] sm:$0xff]   ;;  %v3565_v37 = vld [vmem:[%s4355_s1 + $0x3a0] sm:$0xff]  }
  0x46   : > { %3281 = vmatprep.subr.bf16.mxu0 %v3514_v7  ;;  %911 = vmatmul.mubr.bf16.gmra.mrb[12].mxu1 %v2725_v5  ;;  %v2771_v5 = vcombine.low %v3908_v47, %v3911_v50  ;;  %v3540_v7 = vld [vmem:[%s4355_s1 + $0x230] sm:$0xff]   ;;  %v3568_v45 = vld [vmem:[%s4355_s1 + $0x328] sm:$0xff]   ;;  %v3574_v46 = vld [vmem:[%s4355_s1 + $0x378] sm:$0xff]  }
  0x47   : > { %3321 = vmatprep.subr.bf16.mxu1 %v3515_v8  ;;  %1288 = vmatprep.mubr.bf16.mxu1 %v2762_v6  ;;  %v3539_v6 = vld [vmem:[%s4355_s1 + $0x2f0] sm:$0xff]   ;;  %v3542_v8 = vld [vmem:[%s4355_s1 + $0x278] sm:$0xff]  }
  0x4a   : > { %1224 = vmatmul.mubr.bf16.vlgmr.msra.gmra.mrb[16].mxu0 %v2759_v9  ;;  %v2773_v9 = vcombine.low %v3920_v59, %v3923_v60 }
  0x4b   : > { %3282 = vmatpush3.bf16.msra.mxu0 %v3516_v10  ;;  %1231 = vmatprep.mubr.bf16.mxu0 %v2764_v12  ;;  %v3541_v10 = vld [vmem:[%s4355_s1 + $0x2b0] sm:$0xff]   ;;  %v3544_v12 = vld [vmem:[%s4355_s1 + $0x238] sm:$0xff]  }
  0x4c   : > { %3283 = vmatprep.subr.bf16.mxu0 %v3518_v13  ;;  %v3543_v13 = vld [vmem:[%s4355_s1 + $0x2f8] sm:$0xff]  }
  0x4e   : > { %1289 = vmatmul.mubr.bf16.vlgmr.msra.gmra.mrb[16].mxu1 %v2761_v14  ;;  %v3545_v14 = vld [vmem:[%s4355_s1 + $0x2b8] sm:$0xff]  }
  0x4f   : > { %3322 = vmatpush3.bf16.msra.mxu1 %v3517_v32  ;;  %3284 = vmatpush3.bf16.msra.mxu0 %v3520_v15  ;;  %v3546_v32 = vld [vmem:[%s4355_s1 + $0x340] sm:$0xff]  }
  0x50   : > { %3323 = vmatprep.subr.bf16.mxu1 %v3519_v17  ;;  %1296 = vmatprep.mubr.bf16.mxu1 %v2766_v18  ;;  %v3547_v15 = vld [vmem:[%s4355_s1 + $0x3c0] sm:$0xff]  }
  0x51   : > { %3285 = vmatprep.subr.bf16.mxu0 %v3522_v21  ;;  %v3548_v17 = vld [vmem:[%s4355_s1 + $0x300] sm:$0xff]   ;;  %v3556_v21 = vld [vmem:[%s4355_s1 + $0x310] sm:$0xff]  }
  0x52   : > { %1232 = vmatmul.mubr.bf16.gmra.mrb[20].mxu0 %v2763_v23  ;;  %v3549_v18 = vld [vmem:[%s4355_s1 + $0x380] sm:$0xff]  }
  0x53   : > { %3324 = vmatpush3.bf16.msra.mxu1 %v3521_v42  ;;  %3286 = vmatpush3.bf16.msra.mxu0 %v3524_v27  ;;  %v3552_v42 = vld [vmem:[%s4355_s1 + $0x308] sm:$0xff]   ;;  %v3563_v23 = vld [vmem:[%s4355_s1 + $0x3e0] sm:$0xff]  }
  0x54   : > { %3325 = vmatprep.subr.bf16.mxu1 %v3523_v24  ;;  %3287 = vmatprep.subr.bf16.mxu0 %v3526_v31  ;;  %v3564_v24 = vld [vmem:[%s4355_s1 + $0x320] sm:$0xff]   ;;  %v3566_v27 = vld [vmem:[%s4355_s1 + $0x368] sm:$0xff]  }
  0x55   : > { %1239 = vmatprep.mubr.bf16.mxu0 %v2768_v34  ;;  %v2822_v34 = vld [vmem:[%s3709_s22 + $0x108] sm:$0xff] }
  0x56   : > { %1297 = vmatmul.mubr.bf16.gmra.mrb[20].mxu1 %v2765_v39  ;;  %v2902_v30 = vcombine.high %v3923_v60, %v2822_v34  ;;  %v2059_v59 = vshll.u32 %v2822_v34, 16 }
  0x57   : > { %3326 = vmatpush3.bf16.msra.mxu1 %v3525_v40  ;;  %3288 = vmatpush3.bf16.msra.mxu0 %v3528_v41  ;;  %v3567_v40 = vld [vmem:[%s4355_s1 + $0x3e8] sm:$0xff]   ;;  %v3570_v41 = vld [vmem:[%s4355_s1 + $0x370] sm:$0xff]  }
  0x58   : > { %3327 = vmatprep.subr.bf16.mxu1 %v3527_v44  ;;  %1304 = vmatprep.mubr.bf16.mxu1 %v2770_v48 }
  0x59   : > { %3289 = vmatprep.subr.bf16.mxu0 %v3530_v51 }
  0x5a   : > { %1240 = vmatmul.mubr.bf16.gmra.mrb[24].mxu0 %v2767_v52  ;;  %v3572_v52 = vld [vmem:[%s4355_s1 + $0x330] sm:$0xff]  }
  0x5b   : > { %3328 = vmatpush3.bf16.msra.mxu1 %v3529_v49  ;;  %3290 = vmatpush3.bf16.msra.mxu0 %v3532_v54  ;;  %v3571_v49 = vld [vmem:[%s4355_s1 + $0x3f0] sm:$0xff]   ;;  %v2901_v54 = vcombine.low %v3923_v60, %v2822_v34  ;;  %v2939_v60 = vld [vmem:[%s3709_s22 + $0x40] sm:$0xff] }
  0x5c   : > { %3329 = vmatprep.subr.bf16.mxu1 %v3531_v53  ;;  %3291 = vmatprep.subr.bf16.mxu0 %v3534_v55  ;;  %v2056_v53 = vshrl.u32 %v2822_v34, 16  ;;  %v3575_v55 = vld [vmem:[%s4355_s1 + $0x3f8] sm:$0xff]  }
  0x5d   : > { %1247 = vmatprep.mubr.bf16.mxu0 %v2772_v56 }
  0x5e   : > { %1305 = vmatmul.mubr.bf16.gmra.mrb[24].mxu1 %v2769_v61  ;;  %v4225_v56 = vrot.slane %v2056_v53, 4  ;;  %v3576_v61 = vld [vmem:[%s4355_s1 + $0x338] sm:$0xff]  }
  0x5f   : > { %3330 = vmatpush3.bf16.msra.mxu1 %v3533_v62  ;;  %3292 = vmatpush3.bf16.msra.mxu0 %v3536_v0  ;;  %v2935_v62 = vld [vmem:[%s3709_s22 + $0x20] sm:$0xff]  ;;  %v2937_v0 = vld [vmem:[%s3709_s22 + $0x30] sm:$0x11] }
  0x60   : > { %3331 = vmatprep.subr.bf16.mxu1 %v3535_v1  ;;  %1312 = vmatprep.mubr.bf16.mxu1 %v2774_v2  ;;  %v4234_v2 = vrot.slane %v2059_v59, 5  ;;  %v2946_v59 = vld [vmem:[%s3709_s22 + $0x78] sm:$0x11] }
  0x61   : > { %3293 = vmatprep.subr.bf16.mxu0 %v3538_v4  ;;  %v1846_v4 = vshrl.u32 %v2935_v62, 16 }
  0x62   : > { %1248 = vmatmul.mubr.bf16.gmra.mrb[28].mxu0 %v2771_v5  ;;  %v1849_v5 = vshll.u32 %v2935_v62, 16 }
  0x63   : > { %3332 = vmatpush3.bf16.msra.mxu1 %v3537_v3  ;;  %3294 = vmatpush3.bf16.msra.mxu0 %v3540_v7  ;;  %v2941_v3 = vld [vmem:[%s3709_s22 + $0x50] sm:$0x11]  ;;  %v1874_v7 = vshrl.u32 %v2939_v60, 16 }
  0x64   : > { %3333 = vmatprep.subr.bf16.mxu1 %v3539_v6  ;;  %3295 = vmatprep.subr.bf16.mxu0 %v3542_v8  ;;  %v1855_v6 = vshll.u32 %v2937_v0, 16  ;;  %v1877_v8 = vshll.u32 %v2939_v60, 16 }
  0x65   : > { %1707 = vmatprep.mubr.bf16.mxu0 %v2888_v11  ;;  %v3550_v11 = vld [vmem:[%s4355_s1 + $0x348] sm:$0xff]  }
  0x66   : > { %1313 = vmatmul.mubr.bf16.gmra.mrb[28].mxu1 %v2773_v9  ;;  %v1883_v9 = vshll.u32 %v2941_v3, 16 }
  0x67   : > { %3334 = vmatpush3.bf16.msra.mxu1 %v3541_v10  ;;  %3296 = vmatpush3.bf16.msra.mxu0 %v3544_v12  ;;  %v2936_v10 = vld [vmem:[%s3709_s22 + $0x28] sm:$0xff]  ;;  %v2938_v12 = vld [vmem:[%s3709_s22 + $0x38] sm:$0x11] }
  0x68   : > { %3335 = vmatprep.subr.bf16.mxu1 %v3543_v13  ;;  %1772 = vmatprep.mubr.bf16.mxu1 %v2890_v19  ;;  %v3551_v19 = vld [vmem:[%s4355_s1 + $0x3c8] sm:$0xff]   ;;  %v1848_v13 = vrot.slane %v1846_v4, 4 }
  0x69   : > { %3361 = vmatprep.subr.bf16.mxu0 %v3546_v32  ;;  %v1857_v32 = vrot.slane %v1855_v6, 5  ;;  %v2948_v6 = vld [vmem:[%s3709_s22 + $0x88] sm:$0xff] }
  0x6a   : > { %1708 = vmatmul.mubr.bf16.vlgmr.msra.gmra.mrb[32].mxu0 %v2887_v29  ;;  %v3555_v29 = vld [vmem:[%s4355_s1 + $0x3d0] sm:$0xff]  }
  0x6b   : > { %3336 = vmatpush3.bf16.msra.mxu1 %v3545_v14  ;;  %3362 = vmatpush3.bf16.msra.mxu0 %v3548_v17  ;;  %v1851_v14 = vrot.slane %v1849_v5, 5  ;;  %v2942_v17 = vld [vmem:[%s3709_s22 + $0x58] sm:$0x11] }
  0x6c   : > { %3401 = vmatprep.subr.bf16.mxu1 %v3547_v15  ;;  %3363 = vmatprep.subr.bf16.mxu0 %v3550_v11  ;;  %v2940_v15 = vld [vmem:[%s3709_s22 + $0x48] sm:$0xff]  ;;  %v3577_v11 = vld [vmem:[%s4355_s1 + $0x3b8] sm:$0xff]  }
  0x6d   : > { %1715 = vmatprep.mubr.bf16.mxu0 %v2892_v38  ;;  %v3560_v38 = vld [vmem:[%s4355_s1 + $0x318] sm:$0xff]  }
  0x6e   : > { %1773 = vmatmul.mubr.bf16.vlgmr.msra.gmra.mrb[32].mxu1 %v2889_v16  ;;  %v3557_v16 = vld [vmem:[%s4355_s1 + $0x390] sm:$0xff]  }
  0x6f   : > { %3402 = vmatpush3.bf16.msra.mxu1 %v3549_v18  ;;  %3364 = vmatpush3.bf16.msra.mxu0 %v3552_v42  ;;  %v1876_v18 = vrot.slane %v1874_v7, 4  ;;  %v1879_v42 = vrot.slane %v1877_v8, 5  ;;  %v2950_v7 = vld [vmem:[%s3709_s22 + $0x98] sm:$0x11] }
  0x70   : > { %3403 = vmatprep.subr.bf16.mxu1 %v3551_v19  ;;  %1780 = vmatprep.mubr.bf16.mxu1 %v2894_v20  ;;  %v3559_v20 = vld [vmem:[%s4355_s1 + $0x3d8] sm:$0xff]   ;;  %v1885_v19 = vrot.slane %v1883_v9, 5  ;;  %v1925_v9 = vshll.u32 %v2946_v59, 16  ;;  %v2956_v59 = vld [vmem:[%s3709_s22 + $0xc8] sm:$0xff] }
  0x71   : > { %3365 = vmatprep.subr.bf16.mxu0 %v3554_v22  ;;  %v1852_v22 = vor.u32 %v1851_v14, %v1848_v13 }
  0x72   : > { %1716 = vmatmul.mubr.bf16.gmra.mrb[36].mxu0 %v2891_v28  ;;  %v3562_v28 = vld [vmem:[%s4355_s1 + $0x360] sm:$0xff]  }
  0x73   : > { %3404 = vmatpush3.bf16.msra.mxu1 %v3553_v33  ;;  %3366 = vmatpush3.bf16.msra.mxu0 %v3556_v21  ;;  %v1860_v33 = vshrl.u32 %v2936_v10, 16  ;;  %v1869_v21 = vshll.u32 %v2938_v12, 16 }
  0x74   : > { %3405 = vmatprep.subr.bf16.mxu1 %v3555_v29  ;;  %3367 = vmatprep.subr.bf16.mxu0 %v3558_v43  ;;  %v1863_v29 = vshll.u32 %v2936_v10, 16  ;;  %v1888_v43 = vshrl.u32 %v2940_v15, 16 }
  0x75   : > { %1723 = vmatprep.mubr.bf16.mxu0 %v2896_v36  ;;  %v2943_v36 = vld [vmem:[%s3709_s22 + $0x60] sm:$0xff] }
  0x76   : > { %1781 = vmatmul.mubr.bf16.gmra.mrb[36].mxu1 %v2893_v35  ;;  %v2821_v35 = vld [vmem:[%s3709_s22 + $0x100] sm:$0xff]  ;;  %v1902_v34 = vshrl.u32 %v2943_v36, 16 }
  0x77   : > { %3406 = vmatpush3.bf16.msra.mxu1 %v3557_v16  ;;  %3368 = vmatpush3.bf16.msra.mxu0 %v3560_v38  ;;  %v2900_v31 = vcombine.high %v3911_v50, %v2821_v35  ;;  %v2042_v39 = vshrl.u32 %v2821_v35, 16  ;;  %v2045_v47 = vshll.u32 %v2821_v35, 16  ;;  %v2899_v48 = vcombine.low %v3911_v50, %v2821_v35 }
  0x78   : > { %3407 = vmatprep.subr.bf16.mxu1 %v3559_v20  ;;  %1788 = vmatprep.mubr.bf16.mxu1 %v2898_v25  ;;  %v1880_v16 = vor.u32 %v1879_v42, %v1876_v18  ;;  %v1862_v38 = vrot.slane %v1860_v33, 4  ;;  %v1891_v20 = vshll.u32 %v2940_v15, 16  ;;  %v1897_v25 = vshll.u32 %v2942_v17, 16  ;;  %v2953_v42 = vld [vmem:[%s3709_s22 + $0xb0] sm:$0x11] }
  0x79   : > { %3369 = vmatprep.subr.bf16.mxu0 %v3562_v28  ;;  %v2044_v44 = vrot.slane %v2042_v39, 4  ;;  %v2047_v51 = vrot.slane %v2045_v47, 5  ;;  %v1853_v28 = vrot.slane %v1852_v22, 4  ;;  %v1927_v18 = vrot.slane %v1925_v9, 5 }
  0x7a   : > { %1724 = vmatmul.mubr.bf16.gmra.mrb[40].mxu0 %v2895_v58  ;;  %v3569_v58 = vld [vmem:[%s4355_s1 + $0x3a8] sm:$0xff]   ;;  %v1893_v35 = vrot.slane %v1891_v20, 5  ;;  %v1944_v33 = vshrl.u32 %v2948_v6, 16  ;;  %v1947_v22 = vshll.u32 %v2948_v6, 16 }
  0x7b   : > { %3408 = vmatpush3.bf16.msra.mxu1 %v3561_v26  ;;  %3370 = vmatpush3.bf16.msra.mxu0 %v3564_v24  ;;  %v2048_v50 = vor.u32 %v2047_v51, %v2044_v44  ;;  %v2945_v26 = vld [vmem:[%s3709_s22 + $0x70] sm:$0x11]  ;;  %v1871_v24 = vrot.slane %v1869_v21, 5  ;;  %v1858_v39 = vsel %vm3744_vm2, %v1853_v28, %v1857_v32  ;;  %v2944_v51 = vld [vmem:[%s3709_s22 + $0x68] sm:$0xff]  ;;  %v2951_v32 = vld [vmem:[%s3709_s22 + $0xa0] sm:$0xff]  ;;  %v1967_v28 = vshll.u32 %v2953_v42, 16 }
  0x7c   : > { %3409 = vmatprep.subr.bf16.mxu1 %v3563_v23  ;;  %3371 = vmatprep.subr.bf16.mxu0 %v3566_v27  ;;  %v1865_v23 = vrot.slane %v1863_v29, 5  ;;  %v1890_v27 = vrot.slane %v1888_v43, 4  ;;  %v1911_v47 = vshll.u32 %v2945_v26, 16  ;;  %v2949_v44 = vld [vmem:[%s3709_s22 + $0x90] sm:$0x11]  ;;  %v1916_v3 = vshrl.u32 %v2944_v51, 16 }
  0x7d   : > { %1731 = vmatprep.mubr.bf16.mxu0 %v2900_v31  ;;  %v4232_v1 = vrot.slane %v2048_v50, 4  ;;  %v1899_v31 = vrot.slane %v1897_v25, 5  ;;  %v1939_v60 = vshll.u32 %v2949_v44, 16  ;;  %v1919_v8 = vshll.u32 %v2944_v51, 16  ;;  %v2955_v26 = vld [vmem:[%s3709_s22 + $0xc0] sm:$0xff] }
  0x7e   : > { %1789 = vmatmul.mubr.bf16.gmra.mrb[40].mxu1 %v2897_v63  ;;  %v3573_v63 = vld [vmem:[%s4355_s1 + $0x3b0] sm:$0xff]   ;;  %v1918_v17 = vrot.slane %v1916_v3, 4  ;;  %v1953_v29 = vshll.u32 %v2950_v7, 16  ;;  %v1949_v20 = vrot.slane %v1947_v22, 5  ;;  %v1989_v44 = vshll.u32 %v2955_v26, 16 }
  0x7f   : > { %3410 = vmatpush3.bf16.msra.mxu1 %v3565_v37  ;;  %3372 = vmatpush3.bf16.msra.mxu0 %v3568_v45  ;;  %v2947_v37 = vld [vmem:[%s3709_s22 + $0x80] sm:$0xff]  ;;  %v1881_v45 = vrot.slane %v1880_v16, 4  ;;  %v1941_v14 = vrot.slane %v1939_v60, 5  ;;  %v1961_v16 = vshll.u32 %v2951_v32, 16  ;;  %v2961_v7 = vld [vmem:[%s3709_s22 + $0xf0] sm:$0x11] }
  0x80   : > { %3411 = vmatprep.subr.bf16.mxu1 %v3567_v40  ;;  %1796 = vmatprep.mubr.bf16.mxu1 %v2902_v30  ;;  %v1866_v40 = vor.u32 %v1865_v23, %v1862_v38  ;;  %v1905_v30 = vshll.u32 %v2943_v36, 16  ;;  %v1958_v36 = vshrl.u32 %v2951_v32, 16  ;;  %v1946_v38 = vrot.slane %v1944_v33, 4  ;;  %v2959_v60 = vld [vmem:[%s3709_s22 + $0xe0] sm:$0xff] }
  0x81   : > { %3373 = vmatprep.subr.bf16.mxu0 %v3570_v41  ;;  %v1894_v41 = vor.u32 %v1893_v35, %v1890_v27  ;;  %v1955_v25 = vrot.slane %v1953_v29, 5  ;;  %v2957_v27 = vld [vmem:[%s3709_s22 + $0xd0] sm:$0x11]  ;;  %v2952_v35 = vld [vmem:[%s3709_s22 + $0xa8] sm:$0xff]  ;;  %v2014_v32 = vshrl.u32 %v2959_v60, 16  ;;  %v2023_v33 = vshll.u32 %v2961_v7, 16 }
  0x82   : > { %1732 = vmatmul.mubr.bf16.gmra.mrb[44].mxu0 %v2899_v48  ;;  %v1904_v48 = vrot.slane %v1902_v34, 4  ;;  %v1907_v50 = vrot.slane %v1905_v30, 5  ;;  %v1950_v34 = vor.u32 %v1949_v20, %v1946_v38  ;;  %v2954_v30 = vld [vmem:[%s3709_s22 + $0xb8] sm:$0x11]  ;;  %v1972_v51 = vshrl.u32 %v2952_v35, 16 }
  0x83   : > { %3412 = vmatpush3.bf16.msra.mxu1 %v3569_v58  ;;  %3374 = vmatpush3.bf16.msra.mxu0 %v3572_v52  ;;  %v1886_v58 = vsel %vm3744_vm2, %v1881_v45, %v1885_v19  ;;  %v1963_v45 = vrot.slane %v1961_v16, 5  ;;  %v2016_v29 = vrot.slane %v2014_v32, 4 }
  0x84   : > { %3413 = vmatprep.subr.bf16.mxu1 %v3571_v49  ;;  %3375 = vmatprep.subr.bf16.mxu0 %v3574_v46  ;;  %v1930_v49 = vshrl.u32 %v2947_v37, 16  ;;  %v3031_v52 = vcombine.low %v1858_v39, %v1886_v58  ;;  %v3032_v53 = vcombine.high %v1858_v39, %v1886_v58  ;;  %v1867_v46 = vrot.slane %v1866_v40, 4 }
  0x85   : > { %v1908_v0 = vor.u32 %v1907_v50, %v1904_v48  ;;  %v1969_v40 = vrot.slane %v1967_v28, 5  ;;  %v1951_v48 = vrot.slane %v1950_v34, 4  ;;  %v1991_v50 = vrot.slane %v1989_v44, 5 }
  0x86   : > { %1797 = vmatmul.mubr.bf16.gmra.mrb[44].mxu1 %v2901_v54  ;;  %v1913_v54 = vrot.slane %v1911_v47, 5  ;;  %2422 = vmatprep.mubr.bf16.mxu0 %v3032_v53  ;;  %v1872_v62 = vsel %vm3744_vm2, %v1867_v46, %v1871_v24 }
  0x87   : > { %3414 = vmatpush3.bf16.msra.mxu1 %v3573_v63  ;;  %3376 = vmatpush3.bf16.msra.mxu0 %v3576_v61  ;;  %v1895_v63 = vrot.slane %v1894_v41, 4  ;;  %v1933_v61 = vshll.u32 %v2947_v37, 16  ;;  %v1909_v13 = vrot.slane %v1908_v0, 4  ;;  %v1960_v37 = vrot.slane %v1958_v36, 4 }
  0x88   : > { %3415 = vmatprep.subr.bf16.mxu1 %v3575_v55  ;;  %v1932_v55 = vrot.slane %v1930_v49, 4  ;;  %v1986_v41 = vshrl.u32 %v2955_v26, 16  ;;  %v1995_v49 = vshll.u32 %v2957_v27, 16  ;;  %v2062_v36 = vor.u32 %v4234_v2, %v4225_v56  ;;  %v2966_v26 = vld [vmem:[%s3709_s22 + $0x118] sm:$0x11] }
  0x89   : > { %v1900_v4 = vsel %vm3744_vm2, %v1895_v63, %v1899_v31  ;;  %v1935_v5 = vrot.slane %v1933_v61, 5  ;;  %v1914_v19 = vsel %vm3744_vm2, %v1909_v13, %v1913_v54  ;;  %v1964_v58 = vor.u32 %v1963_v45, %v1960_v37  ;;  %v2958_v61 = vld [vmem:[%s3709_s22 + $0xd8] sm:$0x11] }
  0x8a   : > { %2423 = vmatmul.mubr.bf16.vlgmr.msra.gmra.mrb[48].mxu0 %v3031_v52  ;;  %v3033_v10 = vcombine.low %v1872_v62, %v1900_v4  ;;  %v3034_v12 = vcombine.high %v1872_v62, %v1900_v4  ;;  %v1975_v52 = vshll.u32 %v2952_v35, 16  ;;  %v1988_v46 = vrot.slane %v1986_v41, 4 }
  0x8b   : > { %3416 = vmatpush3.bf16.msra.mxu1 %v3577_v11  ;;  %v1936_v15 = vor.u32 %v1935_v5, %v1932_v55  ;;  %v1921_v11 = vrot.slane %v1919_v8, 5  ;;  %v1965_v53 = vrot.slane %v1964_v58, 4  ;;  %v1981_v63 = vshll.u32 %v2954_v30, 16 }
  0x8c   : > { %2487 = vmatprep.mubr.bf16.mxu1 %v3034_v12  ;;  %v1956_v54 = vsel %vm3744_vm2, %v1951_v48, %v1955_v25  ;;  %v1997_v55 = vrot.slane %v1995_v49, 5  ;;  %v1974_v62 = vrot.slane %v1972_v51, 4  ;;  %v1977_v0 = vrot.slane %v1975_v52, 5 }
  0x8d   : > { %v1937_v21 = vrot.slane %v1936_v15, 4  ;;  %v1922_v43 = vor.u32 %v1921_v11, %v1918_v17  ;;  %v1970_v5 = vsel %vm3744_vm2, %v1965_v53, %v1969_v40  ;;  %v1992_v6 = vor.u32 %v1991_v50, %v1988_v46  ;;  %v2960_v17 = vld [vmem:[%s3709_s22 + $0xe8] sm:$0xff] }
  0x8e   : > { %2488 = vmatmul.mubr.bf16.vlgmr.msra.gmra.mrb[48].mxu1 %v3033_v10  ;;  %v1978_v8 = vor.u32 %v1977_v0, %v1974_v62  ;;  %v1983_v9 = vrot.slane %v1981_v63, 5  ;;  %v2000_v10 = vshrl.u32 %v2956_v59, 16  ;;  %v2003_v12 = vshll.u32 %v2956_v59, 16 }
  0x8f   : > { %v1942_v23 = vsel %vm3744_vm2, %v1937_v21, %v1941_v14  ;;  %v1923_v24 = vrot.slane %v1922_v43, 4  ;;  %v1993_v13 = vrot.slane %v1992_v6, 4  ;;  %v2009_v14 = vshll.u32 %v2958_v61, 16  ;;  %v2962_v43 = vld [vmem:[%s3709_s22 + $0xf8] sm:$0x11] }
  0x90   : > { %v3036_v31 = vcombine.high %v1914_v19, %v1942_v23  ;;  %v3035_v39 = vcombine.low %v1914_v19, %v1942_v23  ;;  %v2017_v15 = vshll.u32 %v2959_v60, 16  ;;  %v1979_v11 = vrot.slane %v1978_v8, 4  ;;  %v2965_v19 = vld [vmem:[%s3709_s22 + $0x110] sm:$0x11]  ;;  %s3089_s22 = sshll.u32 %s4360_s10, 5 }
  0x91   : > { %v1928_v47 = vsel %vm3744_vm2, %v1923_v24, %v1927_v18  ;;  %v2002_v18 = vrot.slane %v2000_v10, 4  ;;  %v2005_v42 = vrot.slane %v2003_v12, 5  ;;  %v1998_v22 = vsel %vm3744_vm2, %v1993_v13, %v1997_v55  ;;  %s4339_s20 = scalar_lea.vmem %s4356_s2, %s3089_s22 }
  0x92   : > { %2430 = vmatprep.mubr.bf16.mxu0 %v3036_v31  ;;  %v3038_v3 = vcombine.high %v1928_v47, %v1956_v54  ;;  %v3037_v4 = vcombine.low %v1928_v47, %v1956_v54  ;;  %v2019_v21 = vrot.slane %v2017_v15, 5  ;;  %v3040_v16 = vcombine.high %v1970_v5, %v1998_v22 }
  0x93   : > { %2431 = vmatmul.mubr.bf16.gmra.mrb[52].mxu0 %v3035_v39  ;;  %v2006_v38 = vor.u32 %v2005_v42, %v2002_v18  ;;  %v2011_v20 = vrot.slane %v2009_v14, 5  ;;  %v3039_v25 = vcombine.low %v1970_v5, %v1998_v22  ;;  %v2025_v23 = vrot.slane %v2023_v33, 5 }
  0x94   : > { %2495 = vmatprep.mubr.bf16.mxu1 %v3038_v3  ;;  %v2020_v28 = vor.u32 %v2019_v21, %v2016_v29  ;;  %v2051_v24 = vshll.u32 %v2965_v19, 16  ;;  %v2028_v27 = vshrl.u32 %v2960_v17, 16  ;;  %2438 = vmatprep.mubr.bf16.mxu0 %v3040_v16  ;;  %v1984_v37 = vsel %vm3744_vm2, %v1979_v11, %v1983_v9 }
  0x95   : > { %v2007_v45 = vrot.slane %v2006_v38, 4  ;;  %v2031_v35 = vshll.u32 %v2960_v17, 16  ;;  %v2037_v31 = vshll.u32 %v2962_v43, 16  ;;  %v2065_v2 = vshll.u32 %v2966_v26, 16 }
  0x96   : > { %2496 = vmatmul.mubr.bf16.gmra.mrb[52].mxu1 %v3037_v4  ;;  %v2021_v34 = vrot.slane %v2020_v28, 4  ;;  %v2053_v39 = vrot.slane %v2051_v24, 5  ;;  %v2030_v56 = vrot.slane %v2028_v27, 4  ;;  %v2063_v47 = vrot.slane %v2062_v36, 4 }
  0x97   : > { %v2012_v40 = vsel %vm3744_vm2, %v2007_v45, %v2011_v20  ;;  %v2033_v30 = vrot.slane %v2031_v35, 5  ;;  %v2039_v52 = vrot.slane %v2037_v31, 5  ;;  %v2067_v53 = vrot.slane %v2065_v2, 5 }
  0x98   : > { %v3042_v58 = vcombine.high %v1984_v37, %v2012_v40  ;;  %v3041_v41 = vcombine.low %v1984_v37, %v2012_v40  ;;  %v2026_v44 = vsel %vm3744_vm2, %v2021_v34, %v2025_v23  ;;  %v2054_v48 = vsel %vm3744_vm2, %v4232_v1, %v2053_v39 }
  0x99   : > { %v3044_v49 = vcombine.high %v2026_v44, %v2054_v48  ;;  %v2034_v51 = vor.u32 %v2033_v30, %v2030_v56  ;;  %v3043_v46 = vcombine.low %v2026_v44, %v2054_v48  ;;  %v2068_v59 = vsel %vm3744_vm2, %v2063_v47, %v2067_v53 }
  0x9a   : > { %2503 = vmatprep.mubr.bf16.mxu1 %v3042_v58 }
  0x9b   : > { %2439 = vmatmul.mubr.bf16.gmra.mrb[56].mxu0 %v3039_v25  ;;  %v2035_v50 = vrot.slane %v2034_v51, 4 }
  0x9c   : > { %2446 = vmatprep.mubr.bf16.mxu0 %v3044_v49 }
  0x9d   : > { %v2040_v63 = vsel %vm3744_vm2, %v2035_v50, %v2039_v52 }
  0x9e   : > { %2504 = vmatmul.mubr.bf16.gmra.mrb[56].mxu1 %v3041_v41  ;;  %v3046_v54 = vcombine.high %v2040_v63, %v2068_v59  ;;  %v3045_v55 = vcombine.low %v2040_v63, %v2068_v59 }
  0xa0   : > { %2511 = vmatprep.mubr.bf16.mxu1 %v3046_v54 }
  0xa3   : > { %2447 = vmatmul.mubr.bf16.gmra.mrb[60].mxu0 %v3043_v46 }
  0xa6   : > { %2512 = vmatmul.mubr.bf16.gmra.mrb[60].mxu1 %v3045_v55 }
  0xfa   : > { %v3137_v1 = vpop.f32.mrb[0].mxu0 }
  0xfb   : > { %v3138_v61 = vpop.f32.mrb[1].mxu0  ;;  %v3177_v3 = vpop.f32.mrb[0].mxu1 }
  0xfc   : > { %v3139_v62 = vadd.f32 %v3138_v61, %v3137_v1  ;;  %v3140_v0 = vpop.f32.mrb[2].mxu0  ;;  %v3178_v5 = vpop.f32.mrb[1].mxu1 }
  0xfd   : > { %v3141_v60 = vpop.f32.mrb[3].mxu0  ;;  %v3179_v6 = vadd.f32 %v3178_v5, %v3177_v3  ;;  %v3180_v7 = vpop.f32.mrb[2].mxu1 }
  0xfe   : > { %v3142_v4 = vadd.f32 %v3141_v60, %v3140_v0  ;;  %v3181_v8 = vpop.f32.mrb[3].mxu1 }
  0xff   : > { %v889_v9 = vadd.f32 %v3179_v6, %v3139_v62  ;;  %v3182_v10 = vadd.f32 %v3181_v8, %v3180_v7 }
 0x101   : > { %v892_v57 = vadd.f32 %v3182_v10, %v3142_v4 }
 0x104   : > { %v3143_v12 = vpop.f32.mrb[4].mxu0 }
 0x105   : > { %v3144_v13 = vpop.f32.mrb[5].mxu0 }
 0x106   : > { %v3145_v14 = vadd.f32 %v3144_v13, %v3143_v12  ;;  %v3146_v32 = vpop.f32.mrb[6].mxu0  ;;  %v3183_v17 = vpop.f32.mrb[4].mxu1 }
 0x107   : > { %v3147_v15 = vpop.f32.mrb[7].mxu0  ;;  %v3184_v18 = vpop.f32.mrb[5].mxu1 }
 0x108   : > { %v3148_v11 = vadd.f32 %v3147_v15, %v3146_v32  ;;  %v3185_v42 = vadd.f32 %v3184_v18, %v3183_v17  ;;  %v3186_v19 = vpop.f32.mrb[6].mxu1 }
 0x109   : > { %v3187_v33 = vpop.f32.mrb[7].mxu1 }
 0x10a   : > { %v897_v22 = vadd.f32 %v3185_v42, %v3145_v14  ;;  %v3188_v29 = vadd.f32 %v3187_v33, %v3186_v19 }
 0x10c   : > { %v900_v21 = vadd.f32 %v3188_v29, %v3148_v11 }
 0x10d   : > { %v3149_v43 = vpop.f32.mrb[8].mxu0 }
 0x10e   : > { %v3150_v36 = vpop.f32.mrb[9].mxu0 }
 0x10f   : > { %v3151_v16 = vadd.f32 %v3150_v36, %v3149_v43  ;;  %v3152_v38 = vpop.f32.mrb[10].mxu0  ;;  %v3189_v25 = vpop.f32.mrb[8].mxu1 }
 0x110   : > { %v3153_v20 = vpop.f32.mrb[11].mxu0  ;;  %v3190_v28 = vpop.f32.mrb[9].mxu1 }
 0x111   : > { %v3154_v26 = vadd.f32 %v3153_v20, %v3152_v38  ;;  %v3191_v23 = vadd.f32 %v3190_v28, %v3189_v25  ;;  %v3192_v24 = vpop.f32.mrb[10].mxu1 }
 0x112   : > { %v3193_v27 = vpop.f32.mrb[11].mxu1 }
 0x113   : > { %v905_v37 = vadd.f32 %v3191_v23, %v3151_v16  ;;  %v3194_v45 = vadd.f32 %v3193_v27, %v3192_v24 }
 0x115   : > { %v908_v35 = vadd.f32 %v3194_v45, %v3154_v26  ;;  %v3155_v31 = vpop.f32.mrb[12].mxu0 }
 0x116   : > { %v3156_v34 = vpop.f32.mrb[13].mxu0 }
 0x117   : > { %v3157_v39 = vadd.f32 %v3156_v34, %v3155_v31  ;;  %v3158_v56 = vpop.f32.mrb[14].mxu0 }
 0x118   : > { %v3159_v2 = vpop.f32.mrb[15].mxu0 }
 0x119   : > { %v3195_v40 = vpop.f32.mrb[12].mxu1  ;;  %v3160_v30 = vadd.f32 %v3159_v2, %v3158_v56 }
 0x11a   : > { %v3196_v47 = vpop.f32.mrb[13].mxu1 }
 0x11b   : > { %v3197_v58 = vadd.f32 %v3196_v47, %v3195_v40  ;;  %v3198_v41 = vpop.f32.mrb[14].mxu1 }
 0x11c   : > { %v3199_v44 = vpop.f32.mrb[15].mxu1 }
 0x11d   : > { %v913_v48 = vadd.f32 %v3197_v58, %v3157_v39  ;;  %v3200_v49 = vadd.f32 %v3199_v44, %v3198_v41  ;;  %v3217_v51 = vpop.f32.mrb[16].mxu0 }
 0x11e   : > { %v3218_v52 = vpop.f32.mrb[17].mxu0 }
 0x11f   : > { %v916_v53 = vadd.f32 %v3200_v49, %v3160_v30  ;;  %v3219_v46 = vadd.f32 %v3218_v52, %v3217_v51  ;;  %v3220_v50 = vpop.f32.mrb[18].mxu0 }
 0x120   : > { %v3221_v59 = vpop.f32.mrb[19].mxu0 }
 0x121   : > { %v3257_v63 = vpop.f32.mrb[16].mxu1  ;;  %v1226_v54 = vadd.f32 %v3219_v46, %v889_v9  ;;  %v3222_v55 = vadd.f32 %v3221_v59, %v3220_v50 }
 0x122   : > { %v3258_v1 = vpop.f32.mrb[17].mxu1 }
 0x123   : > { %v3259_v61 = vadd.f32 %v3258_v1, %v3257_v63  ;;  %v3260_v62 = vpop.f32.mrb[18].mxu1  ;;  %v1229_v0 = vadd.f32 %v3222_v55, %v892_v57 }
 0x124   : > { %v3261_v60 = vpop.f32.mrb[19].mxu1 }
 0x125   : > { %v4302_v3 = vadd.f32 %v3259_v61, %v1226_v54  ;;  %v3262_v4 = vadd.f32 %v3261_v60, %v3260_v62  ;;  %v3223_v5 = vpop.f32.mrb[20].mxu0 }
 0x126   : > { %v3224_v6 = vpop.f32.mrb[21].mxu0 }
 0x127   : > { %v4304_v7 = vadd.f32 %v3262_v4, %v1229_v0  ;;  %v3225_v8 = vadd.f32 %v3224_v6, %v3223_v5  ;;  %v3226_v10 = vpop.f32.mrb[22].mxu0 }
 0x128   : > { %v3227_v12 = vpop.f32.mrb[23].mxu0 }
 0x129   : > { %v3263_v13 = vpop.f32.mrb[20].mxu1  ;;  %v1234_v14 = vadd.f32 %v3225_v8, %v897_v22  ;;  %v3228_v32 = vadd.f32 %v3227_v12, %v3226_v10 }
 0x12a   : > { %v3264_v9 = vpop.f32.mrb[21].mxu1 }
 0x12b   : > { %v3265_v15 = vadd.f32 %v3264_v9, %v3263_v13  ;;  %v3266_v17 = vpop.f32.mrb[22].mxu1  ;;  %v1237_v11 = vadd.f32 %v3228_v32, %v900_v21 }
 0x12c   : > { %v3267_v18 = vpop.f32.mrb[23].mxu1 }
 0x12d   : > { %v4306_v57 = vadd.f32 %v3265_v15, %v1234_v14  ;;  %v3268_v42 = vadd.f32 %v3267_v18, %v3266_v17  ;;  %v3229_v19 = vpop.f32.mrb[24].mxu0 }
 0x12e   : > { %v3230_v33 = vpop.f32.mrb[25].mxu0 }
 0x12f   : > { %v4308_v29 = vadd.f32 %v3268_v42, %v1237_v11  ;;  %v3231_v43 = vadd.f32 %v3230_v33, %v3229_v19  ;;  %v3232_v36 = vpop.f32.mrb[26].mxu0 }
 0x130   : > { %v3233_v16 = vpop.f32.mrb[27].mxu0 }
 0x131   : > { %v3269_v38 = vpop.f32.mrb[24].mxu1  ;;  %v1242_v20 = vadd.f32 %v3231_v43, %v905_v37  ;;  %v3234_v25 = vadd.f32 %v3233_v16, %v3232_v36 }
 0x132   : > { %v3270_v22 = vpop.f32.mrb[25].mxu1 }
 0x133   : > { %v3271_v26 = vadd.f32 %v3270_v22, %v3269_v38  ;;  %v3272_v28 = vpop.f32.mrb[26].mxu1  ;;  %v1245_v23 = vadd.f32 %v3234_v25, %v908_v35 }
 0x134   : > { %v3273_v24 = vpop.f32.mrb[27].mxu1 }
 0x135   : > { %v4310_v21 = vadd.f32 %v3271_v26, %v1242_v20  ;;  %v3274_v27 = vadd.f32 %v3273_v24, %v3272_v28  ;;  %v3235_v45 = vpop.f32.mrb[28].mxu0 }
 0x136   : > { %v3236_v31 = vpop.f32.mrb[29].mxu0 }
 0x137   : > { %v4312_v34 = vadd.f32 %v3274_v27, %v1245_v23  ;;  %v3237_v39 = vadd.f32 %v3236_v31, %v3235_v45  ;;  %v3238_v56 = vpop.f32.mrb[30].mxu0 }
 0x138   : > { %v3239_v2 = vpop.f32.mrb[31].mxu0 }
 0x139   : > { %v3275_v40 = vpop.f32.mrb[28].mxu1  ;;  %v1250_v30 = vadd.f32 %v3237_v39, %v913_v48  ;;  %v3240_v47 = vadd.f32 %v3239_v2, %v3238_v56 }
 0x13a   : > { %v3276_v37 = vpop.f32.mrb[29].mxu1 }
 0x13b   : > { %v3277_v58 = vadd.f32 %v3276_v37, %v3275_v40  ;;  %v3278_v41 = vpop.f32.mrb[30].mxu1  ;;  %v1253_v44 = vadd.f32 %v3240_v47, %v916_v53 }
 0x13c   : > { %v3279_v49 = vpop.f32.mrb[31].mxu1 }
 0x13d   : > { %v4314_v35 = vadd.f32 %v3277_v58, %v1250_v30  ;;  %v3280_v51 = vadd.f32 %v3279_v49, %v3278_v41  ;;  %v3297_v52 = vpop.f32.mrb[32].mxu0 }
 0x13e   : > { %v3298_v46 = vpop.f32.mrb[33].mxu0 }
 0x13f   : > { %v1318_v50 = vadd.f32 %v3280_v51, %v1253_v44  ;;  %v3299_v59 = vadd.f32 %v3298_v46, %v3297_v52  ;;  %v3300_v63 = vpop.f32.mrb[34].mxu0 }
 0x140   : > { %v3301_v54 = vpop.f32.mrb[35].mxu0 }
 0x141   : > { %v3337_v55 = vpop.f32.mrb[32].mxu1  ;;  %v3302_v1 = vadd.f32 %v3301_v54, %v3300_v63 }
 0x142   : > { %v3338_v61 = vpop.f32.mrb[33].mxu1 }
 0x143   : > { %v3339_v62 = vadd.f32 %v3338_v61, %v3337_v55  ;;  %v3340_v48 = vpop.f32.mrb[34].mxu1 }
 0x144   : > { %v3341_v0 = vpop.f32.mrb[35].mxu1 }
 0x145   : > { %v1775_v60 = vadd.f32 %v3339_v62, %v3299_v59  ;;  %v3342_v4 = vadd.f32 %v3341_v0, %v3340_v48  ;;  %v3303_v5 = vpop.f32.mrb[36].mxu0 }
 0x146   : > { %v3304_v53 = vpop.f32.mrb[37].mxu0 }
 0x147   : > { %v1805_v6 = vadd.f32 %v1775_v60, %v4302_v3  ;;  %v1778_v8 = vadd.f32 %v3342_v4, %v3302_v1  ;;  %v3305_v10 = vadd.f32 %v3304_v53, %v3303_v5  ;;  %v3306_v12 = vpop.f32.mrb[38].mxu0 }
 0x148   : > { %v3307_v13 = vpop.f32.mrb[39].mxu0 }
 0x149   : > { %v1806_v14 = vadd.f32 %v1778_v8, %v4304_v7  ;;  %v3343_v32 = vpop.f32.mrb[36].mxu1  ;;  %v3308_v9 = vadd.f32 %v3307_v13, %v3306_v12 }
 0x14a   : > { %v3344_v15 = vpop.f32.mrb[37].mxu1 }
 0x14b   : > { %v3345_v17 = vadd.f32 %v3344_v15, %v3343_v32  ;;  %v3346_v11 = vpop.f32.mrb[38].mxu1 }
 0x14c   : > { %v3347_v18 = vpop.f32.mrb[39].mxu1 }
 0x14d   : > { %v1783_v42 = vadd.f32 %v3345_v17, %v3305_v10  ;;  %v3348_v19 = vadd.f32 %v3347_v18, %v3346_v11  ;;  %v3309_v33 = vpop.f32.mrb[40].mxu0 }
 0x14e   : > { %v3310_v43 = vpop.f32.mrb[41].mxu0 }
 0x14f   : > { %v4319_v36 = vadd.f32 %v1783_v42, %v4306_v57  ;;  %v1786_v3 = vadd.f32 %v3348_v19, %v3308_v9  ;;  %v3311_v16 = vadd.f32 %v3310_v43, %v3309_v33  ;;  %v3312_v38 = vpop.f32.mrb[42].mxu0 }
 0x150   : > { %v3313_v20 = vpop.f32.mrb[43].mxu0 }
 0x151   : > { %v4322_v25 = vadd.f32 %v1786_v3, %v4308_v29  ;;  %v3349_v7 = vpop.f32.mrb[40].mxu1  ;;  %v3314_v22 = vadd.f32 %v3313_v20, %v3312_v38 }
 0x152   : > { %v3350_v26 = vpop.f32.mrb[41].mxu1 }
 0x153   : > { %v3351_v28 = vadd.f32 %v3350_v26, %v3349_v7  ;;  %v3352_v23 = vpop.f32.mrb[42].mxu1 }
 0x154   : > { %v3353_v24 = vpop.f32.mrb[43].mxu1 }
 0x155   : > { %v1791_v27 = vadd.f32 %v3351_v28, %v3311_v16  ;;  %v3354_v45 = vadd.f32 %v3353_v24, %v3352_v23  ;;  %v3315_v31 = vpop.f32.mrb[44].mxu0 }
 0x156   : > { %v3316_v39 = vpop.f32.mrb[45].mxu0 }
 0x157   : > { %v4325_v57 = vadd.f32 %v1791_v27, %v4310_v21  ;;  %v1794_v56 = vadd.f32 %v3354_v45, %v3314_v22  ;;  %v3317_v2 = vadd.f32 %v3316_v39, %v3315_v31  ;;  %v3318_v40 = vpop.f32.mrb[46].mxu0 }
 0x158   : > { %v3319_v30 = vpop.f32.mrb[47].mxu0 }
 0x159   : > { %v4328_v29 = vadd.f32 %v1794_v56, %v4312_v34  ;;  %v3355_v47 = vpop.f32.mrb[44].mxu1  ;;  %v3320_v37 = vadd.f32 %v3319_v30, %v3318_v40 }
 0x15a   : > { %v3356_v58 = vpop.f32.mrb[45].mxu1 }
 0x15b   : > { %v3357_v41 = vadd.f32 %v3356_v58, %v3355_v47  ;;  %v3358_v44 = vpop.f32.mrb[46].mxu1 }
 0x15c   : > { %v3359_v49 = vpop.f32.mrb[47].mxu1 }
 0x15d   : > { %v1799_v51 = vadd.f32 %v3357_v41, %v3317_v2  ;;  %v3360_v52 = vadd.f32 %v3359_v49, %v3358_v44  ;;  %v3377_v63 = vpop.f32.mrb[48].mxu0 }
 0x15e   : > { %v3378_v54 = vpop.f32.mrb[49].mxu0 }
 0x15f   : > { %v4331_v46 = vadd.f32 %v1799_v51, %v4314_v35  ;;  %v1802_v21 = vadd.f32 %v3360_v52, %v3320_v37  ;;  %v3379_v55 = vadd.f32 %v3378_v54, %v3377_v63  ;;  %v3380_v1 = vpop.f32.mrb[50].mxu0 }
 0x160   : > { %v3381_v34 = vpop.f32.mrb[51].mxu0 }
 0x161   : > { %v4333_v59 = vadd.f32 %v1802_v21, %v1318_v50  ;;  %v3417_v61 = vpop.f32.mrb[48].mxu1  ;;  %v3382_v62 = vadd.f32 %v3381_v34, %v3380_v1 }
 0x162   : > { %v3418_v48 = vpop.f32.mrb[49].mxu1 }
 0x163   : > { %v3419_v0 = vadd.f32 %v3418_v48, %v3417_v61  ;;  %v3420_v60 = vpop.f32.mrb[50].mxu1 }
 0x164   : > { %v3421_v4 = vpop.f32.mrb[51].mxu1 }
 0x165   : > { %v2490_v5 = vadd.f32 %v3419_v0, %v3379_v55  ;;  %v3422_v53 = vadd.f32 %v3421_v4, %v3420_v60 }
 0x166   : > { %v3383_v10 = vpop.f32.mrb[52].mxu0 }
 0x167   : > { %v2520_v8 = vadd.f32 %v2490_v5, %v1805_v6  ;;  %v2493_v35 = vadd.f32 %v3422_v53, %v3382_v62  ;;  %v3384_v12 = vpop.f32.mrb[53].mxu0 }
 0x168   : > { %v3385_v32 = vadd.f32 %v3384_v12, %v3383_v10  ;;  %v3386_v9 = vpop.f32.mrb[54].mxu0 }
 0x169   : > { %v2528_v50 = vmul.f32 0.2, %v2520_v8  ;;  %v2521_v13 = vadd.f32 %v2493_v35, %v1806_v14  ;;  %v3387_v15 = vpop.f32.mrb[55].mxu0  ;;  %v3423_v18 = vpop.f32.mrb[52].mxu1 }
 0x16a   : > { %v3388_v11 = vadd.f32 %v3387_v15, %v3386_v9  ;;  %v3424_v33 = vpop.f32.mrb[53].mxu1 }
 0x16b   : > { %v2529_v17 = vmul.f32 0.2, %v2521_v13  ;;  %v2536_v42 = vmax.f32 %v2520_v8, %v2528_v50  ;;  %v3425_v6 = vadd.f32 %v3424_v33, %v3423_v18  ;;  %v3426_v43 = vpop.f32.mrb[54].mxu1 }
 0x16c   : > { %v3427_v14 = vpop.f32.mrb[55].mxu1 }
 0x16d   : > { %v2537_v19 = vmax.f32 %v2521_v13, %v2529_v17  ;;  %v2498_v16 = vadd.f32 %v3425_v6, %v3385_v32  ;;  %v3428_v38 = vadd.f32 %v3427_v14, %v3426_v43 }
 0x16e   : > { %v3389_v20 = vpop.f32.mrb[56].mxu0 }
 0x16f   : > { %v3101_v3 = vpack.c.bf16 %v2537_v19, %v2536_v42  ;;  %v2522_v7 = vadd.f32 %v2498_v16, %v4319_v36  ;;  %v2501_v22 = vadd.f32 %v3428_v38, %v3388_v11  ;;  %v3390_v26 = vpop.f32.mrb[57].mxu0 }
 0x170   : > { %v3391_v28 = vadd.f32 %v3390_v26, %v3389_v20  ;;  %v3392_v23 = vpop.f32.mrb[58].mxu0 }
 0x171   : > { %3102 = vst [vmem:[%s4339_s20] sm:$0xff] %v3101_v3   ;;  %v2530_v24 = vmul.f32 0.2, %v2522_v7  ;;  %v2523_v27 = vadd.f32 %v2501_v22, %v4322_v25  ;;  %v3393_v45 = vpop.f32.mrb[59].mxu0  ;;  %v3429_v56 = vpop.f32.mrb[56].mxu1 }
 0x172   : > { %v3394_v31 = vadd.f32 %v3393_v45, %v3392_v23  ;;  %v3430_v2 = vpop.f32.mrb[57].mxu1 }
 0x173   : > { %v2531_v39 = vmul.f32 0.2, %v2523_v27  ;;  %v2538_v40 = vmax.f32 %v2522_v7, %v2530_v24  ;;  %v3431_v47 = vadd.f32 %v3430_v2, %v3429_v56  ;;  %v3432_v37 = vpop.f32.mrb[58].mxu1 }
 0x174   : > { %v3433_v58 = vpop.f32.mrb[59].mxu1 }
 0x175   : > { %v2539_v30 = vmax.f32 %v2523_v27, %v2531_v39  ;;  %v2506_v44 = vadd.f32 %v3431_v47, %v3391_v28  ;;  %v3434_v49 = vadd.f32 %v3433_v58, %v3432_v37 }
 0x176   : > { %v3395_v41 = vpop.f32.mrb[60].mxu0 }
 0x177   : > { %v3106_v36 = vpack.c.bf16 %v2539_v30, %v2538_v40  ;;  %v3396_v51 = vpop.f32.mrb[61].mxu0  ;;  %v2524_v25 = vadd.f32 %v2506_v44, %v4325_v57  ;;  %v2509_v63 = vadd.f32 %v3434_v49, %v3394_v31 }
 0x178   : > { %v3397_v52 = vadd.f32 %v3396_v51, %v3395_v41  ;;  %v3398_v21 = vpop.f32.mrb[62].mxu0 }
 0x179   : > { %3118 = vst [vmem:[%s4339_s20 + $0x8] sm:$0xff] %v3106_v36   ;;  %v3399_v54 = vpop.f32.mrb[63].mxu0  ;;  %v2532_v1 = vmul.f32 0.2, %v2524_v25  ;;  %v2525_v34 = vadd.f32 %v2509_v63, %v4328_v29  ;;  %v3435_v61 = vpop.f32.mrb[60].mxu1 }
 0x17a   : > { %v3400_v55 = vadd.f32 %v3399_v54, %v3398_v21  ;;  %v3436_v62 = vpop.f32.mrb[61].mxu1 }
 0x17b   : > { %v2533_v48 = vmul.f32 0.2, %v2525_v34  ;;  %v3437_v0 = vadd.f32 %v3436_v62, %v3435_v61  ;;  %v3438_v60 = vpop.f32.mrb[62].mxu1  ;;  %v2540_v5 = vmax.f32 %v2524_v25, %v2532_v1 }
 0x17c   : > { %v3439_v4 = vpop.f32.mrb[63].mxu1 }
 0x17d   : > { %v2541_v53 = vmax.f32 %v2525_v34, %v2533_v48  ;;  %v2514_v8 = vadd.f32 %v3437_v0, %v3397_v52  ;;  %v3440_v35 = vadd.f32 %v3439_v4, %v3438_v60 }
 0x17f   : > { %v3111_v10 = vpack.c.bf16 %v2541_v53, %v2540_v5  ;;  %v2526_v57 = vadd.f32 %v2514_v8, %v4331_v46  ;;  %v2517_v12 = vadd.f32 %v3440_v35, %v3400_v55 }
 0x181   : > { %3119 = vst [vmem:[%s4339_s20 + $0x10] sm:$0xff] %v3111_v10   ;;  %v2534_v50 = vmul.f32 0.2, %v2526_v57  ;;  %v2527_v13 = vadd.f32 %v2517_v12, %v4333_v59 }
 0x183   : > { %v2535_v29 = vmul.f32 0.2, %v2527_v13  ;;  %v2542_v32 = vmax.f32 %v2526_v57, %v2534_v50 }
 0x185   : > { %v2543_v9 = vmax.f32 %v2527_v13, %v2535_v29 }
 0x187   : > { %v3116_v15 = vpack.c.bf16 %v2543_v9, %v2542_v32 }
 0x189   : > { %3120 = vst [vmem:[%s4339_s20 + $0x18] sm:$0xff] %v3116_v15  }
 0x18a PF: > { %s12_s9 = sadd.s32 1, %s3584_s9  }
 0x18b   : > { %p9_p4 = scmp.ge.s32.totalorder %s12_s9, 4  }
 0x18d   :  { %11 = sbr.rel (!%p9_p4) target bundleno = 1 (0x1), region = 62 }

// kernel: regularised_encoder_forward.9
= control target key start
LH: loop header
LB: loop body
LE: loop exit
PB: predicated region body
PF: predicated region fallthrough
CT: control target
= control target key end

     0   :  { %v648_v40 = vmov 0.0|0.0   ;;  %vm649_vm0 = vmmov 0   ;;  %v650_v51 = vmov 0.0   ;;  %vm387_vm1 = vcmask 523264   ;;  %s818_s1 = inlined_call_operand.vmem [shape: bf16[512,64], index: 1, kind: input, shape index: {}]   ;;  %s819_s0 = inlined_call_operand.vmem [shape: bf16[8,512], index: 0, kind: input, shape index: {}]   ;;  %s820_s2 = inlined_call_operand.vmem [shape: f32[64,128], index: 2, kind: input, shape index: {}]   ;;  %s821_s3 = inlined_call_operand.vmem [shape: f32[1,128], index: 3, kind: input, shape index: {}]   ;;  %s822_s4 = inlined_call_operand.vmem [shape: f32[8,128], index: 4, kind: output, shape index: {}]  }
   0x1   :  { %v608_v0 = vld [vmem:[%s818_s1 + $0x40] sm:$0xff]   ;;  %v612_v4 = vld [vmem:[%s818_s1 + $0x48] sm:$0xff]   ;;  %v616_v8 = vld [vmem:[%s818_s1 + $0x50] sm:$0xff]  }
   0x2   :  { %v609_v1 = vld [vmem:[%s818_s1 + $0xc0] sm:$0xff]   ;;  %521 = vmatprep.subr.bf16.mxu0 %v608_v0  ;;  %v613_v5 = vld [vmem:[%s818_s1 + $0xc8] sm:$0xff]   ;;  %v617_v9 = vld [vmem:[%s818_s1 + $0xd0] sm:$0xff]  }
   0x3   :  { %v610_v2 = vld [vmem:[%s818_s1] sm:$0xff]   ;;  %543 = vmatprep.subr.bf16.mxu1 %v609_v1  ;;  %v614_v6 = vld [vmem:[%s818_s1 + $0x8] sm:$0xff]   ;;  %v618_v10 = vld [vmem:[%s818_s1 + $0x10] sm:$0xff]   ;;  %v461_v1 = vlaneseq }
   0x4   :  { %v611_v3 = vld [vmem:[%s818_s1 + $0x80] sm:$0xff]   ;;  %522 = vmatpush3.bf16.msra.mxu0 %v610_v2  ;;  %v615_v7 = vld [vmem:[%s818_s1 + $0x88] sm:$0xff]   ;;  %v619_v11 = vld [vmem:[%s818_s1 + $0x90] sm:$0xff]  }
   0x5   :  { %544 = vmatpush3.bf16.msra.mxu1 %v611_v3  ;;  %523 = vmatprep.subr.bf16.mxu0 %v612_v4  ;;  %v620_v12 = vld [vmem:[%s818_s1 + $0x58] sm:$0xff]   ;;  %v624_v16 = vld [vmem:[%s818_s1 + $0x60] sm:$0xff]   ;;  %v628_v20 = vld [vmem:[%s818_s1 + $0x68] sm:$0xff]   ;;  %v462_v2 = vand.u32 127, %v461_v1 }
   0x6   :  { %545 = vmatprep.subr.bf16.mxu1 %v613_v5  ;;  %v621_v13 = vld [vmem:[%s818_s1 + $0xd8] sm:$0xff]   ;;  %v625_v17 = vld [vmem:[%s818_s1 + $0xe0] sm:$0xff]   ;;  %v629_v21 = vld [vmem:[%s818_s1 + $0xe8] sm:$0xff]  }
   0x7   :  { %v622_v14 = vld [vmem:[%s818_s1 + $0x18] sm:$0xff]   ;;  %v626_v18 = vld [vmem:[%s818_s1 + $0x20] sm:$0xff]   ;;  %v630_v22 = vld [vmem:[%s818_s1 + $0x28] sm:$0xff]   ;;  %vm463_vm2 = vcmp.ge.s32.totalorder %v462_v2, 32  ;;  %vm464_vm3 = vcmp.lt.s32.totalorder %v462_v2, 42 }
   0x8   :  { %524 = vmatpush3.bf16.msra.mxu0 %v614_v6  ;;  %v623_v15 = vld [vmem:[%s818_s1 + $0x98] sm:$0xff]   ;;  %v627_v19 = vld [vmem:[%s818_s1 + $0xa0] sm:$0xff]   ;;  %v631_v23 = vld [vmem:[%s818_s1 + $0xa8] sm:$0xff]  }
   0x9   :  { %546 = vmatpush3.bf16.msra.mxu1 %v615_v7  ;;  %525 = vmatprep.subr.bf16.mxu0 %v616_v8  ;;  %v632_v24 = vld [vmem:[%s818_s1 + $0x70] sm:$0xff]   ;;  %v636_v28 = vld [vmem:[%s818_s1 + $0x78] sm:$0xff]   ;;  %v18_v32 = vld [vmem:[%s819_s0] sm:$0xff] }
   0xa   :  { %547 = vmatprep.subr.bf16.mxu1 %v617_v9  ;;  %v633_v25 = vld [vmem:[%s818_s1 + $0xf0] sm:$0xff]   ;;  %v637_v29 = vld [vmem:[%s818_s1 + $0xf8] sm:$0xff]   ;;  %v19_v33 = vld [vmem:[%s819_s0 + $0x8] sm:$0xff]  ;;  %v483_v35 = vcombine.low %v18_v32, %v18_v32  ;;  %v484_v36 = vcombine.high %v18_v32, %v18_v32 }
   0xb   :  { %v634_v26 = vld [vmem:[%s818_s1 + $0x30] sm:$0xff]   ;;  %v638_v30 = vld [vmem:[%s818_s1 + $0x38] sm:$0xff]   ;;  %v372_v34 = vld [vmem:[%s820_s2] sm:$0xff]  ;;  %v485_v37 = vcombine.low %v19_v33, %v19_v33  ;;  %v486_v38 = vcombine.high %v19_v33, %v19_v33 }
   0xc   :  { %526 = vmatpush3.bf16.msra.mxu0 %v618_v10  ;;  %v635_v27 = vld [vmem:[%s818_s1 + $0xb0] sm:$0xff]   ;;  %v639_v31 = vld [vmem:[%s818_s1 + $0xb8] sm:$0xff]   ;;  %v373_v39 = vld [vmem:[%s820_s2 + $0x8] sm:$0xff]  ;;  %322 = vmatprep.mubr.bf16.mxu0 %v484_v36 }
   0xd   :  { %548 = vmatpush3.bf16.msra.mxu1 %v619_v11  ;;  %527 = vmatprep.subr.bf16.mxu0 %v620_v12  ;;  %v594_v41 = vpack.c.bf16 %v373_v39, %v372_v34  ;;  %v374_v42 = vld [vmem:[%s820_s2 + $0x10] sm:$0xff]  ;;  %v375_v43 = vld [vmem:[%s820_s2 + $0x18] sm:$0xff]  ;;  %v376_v45 = vld [vmem:[%s820_s2 + $0x20] sm:$0xff] }
   0xe   :  { %549 = vmatprep.subr.bf16.mxu1 %v621_v13  ;;  %362 = vmatprep.mubr.bf16.mxu1 %v486_v38  ;;  %v597_v44 = vpack.c.bf16 %v375_v43, %v374_v42  ;;  %v377_v46 = vld [vmem:[%s820_s2 + $0x28] sm:$0xff]  ;;  %v378_v48 = vld [vmem:[%s820_s2 + $0x30] sm:$0xff]  ;;  %v379_v49 = vld [vmem:[%s820_s2 + $0x38] sm:$0xff] }
   0xf   :  { %v600_v47 = vpack.c.bf16 %v377_v46, %v376_v45  ;;  %v603_v50 = vpack.c.bf16 %v379_v49, %v378_v48  ;;  %v519_v3 = vld [vmem:[%s821_s3] ss:$0 sm:$0xff]  ;;  %vm805_vm4 = vmand %vm463_vm2, %vm464_vm3 }
  0x10   :  { %528 = vmatpush3.bf16.msra.mxu0 %v622_v14 }
  0x11   :  { %550 = vmatpush3.bf16.msra.mxu1 %v623_v15  ;;  %529 = vmatprep.subr.bf16.mxu0 %v624_v16 }
  0x12   :  { %551 = vmatprep.subr.bf16.mxu1 %v625_v17 }
  0x14   :  { %530 = vmatpush3.bf16.msra.mxu0 %v626_v18 }
  0x15   :  { %552 = vmatpush3.bf16.msra.mxu1 %v627_v19  ;;  %531 = vmatprep.subr.bf16.mxu0 %v628_v20 }
  0x16   :  { %553 = vmatprep.subr.bf16.mxu1 %v629_v21 }
  0x18   :  { %532 = vmatpush3.bf16.msra.mxu0 %v630_v22 }
  0x19   :  { %554 = vmatpush3.bf16.msra.mxu1 %v631_v23  ;;  %533 = vmatprep.subr.bf16.mxu0 %v632_v24 }
  0x1a   :  { %555 = vmatprep.subr.bf16.mxu1 %v633_v25 }
  0x1c   :  { %534 = vmatpush3.bf16.msra.mxu0 %v634_v26 }
  0x1d   :  { %556 = vmatpush3.bf16.msra.mxu1 %v635_v27  ;;  %535 = vmatprep.subr.bf16.mxu0 %v636_v28 }
  0x1e   :  { %557 = vmatprep.subr.bf16.mxu1 %v637_v29 }
  0x20   :  { %536 = vmatpush3.bf16.msra.mxu0 %v638_v30 }
  0x21   :  { %558 = vmatpush3.bf16.msra.mxu1 %v639_v31  ;;  %593 = vmatprep.subr.bf16.mxu0 %v648_v40 }
  0x23   :  { %323 = vmatmul.mubr.bf16.vlgmr.msra.gmra.mrb[0].mxu0 %v483_v35 }
  0x24   :  { %363 = vmatmul.mubr.bf16.vlgmr.msra.gmra.mrb[0].mxu1 %v485_v37  ;;  %595 = vmatpush3.bf16.msra.mxu0 %v594_v41 }
  0x25   :  { %596 = vmatprep.subr.bf16.mxu0 %v648_v40  ;;  %590 = vmatprep.mubr.msk.f32.mxu0 %vm649_vm0, %v650_v51 }
  0x28   :  { %598 = vmatpush3.bf16.msra.mxu0 %v597_v44 }
  0x29   :  { %599 = vmatprep.subr.bf16.mxu0 %v648_v40 }
  0x2c   :  { %601 = vmatpush3.bf16.msra.mxu0 %v600_v47 }
  0x2d   :  { %602 = vmatprep.subr.bf16.mxu0 %v648_v40 }
  0x30   :  { %604 = vmatpush3.bf16.msra.mxu0 %v603_v50 }
  0xf6   :  { %v537_v52 = vpop.f32.mrb[0].mxu0 }
  0xf7   :  { %v559_v53 = vpop.f32.mrb[0].mxu1  ;;  %v538_v54 = vpop.f32.mrb[1].mxu0 }
  0xf8   :  { %v560_v55 = vpop.f32.mrb[1].mxu1  ;;  %v539_v56 = vadd.f32 %v538_v54, %v537_v52  ;;  %v540_v58 = vpop.f32.mrb[2].mxu0 }
  0xf9   :  { %v561_v57 = vadd.f32 %v560_v55, %v559_v53  ;;  %v562_v59 = vpop.f32.mrb[2].mxu1  ;;  %v541_v60 = vpop.f32.mrb[3].mxu0 }
  0xfa   :  { %v563_v61 = vpop.f32.mrb[3].mxu1 }
  0xfb   :  { %v365_v62 = vadd.f32 %v561_v57, %v539_v56 }
  0xfd   :  { %v370_v63 = vmul.f32 0.2, %v365_v62 }
  0xff   :  { %v371_v0 = vmax.f32 %v365_v62, %v370_v63 }
 0x101   :  { %591 = vmatmul.mubr.msk.f32.vlgmr.msra.gmra.mrb[4].mxu0 %vm387_vm1, %v371_v0 }
 0x1d4   :  { %v457_v4 = vpop.f32.mrb[4].mxu0 }
 0x1d5   :  { %v458_v6 = vadd.f32 %v519_v3, %v457_v4  ;;  %v592_v7 = vpop.f32.mrb[5].mxu0 }
 0x1d7   :  { %v466_v8 = vsel %vm805_vm4, %v458_v6, -1e+30 }
 0x1d8   :  { %467 = vmax.xlane.f32.xlu0 %v466_v8 }
 0x265   :  { %v468_v9 = vpop.xlane.xlu0 %467 }
 0x266   :  { %v469_v10 = vsub.f32 %v466_v8, %v468_v9 }
 0x268   :  { %v470_v11 = vmul.f32 1.442695, %v469_v10 }
 0x26a   :  { %644 = vpow2.f32 %v470_v11 }
 0x274   :  { %v645_v12 = vpop.eup %644 }
 0x275   :  { %v472_v13 = vsel %vm805_vm4, %v645_v12, 0.0 }
 0x276   :  { %473 = vadd.xlane.f32.xlu0 %v472_v13 }
 0x303   :  { %v474_v14 = vpop.xlane.xlu0 %473 }
 0x304   :  { %646 = vrcp.f32 %v474_v14 }
 0x30e   :  { %v647_v15 = vpop.eup %646 }
 0x30f   :  { %v476_v16 = vmul.f32 %v647_v15, %v472_v13 }
 0x311   :  { %v477_v17 = vsel %vm805_vm4, %v476_v16, %v458_v6 }
 0x312   :  { %478 = vst [vmem:[%s822_s4] sm:$0xff] %v477_v17 }

// kernel: regularised_encoder_forward.7
= control target key start
LH: loop header
LB: loop body
LE: loop exit
PB: predicated region body
PF: predicated region fallthrough
CT: control target
= control target key end

     0   :  { %s2899_s9 = smov 0   ;;  %s3418_s0 = inlined_call_operand.vmem [shape: bf16[2,5,5,512], index: 0, kind: input, shape index: {}]   ;;  %s3419_s1 = inlined_call_operand.vmem [shape: bf16[2,2,512,128], index: 1, kind: input, shape index: {}]   ;;  %s3420_s2 = inlined_call_operand.vmem [shape: bf16[2,16,128], index: 2, kind: output, shape index: {}]  }
   0x1 LB: > { %s2165_s10 = sadd.s32 4294967295, %s2881_s9   ;;  %p2169_p0 = scmp.ge.s32.totalorder %s2881_s9, 1  ;;  %s2881_s9 = sphi %s2899_s9, %s12_s9  }
   0x2   : > { %p112_p1 = scmp.lt.s32.totalorder %s2881_s9, 3 }
   0x4   : > { %p113_p2 = pnand %p2169_p0, %p112_p1 }
   0x5   : > { %v2747_v0 = vld [vmem:[%s3419_s1 + $0x140] sm:$0xff] (!%p113_p2)   ;;  %v2751_v4 = vld [vmem:[%s3419_s1 + $0x148] sm:$0xff] (!%p113_p2)   ;;  %v2755_v8 = vld [vmem:[%s3419_s1 + $0x150] sm:$0xff] (!%p113_p2)   ;;  %p134_p3 = scmp.lt.s32.totalorder (!%p113_p2), %s2165_s10, 1  ;;  %vm365_vm0 = vsmask.f32 (!%p113_p2), 1280  ;;  %v500_v55 = vlaneseq (!%p113_p2) }
   0x6   : > { %116 = sbr.rel (%p113_p2) target bundleno = 368 (0x170), region = 28  ;;  %v2748_v1 = vld [vmem:[%s3419_s1 + $0x1c0] sm:$0xff] (!%p113_p2)   ;;  %2561 = vmatprep.subr.bf16.mxu0 (!%p113_p2), %v2747_v0  ;;  %v2752_v5 = vld [vmem:[%s3419_s1 + $0x1c8] sm:$0xff] (!%p113_p2)   ;;  %v2756_v9 = vld [vmem:[%s3419_s1 + $0x1d0] sm:$0xff] (!%p113_p2)   ;;  %vm366_vm1 = vsmask.f32 (!%p113_p2), 3336 }
   0x7   : > { %v2749_v2 = vld [vmem:[%s3419_s1 + $0x100] sm:$0xff] (!%p113_p2)   ;;  %2583 = vmatprep.subr.bf16.mxu1 (!%p113_p2), %v2748_v1  ;;  %v2753_v6 = vld [vmem:[%s3419_s1 + $0x108] sm:$0xff] (!%p113_p2)   ;;  %v2757_v10 = vld [vmem:[%s3419_s1 + $0x110] sm:$0xff] (!%p113_p2)   ;;  %vm368_vm2 = vsmask.f32 (!%p113_p2), 5392 }
   0x8   : > { %v2750_v3 = vld [vmem:[%s3419_s1 + $0x180] sm:$0xff] (!%p113_p2)   ;;  %2562 = vmatpush3.bf16.msra.mxu0 (!%p113_p2), %v2749_v2  ;;  %v2754_v7 = vld [vmem:[%s3419_s1 + $0x188] sm:$0xff] (!%p113_p2)   ;;  %v2758_v11 = vld [vmem:[%s3419_s1 + $0x190] sm:$0xff] (!%p113_p2)   ;;  %vm370_vm3 = vsmask.f32 (!%p113_p2), 7448 }
   0x9   : > { %2584 = vmatpush3.bf16.msra.mxu1 (!%p113_p2), %v2750_v3  ;;  %2563 = vmatprep.subr.bf16.mxu0 (!%p113_p2), %v2751_v4  ;;  %v2759_v12 = vld [vmem:[%s3419_s1 + $0x158] sm:$0xff] (!%p113_p2)   ;;  %v2763_v16 = vld [vmem:[%s3419_s1 + $0x160] sm:$0xff] (!%p113_p2)   ;;  %v2767_v20 = vld [vmem:[%s3419_s1 + $0x168] sm:$0xff] (!%p113_p2)  }
   0xa   : > { %2585 = vmatprep.subr.bf16.mxu1 (!%p113_p2), %v2752_v5  ;;  %v2760_v13 = vld [vmem:[%s3419_s1 + $0x1d8] sm:$0xff] (!%p113_p2)   ;;  %v2764_v17 = vld [vmem:[%s3419_s1 + $0x1e0] sm:$0xff] (!%p113_p2)   ;;  %v2768_v21 = vld [vmem:[%s3419_s1 + $0x1e8] sm:$0xff] (!%p113_p2)  }
   0xb   : > { %v2761_v14 = vld [vmem:[%s3419_s1 + $0x118] sm:$0xff] (!%p113_p2)   ;;  %v2765_v18 = vld [vmem:[%s3419_s1 + $0x120] sm:$0xff] (!%p113_p2)   ;;  %v2769_v22 = vld [vmem:[%s3419_s1 + $0x128] sm:$0xff] (!%p113_p2)  }
   0xc   : > { %2564 = vmatpush3.bf16.msra.mxu0 (!%p113_p2), %v2753_v6  ;;  %v2762_v15 = vld [vmem:[%s3419_s1 + $0x198] sm:$0xff] (!%p113_p2)   ;;  %v2766_v19 = vld [vmem:[%s3419_s1 + $0x1a0] sm:$0xff] (!%p113_p2)   ;;  %v2770_v23 = vld [vmem:[%s3419_s1 + $0x1a8] sm:$0xff] (!%p113_p2)  }
   0xd   : > { %2586 = vmatpush3.bf16.msra.mxu1 %v2754_v7  ;;  %2565 = vmatprep.subr.bf16.mxu0 %v2755_v8  ;;  %s3426_s10 = smov (!%p134_p3, %s2165_s10), 1  ;;  %v2771_v24 = vld [vmem:[%s3419_s1 + $0x170] sm:$0xff]   ;;  %v2775_v28 = vld [vmem:[%s3419_s1 + $0x178] sm:$0xff]   ;;  %vm367_vm4 = vmor %vm365_vm0, %vm366_vm1 }
   0xe   : > { %2587 = vmatprep.subr.bf16.mxu1 %v2756_v9  ;;  %v2772_v25 = vld [vmem:[%s3419_s1 + $0x1f0] sm:$0xff]   ;;  %s2737_s11 = smul.u32 80, %s3426_s10  ;;  %v2776_v29 = vld [vmem:[%s3419_s1 + $0x1f8] sm:$0xff]   ;;  %v2779_v45 = vld [vmem:[%s3419_s1 + $0x40] sm:$0xff]  }
   0xf   : > { %v2773_v26 = vld [vmem:[%s3419_s1 + $0x130] sm:$0xff]   ;;  %v2777_v30 = vld [vmem:[%s3419_s1 + $0x138] sm:$0xff]   ;;  %vm3027_vm5 = vmor %vm367_vm4, %vm368_vm2 }
  0x10   : > { %2566 = vmatpush3.bf16.msra.mxu0 %v2757_v10  ;;  %v2774_v27 = vld [vmem:[%s3419_s1 + $0x1b0] sm:$0xff]   ;;  %s3007_s22 = scalar_lea.vmem %s3418_s0, %s2737_s11  ;;  %v2778_v31 = vld [vmem:[%s3419_s1 + $0x1b8] sm:$0xff]   ;;  %v2780_v60 = vld [vmem:[%s3419_s1 + $0xc0] sm:$0xff]  }
  0x11   : > { %2588 = vmatpush3.bf16.msra.mxu1 %v2758_v11  ;;  %2567 = vmatprep.subr.bf16.mxu0 %v2759_v12  ;;  %v2181_v32 = vld.sshfl [vmem:[%s3007_s22] sm:$0x5f pattern:$0x76325410]  ;;  %vm3037_vm6 = vmor %vm3027_vm5, %vm370_vm3  ;;  %v2789_v52 = vld [vmem:[%s3419_s1 + $0x10] sm:$0xff]  }
  0x12   : > { %2589 = vmatprep.subr.bf16.mxu1 %v2760_v13  ;;  %v2182_v33 = vld.sshfl [vmem:[%s3007_s22 + $0x8] sm:$0x5f pattern:$0x76325410] }
  0x13   : > { %v2183_v34 = vld.sshfl [vmem:[%s3007_s22 + $0x10] sm:$0x5f pattern:$0x76325410]  ;;  %v315_v35 = vcombine.low %v2181_v32, %v2182_v33  ;;  %v316_v36 = vcombine.high %v2181_v32, %v2182_v33 }
  0x14   : > { %2568 = vmatpush3.bf16.msra.mxu0 %v2761_v14  ;;  %v2184_v37 = vld.sshfl [vmem:[%s3007_s22 + $0x18] sm:$0x5f pattern:$0x76325410] }
  0x15   : > { %2590 = vmatpush3.bf16.msra.mxu1 %v2762_v15  ;;  %2569 = vmatprep.subr.bf16.mxu0 %v2763_v16  ;;  %v2185_v38 = vld.sshfl [vmem:[%s3007_s22 + $0x20] sm:$0x5f pattern:$0x76325410]  ;;  %v331_v39 = vcombine.low %v2183_v34, %v2184_v37  ;;  %v373_v40 = vshrl.u32 %v315_v35, 16  ;;  %v376_v41 = vshll.u32 %v315_v35, 16  ;;  %v332_v43 = vcombine.high %v2183_v34, %v2184_v37 }
  0x16   : > { %2591 = vmatprep.subr.bf16.mxu1 %v2764_v17  ;;  %v2186_v42 = vld.sshfl [vmem:[%s3007_s22 + $0x28] sm:$0x5f pattern:$0x76325410]  ;;  %v382_v44 = vshll.u32 %v316_v36, 16 }
  0x17   : > { %v2187_v46 = vld.sshfl [vmem:[%s3007_s22 + $0x30] sm:$0x5f pattern:$0x76325410]  ;;  %v347_v47 = vcombine.low %v2185_v38, %v2186_v42  ;;  %v348_v48 = vcombine.high %v2185_v38, %v2186_v42  ;;  %v375_v49 = vrot.slane %v373_v40, 6  ;;  %v378_v50 = vrot.slane %v376_v41, 7 }
  0x18   : > { %2570 = vmatpush3.bf16.msra.mxu0 %v2765_v18  ;;  %v2188_v51 = vld.sshfl [vmem:[%s3007_s22 + $0x38] sm:$0x5f pattern:$0x76325410]  ;;  %v384_v53 = vrot.slane %v382_v44, 7  ;;  %v387_v54 = vshrl.u32 %v331_v39, 16 }
  0x19   : > { %2592 = vmatpush3.bf16.msra.mxu1 %v2766_v19  ;;  %2571 = vmatprep.subr.bf16.mxu0 %v2767_v20  ;;  %v363_v56 = vcombine.low %v2187_v46, %v2188_v51  ;;  %v364_v57 = vcombine.high %v2187_v46, %v2188_v51  ;;  %v379_v58 = vor.u32 %v378_v50, %v375_v49  ;;  %v390_v59 = vshll.u32 %v331_v39, 16  ;;  %v2781_v40 = vld [vmem:[%s3419_s1] sm:$0xff]   ;;  %v2783_v46 = vld [vmem:[%s3419_s1 + $0x48] sm:$0xff]   ;;  %v2787_v50 = vld [vmem:[%s3419_s1 + $0x50] sm:$0xff]  }
  0x1a   : > { %2593 = vmatprep.subr.bf16.mxu1 %v2768_v21  ;;  %v389_v61 = vrot.slane %v387_v54, 6  ;;  %v396_v62 = vshll.u32 %v332_v43, 16  ;;  %v401_v63 = vshrl.u32 %v347_v47, 16  ;;  %v404_v0 = vshll.u32 %v347_v47, 16  ;;  %v2782_v41 = vld [vmem:[%s3419_s1 + $0x80] sm:$0xff]   ;;  %v2784_v47 = vld [vmem:[%s3419_s1 + $0xc8] sm:$0xff]  }
  0x1b   : > { %v380_v1 = vrot.slane %v379_v58, 2  ;;  %v392_v2 = vrot.slane %v390_v59, 7  ;;  %v410_v3 = vshll.u32 %v348_v48, 16  ;;  %v415_v4 = vshrl.u32 %v363_v56, 16  ;;  %v2785_v48 = vld [vmem:[%s3419_s1 + $0x8] sm:$0xff]   ;;  %v2788_v51 = vld [vmem:[%s3419_s1 + $0xd0] sm:$0xff]  }
  0x1c   : > { %2572 = vmatpush3.bf16.msra.mxu0 %v2769_v22  ;;  %v403_v6 = vrot.slane %v401_v63, 6  ;;  %v406_v7 = vrot.slane %v404_v0, 7  ;;  %v418_v8 = vshll.u32 %v363_v56, 16  ;;  %v398_v10 = vrot.slane %v396_v62, 7  ;;  %v2786_v49 = vld [vmem:[%s3419_s1 + $0x88] sm:$0xff]   ;;  %v2791_v54 = vld [vmem:[%s3419_s1 + $0x58] sm:$0xff]  }
  0x1d   : > { %2594 = vmatpush3.bf16.msra.mxu1 %v2770_v23  ;;  %2573 = vmatprep.subr.bf16.mxu0 %v2771_v24  ;;  %v393_v9 = vor.u32 %v392_v2, %v389_v61  ;;  %v412_v11 = vrot.slane %v410_v3, 7  ;;  %v417_v12 = vrot.slane %v415_v4, 6  ;;  %v424_v15 = vshll.u32 %v364_v57, 16  ;;  %v2793_v56 = vld [vmem:[%s3419_s1 + $0x18] sm:$0xff]   ;;  %v2795_v58 = vld [vmem:[%s3419_s1 + $0x60] sm:$0xff]   ;;  %v2799_v62 = vld [vmem:[%s3419_s1 + $0x68] sm:$0xff]  }
  0x1e   : > { %2595 = vmatprep.subr.bf16.mxu1 %v2772_v25  ;;  %v407_v13 = vor.u32 %v406_v7, %v403_v6  ;;  %v420_v14 = vrot.slane %v418_v8, 7  ;;  %v385_v16 = vsel %vm3037_vm6, %v380_v1, %v384_v53  ;;  %v2883_v18 = vmov 1983009808   ;;  %v2790_v53 = vld [vmem:[%s3419_s1 + $0x90] sm:$0xff]   ;;  %v2794_v57 = vld [vmem:[%s3419_s1 + $0x98] sm:$0xff]   ;;  %v2796_v59 = vld [vmem:[%s3419_s1 + $0xe0] sm:$0xff]  }
  0x1f   : > { %v394_v17 = vrot.slane %v393_v9, 2  ;;  %v498_v19 = vunpack.c.l.s4 %v2883_v18  ;;  %v501_v20 = vshrl.u32 %v500_v55, 7  ;;  %v426_v23 = vrot.slane %v424_v15, 7  ;;  %v2792_v55 = vld [vmem:[%s3419_s1 + $0xd8] sm:$0xff]   ;;  %v2798_v61 = vld [vmem:[%s3419_s1 + $0xa0] sm:$0xff]   ;;  %v2800_v63 = vld [vmem:[%s3419_s1 + $0xe8] sm:$0xff]  }
  0x20   : > { %2574 = vmatpush3.bf16.msra.mxu0 %v2773_v26  ;;  %v408_v21 = vrot.slane %v407_v13, 2  ;;  %v421_v22 = vor.u32 %v420_v14, %v417_v12  ;;  %v2801_v0 = vld [vmem:[%s3419_s1 + $0x28] sm:$0xff]   ;;  %v2173_v2 = vld.sshfl [vmem:[%s3007_s22] sm:$0xf pattern:$0x76325410] }
  0x21   : > { %2596 = vmatpush3.bf16.msra.mxu1 %v2774_v27  ;;  %2575 = vmatprep.subr.bf16.mxu0 %v2775_v28  ;;  %v3045_v24 = vsel %vm3037_vm6, %v394_v17, %v398_v10  ;;  %v499_v25 = vunpack.c.0.s8 %v498_v19  ;;  %v2802_v1 = vld [vmem:[%s3419_s1 + $0xa8] sm:$0xff]   ;;  %v2803_v3 = vld [vmem:[%s3419_s1 + $0x70] sm:$0xff]   ;;  %v3148_v7 = vld.sshfl [vmem:[%s3007_s22 + $0x20] sm:$0xf pattern:$0x76325410] }
  0x22   : > { %2597 = vmatprep.subr.bf16.mxu1 %v2776_v29  ;;  %v3049_v26 = vsel %vm3037_vm6, %v408_v21, %v412_v11  ;;  %v422_v27 = vrot.slane %v421_v22, 2  ;;  %v493_v28 = vcombine.low %v385_v16, %v3045_v24  ;;  %v494_v29 = vcombine.high %v385_v16, %v3045_v24  ;;  %v2804_v4 = vld [vmem:[%s3419_s1 + $0xf0] sm:$0xff]   ;;  %v2174_v14 = vld.sshfl [vmem:[%s3007_s22 + $0x8] sm:$0xf pattern:$0x76325410] }
  0x23   : > { %v1781_v32 = vcombine.high %v3045_v24, %v3049_v26  ;;  %v3145_v6 = vld.sshfl [vmem:[%s3007_s22 + $0x10] sm:$0xf pattern:$0x76325410]  ;;  %v2807_v16 = vld [vmem:[%s3419_s1 + $0x78] sm:$0xff]  }
  0x24   : > { %2576 = vmatpush3.bf16.msra.mxu0 %v2777_v30  ;;  %v3053_v30 = vsub.s32 %v499_v25, %v501_v20  ;;  %v3061_v33 = vsel %vm3037_vm6, %v422_v27, %v426_v23  ;;  %v2285_v8 = vcombine.low %v2173_v2, %v3145_v6  ;;  %v2805_v9 = vld [vmem:[%s3419_s1 + $0x30] sm:$0xff]   ;;  %v3165_v15 = vld.sshfl [vmem:[%s3007_s22 + $0x18] sm:$0xf pattern:$0x76325410] }
  0x25   : > { %2598 = vmatpush3.bf16.msra.mxu1 %v2778_v31  ;;  %2605 = vmatprep.subr.bf16.mxu0 %v2779_v45  ;;  %v1780_v31 = vcombine.low %v3045_v24, %v3049_v26  ;;  %v495_v34 = vcombine.low %v3049_v26, %v3061_v33  ;;  %v496_v36 = vcombine.high %v3049_v26, %v3061_v33  ;;  %v2806_v10 = vld [vmem:[%s3419_s1 + $0xb0] sm:$0xff]   ;;  %v2808_v17 = vld [vmem:[%s3419_s1 + $0xf8] sm:$0xff]   ;;  %v3175_v19 = vld.sshfl [vmem:[%s3007_s22 + $0x28] sm:$0xf pattern:$0x76325410] }
  0x26   : > { %2627 = vmatprep.subr.bf16.mxu1 %v2780_v60  ;;  %v503_v35 = vrot.slane %v493_v28, %v3053_v30  ;;  %v510_v37 = vrot.slane %v494_v29, %v3053_v30  ;;  %v2797_v60 = vld [vmem:[%s3419_s1 + $0x20] sm:$0xff]   ;;  %v3158_v11 = vld.sshfl [vmem:[%s3007_s22 + $0x30] sm:$0xf pattern:$0x76325410]  ;;  %v817_v13 = vrot.slane %v2285_v8, %v3053_v30  ;;  %v2286_v20 = vcombine.low %v2174_v14, %v3165_v15  ;;  %v2809_v21 = vld [vmem:[%s3419_s1 + $0x38] sm:$0xff]  }
  0x27   : > { %v517_v38 = vrot.slane %v495_v34, %v3053_v30  ;;  %v524_v39 = vrot.slane %v496_v36, %v3053_v30  ;;  %v2287_v12 = vcombine.low %v3148_v7, %v3158_v11  ;;  %v2810_v22 = vld [vmem:[%s3419_s1 + $0xb8] sm:$0xff]   ;;  %v2811_v29 = vld [vmem:[%s3419_s1 + $0x240] sm:$0xff]   ;;  %v2838_v2 = vld [vmem:[%s3419_s1 + $0x2b0] sm:$0xff]  }
  0x28   : > { %v3185_v23 = vld.sshfl [vmem:[%s3007_s22 + $0x38] sm:$0xf pattern:$0x76325410]  ;;  %v824_v28 = vrot.slane %v2286_v20, %v3053_v30  ;;  %v2813_v36 = vld [vmem:[%s3419_s1 + $0x200] sm:$0xff]  }
  0x29   : > { %v526_v42 = vcombine.high %v503_v35, %v517_v38  ;;  %v528_v43 = vcombine.high %v510_v37, %v524_v39  ;;  %v525_v44 = vcombine.low %v503_v35, %v517_v38  ;;  %v527_v45 = vcombine.low %v510_v37, %v524_v39  ;;  %v2812_v35 = vld [vmem:[%s3419_s1 + $0x2c0] sm:$0xff]  }
  0x2a   : > { %v831_v18 = vrot.slane %v2287_v12, %v3053_v30  ;;  %v2288_v27 = vcombine.low %v3175_v19, %v3185_v23  ;;  %v2845_v20 = vld [vmem:[%s3419_s1 + $0x300] sm:$0xff]  }
  0x2b   : > { %757 = vmatprep.mubr.bf16.mxu0 %v526_v42  ;;  %798 = vmatprep.mubr.bf16.mxu1 %v528_v43  ;;  %v2816_v42 = vld [vmem:[%s3419_s1 + $0x2c8] sm:$0xff]  }
  0x2c   : > { %758 = vmatmul.mubr.bf16.vlgmr.msra.gmra.mrb[0].mxu0 %v525_v44  ;;  %799 = vmatmul.mubr.bf16.vlgmr.msra.gmra.mrb[0].mxu1 %v527_v45  ;;  %v840_v25 = vcombine.high %v817_v13, %v831_v18  ;;  %v838_v34 = vrot.slane %v2288_v27, %v3053_v30  ;;  %v839_v38 = vcombine.low %v817_v13, %v831_v18  ;;  %v2817_v43 = vld [vmem:[%s3419_s1 + $0x208] sm:$0xff]   ;;  %v2819_v45 = vld [vmem:[%s3419_s1 + $0x250] sm:$0xff]   ;;  %v2841_v13 = vld [vmem:[%s3419_s1 + $0x238] sm:$0xff]  }
  0x2d   : > { %2606 = vmatpush3.bf16.msra.mxu0 %v2781_v40  ;;  %2628 = vmatpush3.bf16.msra.mxu1 %v2782_v41  ;;  %v2814_v40 = vld [vmem:[%s3419_s1 + $0x280] sm:$0xff]   ;;  %v2815_v41 = vld [vmem:[%s3419_s1 + $0x248] sm:$0xff]  }
  0x2e   : > { %2607 = vmatprep.subr.bf16.mxu0 %v2783_v46  ;;  %2629 = vmatprep.subr.bf16.mxu1 %v2784_v47  ;;  %v842_v37 = vcombine.high %v824_v28, %v838_v34  ;;  %v841_v39 = vcombine.low %v824_v28, %v838_v34  ;;  %v2818_v44 = vld [vmem:[%s3419_s1 + $0x288] sm:$0xff]   ;;  %v2820_v46 = vld [vmem:[%s3419_s1 + $0x2d0] sm:$0xff]  }
  0x2f   : > { %1071 = vmatprep.mubr.bf16.mxu0 %v840_v25  ;;  %v2821_v47 = vld [vmem:[%s3419_s1 + $0x210] sm:$0xff]   ;;  %v2847_v25 = vld [vmem:[%s3419_s1 + $0x348] sm:$0xff]  }
  0x30   : > { %1112 = vmatprep.mubr.bf16.mxu1 %v842_v37  ;;  %v2848_v27 = vld [vmem:[%s3419_s1 + $0x3c8] sm:$0xff]   ;;  %v2851_v34 = vld [vmem:[%s3419_s1 + $0x350] sm:$0xff]  }
  0x31   : > { %2608 = vmatpush3.bf16.msra.mxu0 %v2785_v48  ;;  %2630 = vmatpush3.bf16.msra.mxu1 %v2786_v49  ;;  %v2822_v48 = vld [vmem:[%s3419_s1 + $0x290] sm:$0xff]   ;;  %v2823_v49 = vld [vmem:[%s3419_s1 + $0x258] sm:$0xff]   ;;  %v2849_v28 = vld [vmem:[%s3419_s1 + $0x308] sm:$0xff]  }
  0x32   : > { %2609 = vmatprep.subr.bf16.mxu0 %v2787_v50  ;;  %2631 = vmatprep.subr.bf16.mxu1 %v2788_v51  ;;  %v2824_v50 = vld [vmem:[%s3419_s1 + $0x2d8] sm:$0xff]   ;;  %v2854_v37 = vld [vmem:[%s3419_s1 + $0x390] sm:$0xff]  }
  0x33   : > { %v2825_v51 = vld [vmem:[%s3419_s1 + $0x218] sm:$0xff]  }
  0x35   : > { %2610 = vmatpush3.bf16.msra.mxu0 %v2789_v52  ;;  %2632 = vmatpush3.bf16.msra.mxu1 %v2790_v53  ;;  %v2826_v52 = vld [vmem:[%s3419_s1 + $0x298] sm:$0xff]   ;;  %v2827_v53 = vld [vmem:[%s3419_s1 + $0x260] sm:$0xff]  }
  0x36   : > { %2611 = vmatprep.subr.bf16.mxu0 %v2791_v54  ;;  %2633 = vmatprep.subr.bf16.mxu1 %v2792_v55  ;;  %v2828_v54 = vld [vmem:[%s3419_s1 + $0x2e0] sm:$0xff]  }
  0x37   : > { %v2829_v55 = vld [vmem:[%s3419_s1 + $0x220] sm:$0xff]  }
  0x39   : > { %2612 = vmatpush3.bf16.msra.mxu0 %v2793_v56  ;;  %2634 = vmatpush3.bf16.msra.mxu1 %v2794_v57  ;;  %v2830_v56 = vld [vmem:[%s3419_s1 + $0x2a0] sm:$0xff]   ;;  %v2831_v57 = vld [vmem:[%s3419_s1 + $0x268] sm:$0xff]  }
  0x3a   : > { %2613 = vmatprep.subr.bf16.mxu0 %v2795_v58  ;;  %2635 = vmatprep.subr.bf16.mxu1 %v2796_v59  ;;  %v2832_v58 = vld [vmem:[%s3419_s1 + $0x2e8] sm:$0xff]  }
  0x3b   : > { %v2833_v59 = vld [vmem:[%s3419_s1 + $0x228] sm:$0xff]  }
  0x3d   : > { %2614 = vmatpush3.bf16.msra.mxu0 %v2797_v60  ;;  %2636 = vmatpush3.bf16.msra.mxu1 %v2798_v61  ;;  %v2834_v60 = vld [vmem:[%s3419_s1 + $0x2a8] sm:$0xff]   ;;  %v2835_v61 = vld [vmem:[%s3419_s1 + $0x270] sm:$0xff]  }
  0x3e   : > { %2615 = vmatprep.subr.bf16.mxu0 %v2799_v62  ;;  %2637 = vmatprep.subr.bf16.mxu1 %v2800_v63  ;;  %v2401_v62 = vcombine.low %v3145_v6, %v3148_v7  ;;  %v2836_v63 = vld [vmem:[%s3419_s1 + $0x2f0] sm:$0xff]   ;;  %v2335_v6 = vld.sshfl [vmem:[%s3007_s22 + $0x40] sm:$0xf pattern:$0x76325410] }
  0x3f   : > { %v2403_v7 = vcombine.low %v3158_v11, %v2335_v6 }
  0x40   : > { %v1273_v8 = vrot.slane %v2401_v62, %v3053_v30 }
  0x41   : > { %2616 = vmatpush3.bf16.msra.mxu0 %v2801_v0  ;;  %2638 = vmatpush3.bf16.msra.mxu1 %v2802_v1  ;;  %v2402_v0 = vcombine.low %v3165_v15, %v3175_v19  ;;  %v2837_v1 = vld [vmem:[%s3419_s1 + $0x230] sm:$0xff]   ;;  %v1287_v14 = vrot.slane %v2403_v7, %v3053_v30  ;;  %v2842_v15 = vld [vmem:[%s3419_s1 + $0x2b8] sm:$0xff]   ;;  %v2844_v19 = vld [vmem:[%s3419_s1 + $0x3c0] sm:$0xff]  }
  0x42   : > { %2617 = vmatprep.subr.bf16.mxu0 %v2803_v3  ;;  %2639 = vmatprep.subr.bf16.mxu1 %v2804_v4  ;;  %v2839_v3 = vld [vmem:[%s3419_s1 + $0x278] sm:$0xff]  }
  0x43   : > { %v2840_v4 = vld [vmem:[%s3419_s1 + $0x2f8] sm:$0xff]   ;;  %v1280_v12 = vrot.slane %v2402_v0, %v3053_v30 }
  0x45   : > { %2618 = vmatpush3.bf16.msra.mxu0 %v2805_v9  ;;  %2640 = vmatpush3.bf16.msra.mxu1 %v2806_v10  ;;  %v2336_v9 = vld.sshfl [vmem:[%s3007_s22 + $0x48] sm:$0xf pattern:$0x76325410] }
  0x46   : > { %2619 = vmatprep.subr.bf16.mxu0 %v2807_v16  ;;  %2641 = vmatprep.subr.bf16.mxu1 %v2808_v17  ;;  %v2404_v10 = vcombine.low %v3185_v23, %v2336_v9  ;;  %v1296_v16 = vcombine.high %v1273_v8, %v1287_v14  ;;  %v2843_v17 = vld [vmem:[%s3419_s1 + $0x340] sm:$0xff]   ;;  %v1790_v9 = vrot.slane %v1780_v31, %v3053_v30 }
  0x47   : > { %v2846_v23 = vld [vmem:[%s3419_s1 + $0x380] sm:$0xff]  }
  0x48   : > { %v1294_v11 = vrot.slane %v2404_v10, %v3053_v30 }
  0x49   : > { %2620 = vmatpush3.bf16.msra.mxu0 %v2809_v21  ;;  %2642 = vmatpush3.bf16.msra.mxu1 %v2810_v22  ;;  %v1295_v21 = vcombine.low %v1273_v8, %v1287_v14 }
  0x4a   : > { %2649 = vmatprep.subr.bf16.mxu0 %v2811_v29  ;;  %2671 = vmatprep.subr.bf16.mxu1 %v2812_v35  ;;  %v1298_v18 = vcombine.high %v1280_v12, %v1294_v11  ;;  %v1297_v22 = vcombine.low %v1280_v12, %v1294_v11  ;;  %v2850_v29 = vld [vmem:[%s3419_s1 + $0x388] sm:$0xff]   ;;  %v2852_v35 = vld [vmem:[%s3419_s1 + $0x3d0] sm:$0xff]   ;;  %v1797_v12 = vrot.slane %v1781_v32, %v3053_v30 }
  0x4c   : > { %1072 = vmatmul.mubr.bf16.vlgmr.msra.gmra.mrb[4].mxu0 %v839_v38  ;;  %1113 = vmatmul.mubr.bf16.vlgmr.msra.gmra.mrb[4].mxu1 %v841_v39  ;;  %v2855_v38 = vld [vmem:[%s3419_s1 + $0x358] sm:$0xff]  }
  0x4d   : > { %2650 = vmatpush3.bf16.msra.mxu0 %v2813_v36  ;;  %2672 = vmatpush3.bf16.msra.mxu1 %v2814_v40  ;;  %v2853_v36 = vld [vmem:[%s3419_s1 + $0x310] sm:$0xff]   ;;  %v2856_v39 = vld [vmem:[%s3419_s1 + $0x3d8] sm:$0xff]  }
  0x4e   : > { %2651 = vmatprep.subr.bf16.mxu0 %v2815_v41  ;;  %2673 = vmatprep.subr.bf16.mxu1 %v2816_v42  ;;  %v2857_v40 = vld [vmem:[%s3419_s1 + $0x318] sm:$0xff]   ;;  %v2859_v42 = vld [vmem:[%s3419_s1 + $0x360] sm:$0xff]  }
  0x4f   : > { %1527 = vmatprep.mubr.bf16.mxu0 %v1296_v16  ;;  %1568 = vmatprep.mubr.bf16.mxu1 %v1298_v18  ;;  %v2858_v41 = vld [vmem:[%s3419_s1 + $0x398] sm:$0xff]  }
  0x51   : > { %2652 = vmatpush3.bf16.msra.mxu0 %v2817_v43  ;;  %2674 = vmatpush3.bf16.msra.mxu1 %v2818_v44  ;;  %v2860_v43 = vld [vmem:[%s3419_s1 + $0x3e0] sm:$0xff]  }
  0x52   : > { %2653 = vmatprep.subr.bf16.mxu0 %v2819_v45  ;;  %2675 = vmatprep.subr.bf16.mxu1 %v2820_v46  ;;  %v2861_v44 = vld [vmem:[%s3419_s1 + $0x320] sm:$0xff]   ;;  %v2863_v46 = vld [vmem:[%s3419_s1 + $0x368] sm:$0xff]  }
  0x53   : > { %v2862_v45 = vld [vmem:[%s3419_s1 + $0x3a0] sm:$0xff]  }
  0x55   : > { %2654 = vmatpush3.bf16.msra.mxu0 %v2821_v47  ;;  %2676 = vmatpush3.bf16.msra.mxu1 %v2822_v48  ;;  %v2864_v47 = vld [vmem:[%s3419_s1 + $0x3e8] sm:$0xff]  }
  0x56   : > { %2655 = vmatprep.subr.bf16.mxu0 %v2823_v49  ;;  %2677 = vmatprep.subr.bf16.mxu1 %v2824_v50  ;;  %v2865_v48 = vld [vmem:[%s3419_s1 + $0x328] sm:$0xff]   ;;  %v2867_v50 = vld [vmem:[%s3419_s1 + $0x370] sm:$0xff]  }
  0x57   : > { %v2866_v49 = vld [vmem:[%s3419_s1 + $0x3a8] sm:$0xff]  }
  0x59   : > { %2656 = vmatpush3.bf16.msra.mxu0 %v2825_v51  ;;  %2678 = vmatpush3.bf16.msra.mxu1 %v2826_v52  ;;  %v2868_v51 = vld [vmem:[%s3419_s1 + $0x3f0] sm:$0xff]  }
  0x5a   : > { %2657 = vmatprep.subr.bf16.mxu0 %v2827_v53  ;;  %2679 = vmatprep.subr.bf16.mxu1 %v2828_v54  ;;  %v2869_v52 = vld [vmem:[%s3419_s1 + $0x330] sm:$0xff]   ;;  %v2451_v54 = vld.sshfl [vmem:[%s3007_s22 + $0x40] sm:$0x5f pattern:$0x76325410] }
  0x5b   : > { %v2870_v53 = vld [vmem:[%s3419_s1 + $0x3b0] sm:$0xff]  }
  0x5d   : > { %2658 = vmatpush3.bf16.msra.mxu0 %v2829_v55  ;;  %2680 = vmatpush3.bf16.msra.mxu1 %v2830_v56  ;;  %v2871_v55 = vld [vmem:[%s3419_s1 + $0x378] sm:$0xff]  }
  0x5e   : > { %2659 = vmatprep.subr.bf16.mxu0 %v2831_v57  ;;  %2681 = vmatprep.subr.bf16.mxu1 %v2832_v58  ;;  %v2872_v56 = vld [vmem:[%s3419_s1 + $0x3f8] sm:$0xff]   ;;  %v2452_v57 = vld.sshfl [vmem:[%s3007_s22 + $0x48] sm:$0x5f pattern:$0x76325410]  ;;  %s2553_s22 = sshll.u32 %s3426_s10, 3 }
  0x5f   : > { %v1657_v58 = vcombine.low %v2451_v54, %v2452_v57  ;;  %s143_s20 = scalar_lea.vmem %s3420_s2, %s2553_s22 }
  0x61   : > { %2660 = vmatpush3.bf16.msra.mxu0 %v2833_v59  ;;  %2682 = vmatpush3.bf16.msra.mxu1 %v2834_v60  ;;  %v1658_v59 = vcombine.high %v2451_v54, %v2452_v57  ;;  %v2873_v60 = vld [vmem:[%s3419_s1 + $0x338] sm:$0xff]   ;;  %v1702_v62 = vshrl.u32 %v1657_v58, 16 }
  0x62   : > { %2661 = vmatprep.subr.bf16.mxu0 %v2835_v61  ;;  %2683 = vmatprep.subr.bf16.mxu1 %v2836_v63  ;;  %v2874_v61 = vld [vmem:[%s3419_s1 + $0x3b8] sm:$0xff]   ;;  %v1705_v63 = vshll.u32 %v1657_v58, 16 }
  0x63   : > { %v1711_v0 = vshll.u32 %v1658_v59, 16 }
  0x65   : > { %2662 = vmatpush3.bf16.msra.mxu0 %v2837_v1  ;;  %2684 = vmatpush3.bf16.msra.mxu1 %v2838_v2  ;;  %v1704_v1 = vrot.slane %v1702_v62, 6  ;;  %v1707_v2 = vrot.slane %v1705_v63, 7 }
  0x66   : > { %2663 = vmatprep.subr.bf16.mxu0 %v2839_v3  ;;  %2685 = vmatprep.subr.bf16.mxu1 %v2840_v4  ;;  %v1713_v4 = vrot.slane %v1711_v0, 7 }
  0x67   : > { %v1708_v3 = vor.u32 %v1707_v2, %v1704_v1 }
  0x69   : > { %2664 = vmatpush3.bf16.msra.mxu0 %v2841_v13  ;;  %2686 = vmatpush3.bf16.msra.mxu1 %v2842_v15  ;;  %v1709_v6 = vrot.slane %v1708_v3, 2 }
  0x6a   : > { %2693 = vmatprep.subr.bf16.mxu0 %v2843_v17  ;;  %2715 = vmatprep.subr.bf16.mxu1 %v2844_v19 }
  0x6b   : > { %v1714_v7 = vsel %vm3037_vm6, %v1709_v6, %v1713_v4 }
  0x6c   : > { %1528 = vmatmul.mubr.bf16.vlgmr.msra.gmra.mrb[8].mxu0 %v1295_v21  ;;  %1569 = vmatmul.mubr.bf16.vlgmr.msra.gmra.mrb[8].mxu1 %v1297_v22  ;;  %v1782_v8 = vcombine.low %v3061_v33, %v1714_v7  ;;  %v1783_v10 = vcombine.high %v3061_v33, %v1714_v7 }
  0x6d   : > { %2694 = vmatpush3.bf16.msra.mxu0 %v2845_v20  ;;  %2716 = vmatpush3.bf16.msra.mxu1 %v2846_v23 }
  0x6e   : > { %2695 = vmatprep.subr.bf16.mxu0 %v2847_v25  ;;  %2717 = vmatprep.subr.bf16.mxu1 %v2848_v27  ;;  %v1804_v13 = vrot.slane %v1782_v8, %v3053_v30  ;;  %v1811_v14 = vrot.slane %v1783_v10, %v3053_v30 }
  0x70   : > { %v1813_v5 = vcombine.high %v1790_v9, %v1804_v13  ;;  %v1815_v15 = vcombine.high %v1797_v12, %v1811_v14  ;;  %v1812_v11 = vcombine.low %v1790_v9, %v1804_v13  ;;  %v1814_v16 = vcombine.low %v1797_v12, %v1811_v14 }
  0x71   : > { %2696 = vmatpush3.bf16.msra.mxu0 %v2849_v28  ;;  %2718 = vmatpush3.bf16.msra.mxu1 %v2850_v29 }
  0x72   : > { %2697 = vmatprep.subr.bf16.mxu0 %v2851_v34  ;;  %2719 = vmatprep.subr.bf16.mxu1 %v2852_v35 }
  0x73   : > { %2044 = vmatprep.mubr.bf16.mxu0 %v1813_v5  ;;  %2085 = vmatprep.mubr.bf16.mxu1 %v1815_v15 }
  0x75   : > { %2698 = vmatpush3.bf16.msra.mxu0 %v2853_v36  ;;  %2720 = vmatpush3.bf16.msra.mxu1 %v2854_v37 }
  0x76   : > { %2699 = vmatprep.subr.bf16.mxu0 %v2855_v38  ;;  %2721 = vmatprep.subr.bf16.mxu1 %v2856_v39 }
  0x79   : > { %2700 = vmatpush3.bf16.msra.mxu0 %v2857_v40  ;;  %2722 = vmatpush3.bf16.msra.mxu1 %v2858_v41 }
  0x7a   : > { %2701 = vmatprep.subr.bf16.mxu0 %v2859_v42  ;;  %2723 = vmatprep.subr.bf16.mxu1 %v2860_v43 }
  0x7d   : > { %2702 = vmatpush3.bf16.msra.mxu0 %v2861_v44  ;;  %2724 = vmatpush3.bf16.msra.mxu1 %v2862_v45 }
  0x7e   : > { %2703 = vmatprep.subr.bf16.mxu0 %v2863_v46  ;;  %2725 = vmatprep.subr.bf16.mxu1 %v2864_v47 }
  0x81   : > { %2704 = vmatpush3.bf16.msra.mxu0 %v2865_v48  ;;  %2726 = vmatpush3.bf16.msra.mxu1 %v2866_v49 }
  0x82   : > { %2705 = vmatprep.subr.bf16.mxu0 %v2867_v50  ;;  %2727 = vmatprep.subr.bf16.mxu1 %v2868_v51 }
  0x85   : > { %2706 = vmatpush3.bf16.msra.mxu0 %v2869_v52  ;;  %2728 = vmatpush3.bf16.msra.mxu1 %v2870_v53 }
  0x86   : > { %2707 = vmatprep.subr.bf16.mxu0 %v2871_v55  ;;  %2729 = vmatprep.subr.bf16.mxu1 %v2872_v56 }
  0x89   : > { %2708 = vmatpush3.bf16.msra.mxu0 %v2873_v60  ;;  %2730 = vmatpush3.bf16.msra.mxu1 %v2874_v61 }
  0x8c   : > { %2045 = vmatmul.mubr.bf16.vlgmr.msra.gmra.mrb[12].mxu0 %v1812_v11  ;;  %2086 = vmatmul.mubr.bf16.vlgmr.msra.gmra.mrb[12].mxu1 %v1814_v16 }
  0xff   : > { %v2577_v31 = vpop.f32.mrb[0].mxu0  ;;  %v2599_v17 = vpop.f32.mrb[0].mxu1 }
 0x100   : > { %v2578_v33 = vpop.f32.mrb[1].mxu0  ;;  %v2600_v18 = vpop.f32.mrb[1].mxu1 }
 0x101   : > { %v2579_v19 = vadd.f32 %v2578_v33, %v2577_v31  ;;  %v2601_v20 = vadd.f32 %v2600_v18, %v2599_v17  ;;  %v2580_v24 = vpop.f32.mrb[2].mxu0  ;;  %v2602_v26 = vpop.f32.mrb[2].mxu1 }
 0x102   : > { %v2581_v32 = vpop.f32.mrb[3].mxu0  ;;  %v2603_v21 = vpop.f32.mrb[3].mxu1 }
 0x103   : > { %v801_v22 = vadd.f32 %v2601_v20, %v2579_v19  ;;  %v2582_v30 = vadd.f32 %v2581_v32, %v2580_v24  ;;  %v2604_v23 = vadd.f32 %v2603_v21, %v2602_v26 }
 0x105   : > { %v804_v25 = vadd.f32 %v2604_v23, %v2582_v30 }
 0x11f   : > { %v2621_v27 = vpop.f32.mrb[4].mxu0  ;;  %v2643_v28 = vpop.f32.mrb[4].mxu1 }
 0x120   : > { %v2622_v29 = vpop.f32.mrb[5].mxu0  ;;  %v2644_v34 = vpop.f32.mrb[5].mxu1 }
 0x121   : > { %v2623_v35 = vadd.f32 %v2622_v29, %v2621_v27  ;;  %v2645_v36 = vadd.f32 %v2644_v34, %v2643_v28  ;;  %v2624_v37 = vpop.f32.mrb[6].mxu0  ;;  %v2646_v38 = vpop.f32.mrb[6].mxu1 }
 0x122   : > { %v2625_v39 = vpop.f32.mrb[7].mxu0  ;;  %v2647_v40 = vpop.f32.mrb[7].mxu1 }
 0x123   : > { %v1074_v41 = vadd.f32 %v2623_v35, %v801_v22  ;;  %v2626_v42 = vadd.f32 %v2625_v39, %v2624_v37  ;;  %v2648_v43 = vadd.f32 %v2647_v40, %v2646_v38 }
 0x125   : > { %v1115_v44 = vadd.f32 %v2645_v36, %v1074_v41  ;;  %v1077_v45 = vadd.f32 %v2626_v42, %v804_v25 }
 0x127   : > { %v1118_v46 = vadd.f32 %v2648_v43, %v1077_v45 }
 0x13f   : > { %v2665_v47 = vpop.f32.mrb[8].mxu0  ;;  %v2687_v48 = vpop.f32.mrb[8].mxu1 }
 0x140   : > { %v2666_v49 = vpop.f32.mrb[9].mxu0  ;;  %v2688_v50 = vpop.f32.mrb[9].mxu1 }
 0x141   : > { %v2667_v51 = vadd.f32 %v2666_v49, %v2665_v47  ;;  %v2689_v52 = vadd.f32 %v2688_v50, %v2687_v48  ;;  %v2668_v53 = vpop.f32.mrb[10].mxu0  ;;  %v2690_v54 = vpop.f32.mrb[10].mxu1 }
 0x142   : > { %v2669_v55 = vpop.f32.mrb[11].mxu0  ;;  %v2691_v56 = vpop.f32.mrb[11].mxu1 }
 0x143   : > { %v1571_v57 = vadd.f32 %v2689_v52, %v2667_v51  ;;  %v2670_v58 = vadd.f32 %v2669_v55, %v2668_v53  ;;  %v2692_v59 = vadd.f32 %v2691_v56, %v2690_v54 }
 0x145   : > { %v1577_v60 = vadd.f32 %v1571_v57, %v1115_v44  ;;  %v1574_v61 = vadd.f32 %v2692_v59, %v2670_v58 }
 0x147   : > { %v1578_v62 = vadd.f32 %v1574_v61, %v1118_v46 }
 0x15f   : > { %v2709_v63 = vpop.f32.mrb[12].mxu0  ;;  %v2731_v0 = vpop.f32.mrb[12].mxu1 }
 0x160   : > { %v2710_v1 = vpop.f32.mrb[13].mxu0  ;;  %v2732_v2 = vpop.f32.mrb[13].mxu1 }
 0x161   : > { %v2711_v3 = vadd.f32 %v2710_v1, %v2709_v63  ;;  %v2733_v4 = vadd.f32 %v2732_v2, %v2731_v0  ;;  %v2712_v6 = vpop.f32.mrb[14].mxu0  ;;  %v2734_v7 = vpop.f32.mrb[14].mxu1 }
 0x162   : > { %v2713_v8 = vpop.f32.mrb[15].mxu0  ;;  %v2735_v9 = vpop.f32.mrb[15].mxu1 }
 0x163   : > { %v2088_v10 = vadd.f32 %v2733_v4, %v2711_v3  ;;  %v2714_v12 = vadd.f32 %v2713_v8, %v2712_v6  ;;  %v2736_v13 = vadd.f32 %v2735_v9, %v2734_v7 }
 0x165   : > { %v2094_v14 = vadd.f32 %v2088_v10, %v1577_v60  ;;  %v2091_v5 = vadd.f32 %v2736_v13, %v2714_v12 }
 0x167   : > { %v2096_v15 = vmul.f32 0.2, %v2094_v14  ;;  %v2095_v11 = vadd.f32 %v2091_v5, %v1578_v62 }
 0x169   : > { %v2097_v16 = vmul.f32 0.2, %v2095_v11  ;;  %v2098_v31 = vmax.f32 %v2094_v14, %v2096_v15 }
 0x16b   : > { %v2099_v17 = vmax.f32 %v2095_v11, %v2097_v16 }
 0x16d   : > { %v2559_v33 = vpack.c.bf16 %v2099_v17, %v2098_v31 }
 0x16f   : > { %2560 = vst [vmem:[%s143_s20] sm:$0xff] %v2559_v33  }
 0x170 PF: > { %s12_s9 = sadd.s32 1, %s2881_s9  }
 0x171   : > { %p9_p4 = scmp.ge.s32.totalorder %s12_s9, 4  }
 0x173   :  { %11 = sbr.rel (!%p9_p4) target bundleno = 1 (0x1), region = 62 }

// kernel: regularised_encoder_forward.8
= control target key start
LH: loop header
LB: loop body
LE: loop exit
PB: predicated region body
PF: predicated region fallthrough
CT: control target
= control target key end

     0   :  { %s2476_s9 = smov 0   ;;  %s2926_s0 = inlined_call_operand.vmem [shape: bf16[2,3,3,512], index: 0, kind: input, shape index: {}]   ;;  %s2927_s1 = inlined_call_operand.vmem [shape: bf16[2,2,512,128], index: 1, kind: input, shape index: {}]   ;;  %s2928_s2 = inlined_call_operand.vmem [shape: bf16[2,4,128], index: 2, kind: output, shape index: {}]  }
   0x1 LB: > { %s1793_s10 = sadd.s32 4294967295, %s2458_s9   ;;  %p1797_p0 = scmp.ge.s32.totalorder %s2458_s9, 1  ;;  %s2458_s9 = sphi %s2476_s9, %s12_s9  }
   0x2   : > { %p112_p1 = scmp.lt.s32.totalorder %s2458_s9, 3 }
   0x4   : > { %p113_p2 = pnand %p1797_p0, %p112_p1 }
   0x5   : > { %v2324_v0 = vld [vmem:[%s2927_s1 + $0x140] sm:$0xff] (!%p113_p2)   ;;  %v2328_v4 = vld [vmem:[%s2927_s1 + $0x148] sm:$0xff] (!%p113_p2)   ;;  %v2332_v8 = vld [vmem:[%s2927_s1 + $0x150] sm:$0xff] (!%p113_p2)   ;;  %p133_p3 = scmp.lt.s32.totalorder (!%p113_p2), %s1793_s10, 1  ;;  %vm245_vm0 = vsmask.f32 (!%p113_p2), 256  ;;  %v347_v36 = vlaneseq (!%p113_p2) }
   0x6   : > { %116 = sbr.rel (%p113_p2) target bundleno = 362 (0x16a), region = 28  ;;  %v2325_v1 = vld [vmem:[%s2927_s1 + $0x1c0] sm:$0xff] (!%p113_p2)   ;;  %2138 = vmatprep.subr.bf16.mxu0 (!%p113_p2), %v2324_v0  ;;  %v2329_v5 = vld [vmem:[%s2927_s1 + $0x1c8] sm:$0xff] (!%p113_p2)   ;;  %v2333_v9 = vld [vmem:[%s2927_s1 + $0x1d0] sm:$0xff] (!%p113_p2)   ;;  %vm246_vm1 = vsmask.f32 (!%p113_p2), 1284 }
   0x7   : > { %v2326_v2 = vld [vmem:[%s2927_s1 + $0x100] sm:$0xff] (!%p113_p2)   ;;  %2160 = vmatprep.subr.bf16.mxu1 (!%p113_p2), %v2325_v1  ;;  %v2330_v6 = vld [vmem:[%s2927_s1 + $0x108] sm:$0xff] (!%p113_p2)   ;;  %v2334_v10 = vld [vmem:[%s2927_s1 + $0x110] sm:$0xff] (!%p113_p2)   ;;  %vm248_vm3 = vsmask.f32 (!%p113_p2), 2312  ;;  %v348_v44 = vshrl.u32 (!%p113_p2), %v347_v36, 7 }
   0x8   : > { %v2327_v3 = vld [vmem:[%s2927_s1 + $0x180] sm:$0xff] (!%p113_p2)   ;;  %2139 = vmatpush3.bf16.msra.mxu0 (!%p113_p2), %v2326_v2  ;;  %v2331_v7 = vld [vmem:[%s2927_s1 + $0x188] sm:$0xff] (!%p113_p2)   ;;  %v2335_v11 = vld [vmem:[%s2927_s1 + $0x190] sm:$0xff] (!%p113_p2)   ;;  %vm250_vm4 = vsmask.f32 (!%p113_p2), 3340 }
   0x9   : > { %2161 = vmatpush3.bf16.msra.mxu1 (!%p113_p2), %v2327_v3  ;;  %2140 = vmatprep.subr.bf16.mxu0 (!%p113_p2), %v2328_v4  ;;  %v2336_v12 = vld [vmem:[%s2927_s1 + $0x158] sm:$0xff] (!%p113_p2)   ;;  %v2340_v16 = vld [vmem:[%s2927_s1 + $0x160] sm:$0xff] (!%p113_p2)   ;;  %v2344_v20 = vld [vmem:[%s2927_s1 + $0x168] sm:$0xff] (!%p113_p2)   ;;  %vm252_vm5 = vsmask.f32 (!%p113_p2), 4368 }
   0xa   : > { %2162 = vmatprep.subr.bf16.mxu1 (!%p113_p2), %v2329_v5  ;;  %v2337_v13 = vld [vmem:[%s2927_s1 + $0x1d8] sm:$0xff] (!%p113_p2)   ;;  %v2341_v17 = vld [vmem:[%s2927_s1 + $0x1e0] sm:$0xff] (!%p113_p2)   ;;  %v2345_v21 = vld [vmem:[%s2927_s1 + $0x1e8] sm:$0xff] (!%p113_p2)   ;;  %vm254_vm7 = vsmask.f32 (!%p113_p2), 5396 }
   0xb   : > { %v2338_v14 = vld [vmem:[%s2927_s1 + $0x118] sm:$0xff] (!%p113_p2)   ;;  %v2342_v18 = vld [vmem:[%s2927_s1 + $0x120] sm:$0xff] (!%p113_p2)   ;;  %v2346_v22 = vld [vmem:[%s2927_s1 + $0x128] sm:$0xff] (!%p113_p2)   ;;  %vm256_vm8 = vsmask.f32 (!%p113_p2), 6424 }
   0xc   : > { %2141 = vmatpush3.bf16.msra.mxu0 (!%p113_p2), %v2330_v6  ;;  %v2339_v15 = vld [vmem:[%s2927_s1 + $0x198] sm:$0xff] (!%p113_p2)   ;;  %v2343_v19 = vld [vmem:[%s2927_s1 + $0x1a0] sm:$0xff] (!%p113_p2)   ;;  %v2347_v23 = vld [vmem:[%s2927_s1 + $0x1a8] sm:$0xff] (!%p113_p2)   ;;  %vm258_vm9 = vsmask.f32 (!%p113_p2), 7452 }
   0xd   : > { %2163 = vmatpush3.bf16.msra.mxu1 %v2331_v7  ;;  %2142 = vmatprep.subr.bf16.mxu0 %v2332_v8  ;;  %s2932_s10 = smov (!%p133_p3, %s1793_s10), 1  ;;  %v2348_v24 = vld [vmem:[%s2927_s1 + $0x170] sm:$0xff]   ;;  %v2352_v28 = vld [vmem:[%s2927_s1 + $0x178] sm:$0xff]   ;;  %vm247_vm2 = vmor %vm245_vm0, %vm246_vm1  ;;  %v2460_v42 = vmov 1966171168  }
   0xe   : > { %2164 = vmatprep.subr.bf16.mxu1 %v2333_v9  ;;  %v2349_v25 = vld [vmem:[%s2927_s1 + $0x1f0] sm:$0xff]   ;;  %s2314_s11 = smul.u32 24, %s2932_s10  ;;  %v2353_v29 = vld [vmem:[%s2927_s1 + $0x1f8] sm:$0xff]   ;;  %vm249_vm6 = vmor %vm247_vm2, %vm248_vm3  ;;  %v345_v43 = vunpack.c.l.s4 %v2460_v42  ;;  %s1799_s17 = sshll.u32 %s2932_s10, 1 }
   0xf   : > { %v2350_v26 = vld [vmem:[%s2927_s1 + $0x130] sm:$0xff]   ;;  %v2354_v30 = vld [vmem:[%s2927_s1 + $0x138] sm:$0xff]   ;;  %vm251_vm10 = vmor %vm249_vm6, %vm250_vm4  ;;  %s141_s20 = scalar_lea.vmem %s2928_s2, %s1799_s17 }
  0x10   : > { %2143 = vmatpush3.bf16.msra.mxu0 %v2334_v10  ;;  %v2351_v27 = vld [vmem:[%s2927_s1 + $0x1b0] sm:$0xff]   ;;  %s2584_s22 = scalar_lea.vmem %s2926_s0, %s2314_s11  ;;  %v2355_v31 = vld [vmem:[%s2927_s1 + $0x1b8] sm:$0xff]   ;;  %vm253_vm11 = vmor %vm251_vm10, %vm252_vm5  ;;  %v346_v47 = vunpack.c.0.s8 %v345_v43 }
  0x11   : > { %2165 = vmatpush3.bf16.msra.mxu1 %v2335_v11  ;;  %2144 = vmatprep.subr.bf16.mxu0 %v2336_v12  ;;  %v1802_v32 = vld.sshfl [vmem:[%s2584_s22] sm:$0xff pattern:$0x75316420]  ;;  %v1803_v33 = vld.sshfl [vmem:[%s2584_s22 + $0x8] sm:$0xff pattern:$0x75316420]  ;;  %vm255_vm12 = vmor %vm253_vm11, %vm254_vm7 }
  0x12   : > { %2166 = vmatprep.subr.bf16.mxu1 %v2337_v13  ;;  %v236_v34 = vcombine.high %v1802_v32, %v1802_v32  ;;  %v244_v35 = vcombine.high %v1803_v33, %v1803_v33  ;;  %v261_v37 = vshrl.u32 %v1802_v32, 16  ;;  %v270_v39 = vshrl.u32 %v1803_v33, 16  ;;  %v2356_v41 = vld [vmem:[%s2927_s1 + $0x40] sm:$0xff]   ;;  %vm257_vm13 = vmor %vm255_vm12, %vm256_vm8  ;;  %v2360_v59 = vld [vmem:[%s2927_s1 + $0x48] sm:$0xff]  }
  0x13   : > { %v2357_v45 = vld [vmem:[%s2927_s1 + $0xc0] sm:$0xff]   ;;  %vm2601_vm14 = vmor %vm257_vm13, %vm258_vm9  ;;  %v2612_v51 = vsub.s32 %v346_v47, %v348_v44  ;;  %v2361_v61 = vld [vmem:[%s2927_s1 + $0xc8] sm:$0xff]  }
  0x14   : > { %2145 = vmatpush3.bf16.msra.mxu0 %v2338_v14  ;;  %v266_v38 = vshll.u32 %v236_v34, 16  ;;  %v275_v40 = vshll.u32 %v244_v35, 16  ;;  %v2358_v55 = vld [vmem:[%s2927_s1] sm:$0xff]   ;;  %v2362_v62 = vld [vmem:[%s2927_s1 + $0x8] sm:$0xff]   ;;  %v2364_v0 = vld [vmem:[%s2927_s1 + $0x50] sm:$0xff]  }
  0x15   : > { %2167 = vmatpush3.bf16.msra.mxu1 %v2339_v15  ;;  %2146 = vmatprep.subr.bf16.mxu0 %v2340_v16  ;;  %v2359_v57 = vld [vmem:[%s2927_s1 + $0x80] sm:$0xff]   ;;  %v2363_v63 = vld [vmem:[%s2927_s1 + $0x88] sm:$0xff]   ;;  %v2365_v1 = vld [vmem:[%s2927_s1 + $0xd0] sm:$0xff]  }
  0x16   : > { %2168 = vmatprep.subr.bf16.mxu1 %v2341_v17  ;;  %v268_v48 = vsel %vm2601_vm14, %v261_v37, %v266_v38  ;;  %v2609_v49 = vsel %vm2601_vm14, %v270_v39, %v275_v40  ;;  %v2366_v2 = vld [vmem:[%s2927_s1 + $0x10] sm:$0xff]   ;;  %v2368_v4 = vld [vmem:[%s2927_s1 + $0x58] sm:$0xff]   ;;  %v2372_v8 = vld [vmem:[%s2927_s1 + $0x60] sm:$0xff]  }
  0x17   : > { %v343_v50 = vcombine.low %v268_v48, %v2609_v49  ;;  %v2367_v3 = vld [vmem:[%s2927_s1 + $0x90] sm:$0xff]   ;;  %v2369_v5 = vld [vmem:[%s2927_s1 + $0xd8] sm:$0xff]   ;;  %v2373_v9 = vld [vmem:[%s2927_s1 + $0xe0] sm:$0xff]  }
  0x18   : > { %2147 = vmatpush3.bf16.msra.mxu0 %v2342_v18  ;;  %v2370_v6 = vld [vmem:[%s2927_s1 + $0x18] sm:$0xff]   ;;  %v2374_v10 = vld [vmem:[%s2927_s1 + $0x20] sm:$0xff]   ;;  %v2376_v12 = vld [vmem:[%s2927_s1 + $0x68] sm:$0xff]  }
  0x19   : > { %2169 = vmatpush3.bf16.msra.mxu1 %v2343_v19  ;;  %2148 = vmatprep.subr.bf16.mxu0 %v2344_v20  ;;  %v350_v52 = vrot.slane %v343_v50, %v2612_v51  ;;  %v2371_v7 = vld [vmem:[%s2927_s1 + $0x98] sm:$0xff]   ;;  %v2375_v11 = vld [vmem:[%s2927_s1 + $0xa0] sm:$0xff]   ;;  %v2377_v13 = vld [vmem:[%s2927_s1 + $0xe8] sm:$0xff]  }
  0x1a   : > { %2170 = vmatprep.subr.bf16.mxu1 %v2345_v21  ;;  %v2378_v14 = vld [vmem:[%s2927_s1 + $0x28] sm:$0xff]   ;;  %v2380_v16 = vld [vmem:[%s2927_s1 + $0x70] sm:$0xff]   ;;  %v1800_v17 = vld.sshfl [vmem:[%s2584_s22] sm:$0xf pattern:$0x75316420] }
  0x1b   : > { %v351_v53 = vcombine.high %v350_v52, %v350_v52  ;;  %v358_v54 = vrot.slane %v350_v52, %v2612_v51  ;;  %v2379_v15 = vld [vmem:[%s2927_s1 + $0xa8] sm:$0xff]   ;;  %v2381_v18 = vld [vmem:[%s2927_s1 + $0xf0] sm:$0xff]   ;;  %v2389_v32 = vld [vmem:[%s2927_s1 + $0x2c0] sm:$0xff]  }
  0x1c   : > { %2149 = vmatpush3.bf16.msra.mxu0 %v2346_v22  ;;  %v2382_v19 = vld [vmem:[%s2927_s1 + $0x30] sm:$0xff]   ;;  %v2694_v20 = vld.sshfl [vmem:[%s2584_s22 + $0x8] sm:$0xf pattern:$0x75316420]  ;;  %v2390_v33 = vld [vmem:[%s2927_s1 + $0x200] sm:$0xff]  }
  0x1d   : > { %2171 = vmatpush3.bf16.msra.mxu1 %v2347_v23  ;;  %2150 = vmatprep.subr.bf16.mxu0 %v2348_v24  ;;  %v365_v56 = vrot.slane %v351_v53, %v2612_v51  ;;  %v366_v58 = vcombine.high %v358_v54, %v358_v54  ;;  %v2383_v21 = vld [vmem:[%s2927_s1 + $0xb0] sm:$0xff]   ;;  %v644_v22 = vcombine.low %v1800_v17, %v2694_v20  ;;  %v2384_v23 = vld [vmem:[%s2927_s1 + $0x78] sm:$0xff]   ;;  %v2391_v35 = vld [vmem:[%s2927_s1 + $0x280] sm:$0xff]  }
  0x1e   : > { %2172 = vmatprep.subr.bf16.mxu1 %v2349_v25  ;;  %v2385_v24 = vld [vmem:[%s2927_s1 + $0xf8] sm:$0xff]   ;;  %v2392_v37 = vld [vmem:[%s2927_s1 + $0x248] sm:$0xff]   ;;  %v2397_v42 = vld [vmem:[%s2927_s1 + $0x2d0] sm:$0xff]  }
  0x1f   : > { %596 = vmatprep.mubr.bf16.mxu0 %v365_v56  ;;  %v367_v60 = vcombine.high %v365_v56, %v365_v56  ;;  %v651_v25 = vrot.slane %v644_v22, %v2612_v51  ;;  %v2393_v38 = vld [vmem:[%s2927_s1 + $0x2c8] sm:$0xff]   ;;  %v2398_v43 = vld [vmem:[%s2927_s1 + $0x210] sm:$0xff]   ;;  %v2401_v47 = vld [vmem:[%s2927_s1 + $0x2d8] sm:$0xff]  }
  0x20   : > { %2151 = vmatpush3.bf16.msra.mxu0 %v2350_v26  ;;  %v2386_v26 = vld [vmem:[%s2927_s1 + $0x38] sm:$0xff]   ;;  %v2394_v39 = vld [vmem:[%s2927_s1 + $0x208] sm:$0xff]   ;;  %v2399_v44 = vld [vmem:[%s2927_s1 + $0x290] sm:$0xff]  }
  0x21   : > { %2173 = vmatpush3.bf16.msra.mxu1 %v2351_v27  ;;  %2152 = vmatprep.subr.bf16.mxu0 %v2352_v28  ;;  %v2387_v27 = vld [vmem:[%s2927_s1 + $0xb8] sm:$0xff]   ;;  %v652_v28 = vcombine.high %v651_v25, %v651_v25  ;;  %v2395_v40 = vld [vmem:[%s2927_s1 + $0x288] sm:$0xff]   ;;  %v2404_v52 = vld [vmem:[%s2927_s1 + $0x260] sm:$0xff]  }
  0x22   : > { %2174 = vmatprep.subr.bf16.mxu1 %v2353_v29  ;;  %636 = vmatprep.mubr.bf16.mxu1 %v367_v60  ;;  %v659_v29 = vrot.slane %v651_v25, %v2612_v51  ;;  %v2402_v48 = vld [vmem:[%s2927_s1 + $0x218] sm:$0xff]   ;;  %v2405_v53 = vld [vmem:[%s2927_s1 + $0x2e0] sm:$0xff]   ;;  %v2408_v56 = vld [vmem:[%s2927_s1 + $0x268] sm:$0xff]  }
  0x23   : > { %v2403_v50 = vld [vmem:[%s2927_s1 + $0x298] sm:$0xff]   ;;  %v2412_v60 = vld [vmem:[%s2927_s1 + $0x270] sm:$0xff]   ;;  %v2425_v17 = vld [vmem:[%s2927_s1 + $0x3c8] sm:$0xff]  }
  0x24   : > { %2153 = vmatpush3.bf16.msra.mxu0 %v2354_v30  ;;  %v2388_v30 = vld [vmem:[%s2927_s1 + $0x240] sm:$0xff]   ;;  %v667_v36 = vcombine.high %v659_v29, %v659_v29  ;;  %v2430_v22 = vld [vmem:[%s2927_s1 + $0x310] sm:$0xff]   ;;  %v2433_v25 = vld [vmem:[%s2927_s1 + $0x3d8] sm:$0xff]  }
  0x25   : > { %2175 = vmatpush3.bf16.msra.mxu1 %v2355_v31  ;;  %2182 = vmatprep.subr.bf16.mxu0 %v2356_v41  ;;  %v666_v31 = vrot.slane %v652_v28, %v2612_v51  ;;  %v2396_v41 = vld [vmem:[%s2927_s1 + $0x250] sm:$0xff]   ;;  %v2435_v28 = vld [vmem:[%s2927_s1 + $0x398] sm:$0xff]  }
  0x26   : > { %2204 = vmatprep.subr.bf16.mxu1 %v2357_v45  ;;  %v2400_v45 = vld [vmem:[%s2927_s1 + $0x258] sm:$0xff]  }
  0x27   : > { %597 = vmatmul.mubr.bf16.vlgmr.msra.gmra.mrb[0].mxu0 %v358_v54  ;;  %v668_v34 = vcombine.high %v666_v31, %v666_v31  ;;  %v2406_v54 = vld [vmem:[%s2927_s1 + $0x220] sm:$0xff]  }
  0x28   : > { %2183 = vmatpush3.bf16.msra.mxu0 %v2358_v55  ;;  %637 = vmatmul.mubr.bf16.vlgmr.msra.gmra.mrb[0].mxu1 %v366_v58  ;;  %v2407_v55 = vld [vmem:[%s2927_s1 + $0x2a0] sm:$0xff]   ;;  %v2410_v58 = vld [vmem:[%s2927_s1 + $0x228] sm:$0xff]  }
  0x29   : > { %2184 = vmatprep.subr.bf16.mxu0 %v2360_v59  ;;  %2205 = vmatpush3.bf16.msra.mxu1 %v2359_v57  ;;  %v2409_v57 = vld [vmem:[%s2927_s1 + $0x2e8] sm:$0xff]  }
  0x2a   : > { %2206 = vmatprep.subr.bf16.mxu1 %v2361_v61  ;;  %897 = vmatprep.mubr.bf16.mxu0 %v666_v31  ;;  %v2411_v59 = vld [vmem:[%s2927_s1 + $0x2a8] sm:$0xff]   ;;  %v2413_v61 = vld [vmem:[%s2927_s1 + $0x2f0] sm:$0xff]  }
  0x2b   : > { %937 = vmatprep.mubr.bf16.mxu1 %v668_v34  ;;  %v2440_v31 = vld [vmem:[%s2927_s1 + $0x368] sm:$0xff]  }
  0x2c   : > { %2185 = vmatpush3.bf16.msra.mxu0 %v2362_v62  ;;  %v1937_v62 = vld.sshfl [vmem:[%s2584_s22 + $0x10] sm:$0xf pattern:$0x75316420]  ;;  %v2442_v34 = vld [vmem:[%s2927_s1 + $0x328] sm:$0xff]  }
  0x2d   : > { %2186 = vmatprep.subr.bf16.mxu0 %v2364_v0  ;;  %2207 = vmatpush3.bf16.msra.mxu1 %v2363_v63  ;;  %v2414_v63 = vld [vmem:[%s2927_s1 + $0x230] sm:$0xff]   ;;  %v1029_v0 = vcombine.low %v2694_v20, %v1937_v62  ;;  %v2427_v20 = vld [vmem:[%s2927_s1 + $0x388] sm:$0xff]  }
  0x2e   : > { %2208 = vmatprep.subr.bf16.mxu1 %v2365_v1  ;;  %v2416_v1 = vld [vmem:[%s2927_s1 + $0x278] sm:$0xff]  }
  0x30   : > { %2187 = vmatpush3.bf16.msra.mxu0 %v2366_v2  ;;  %v2415_v2 = vld [vmem:[%s2927_s1 + $0x2b0] sm:$0xff]  }
  0x31   : > { %2188 = vmatprep.subr.bf16.mxu0 %v2368_v4  ;;  %2209 = vmatpush3.bf16.msra.mxu1 %v2367_v3  ;;  %v1036_v3 = vrot.slane %v1029_v0, %v2612_v51  ;;  %v2417_v4 = vld [vmem:[%s2927_s1 + $0x2f8] sm:$0xff]  }
  0x32   : > { %2210 = vmatprep.subr.bf16.mxu1 %v2369_v5  ;;  %v2418_v5 = vld [vmem:[%s2927_s1 + $0x238] sm:$0xff]  }
  0x34   : > { %2189 = vmatpush3.bf16.msra.mxu0 %v2370_v6  ;;  %v1037_v6 = vcombine.high %v1036_v3, %v1036_v3 }
  0x35   : > { %2190 = vmatprep.subr.bf16.mxu0 %v2372_v8  ;;  %2211 = vmatpush3.bf16.msra.mxu1 %v2371_v7  ;;  %v1044_v7 = vrot.slane %v1036_v3, %v2612_v51  ;;  %v2420_v8 = vld [vmem:[%s2927_s1 + $0x340] sm:$0xff]  }
  0x36   : > { %2212 = vmatprep.subr.bf16.mxu1 %v2373_v9  ;;  %v2419_v9 = vld [vmem:[%s2927_s1 + $0x2b8] sm:$0xff]  }
  0x38   : > { %2191 = vmatpush3.bf16.msra.mxu0 %v2374_v10  ;;  %v1051_v10 = vrot.slane %v1037_v6, %v2612_v51 }
  0x39   : > { %2192 = vmatprep.subr.bf16.mxu0 %v2376_v12  ;;  %2213 = vmatpush3.bf16.msra.mxu1 %v2375_v11  ;;  %v2421_v11 = vld [vmem:[%s2927_s1 + $0x3c0] sm:$0xff]  }
  0x3a   : > { %2214 = vmatprep.subr.bf16.mxu1 %v2377_v13  ;;  %v1053_v12 = vcombine.high %v1051_v10, %v1051_v10  ;;  %v2422_v13 = vld [vmem:[%s2927_s1 + $0x300] sm:$0xff]  }
  0x3c   : > { %2193 = vmatpush3.bf16.msra.mxu0 %v2378_v14  ;;  %v1052_v14 = vcombine.high %v1044_v7, %v1044_v7 }
  0x3d   : > { %2194 = vmatprep.subr.bf16.mxu0 %v2380_v16  ;;  %2215 = vmatpush3.bf16.msra.mxu1 %v2379_v15  ;;  %v2424_v15 = vld [vmem:[%s2927_s1 + $0x348] sm:$0xff]   ;;  %v2423_v16 = vld [vmem:[%s2927_s1 + $0x380] sm:$0xff]  }
  0x3e   : > { %2216 = vmatprep.subr.bf16.mxu1 %v2381_v18  ;;  %v2426_v18 = vld [vmem:[%s2927_s1 + $0x308] sm:$0xff]  }
  0x40   : > { %2195 = vmatpush3.bf16.msra.mxu0 %v2382_v19  ;;  %v2428_v19 = vld [vmem:[%s2927_s1 + $0x350] sm:$0xff]  }
  0x41   : > { %2196 = vmatprep.subr.bf16.mxu0 %v2384_v23  ;;  %2217 = vmatpush3.bf16.msra.mxu1 %v2383_v21  ;;  %v2429_v21 = vld [vmem:[%s2927_s1 + $0x3d0] sm:$0xff]   ;;  %v2432_v23 = vld [vmem:[%s2927_s1 + $0x358] sm:$0xff]  }
  0x42   : > { %2218 = vmatprep.subr.bf16.mxu1 %v2385_v24  ;;  %v2431_v24 = vld [vmem:[%s2927_s1 + $0x390] sm:$0xff]  }
  0x44   : > { %2197 = vmatpush3.bf16.msra.mxu0 %v2386_v26  ;;  %v2434_v26 = vld [vmem:[%s2927_s1 + $0x318] sm:$0xff]  }
  0x45   : > { %2226 = vmatprep.subr.bf16.mxu0 %v2388_v30  ;;  %2219 = vmatpush3.bf16.msra.mxu1 %v2387_v27  ;;  %v2436_v27 = vld [vmem:[%s2927_s1 + $0x360] sm:$0xff]  }
  0x46   : > { %2248 = vmatprep.subr.bf16.mxu1 %v2389_v32  ;;  %v2438_v30 = vld [vmem:[%s2927_s1 + $0x320] sm:$0xff]  }
  0x47   : > { %898 = vmatmul.mubr.bf16.vlgmr.msra.gmra.mrb[4].mxu0 %v659_v29  ;;  %v2437_v29 = vld [vmem:[%s2927_s1 + $0x3e0] sm:$0xff]  }
  0x48   : > { %2227 = vmatpush3.bf16.msra.mxu0 %v2390_v33  ;;  %938 = vmatmul.mubr.bf16.vlgmr.msra.gmra.mrb[4].mxu1 %v667_v36  ;;  %v2439_v32 = vld [vmem:[%s2927_s1 + $0x3a0] sm:$0xff]   ;;  %v2441_v33 = vld [vmem:[%s2927_s1 + $0x3e8] sm:$0xff]  }
  0x49   : > { %2228 = vmatprep.subr.bf16.mxu0 %v2392_v37  ;;  %2249 = vmatpush3.bf16.msra.mxu1 %v2391_v35  ;;  %v2444_v35 = vld [vmem:[%s2927_s1 + $0x370] sm:$0xff]   ;;  %v2443_v36 = vld [vmem:[%s2927_s1 + $0x3a8] sm:$0xff]  }
  0x4a   : > { %2250 = vmatprep.subr.bf16.mxu1 %v2393_v38  ;;  %1282 = vmatprep.mubr.bf16.mxu0 %v1051_v10  ;;  %v2445_v37 = vld [vmem:[%s2927_s1 + $0x3f0] sm:$0xff]  }
  0x4b   : > { %1322 = vmatprep.mubr.bf16.mxu1 %v1053_v12  ;;  %v2037_v38 = vld.sshfl [vmem:[%s2584_s22 + $0x10] sm:$0xff pattern:$0x75316420] }
  0x4c   : > { %2229 = vmatpush3.bf16.msra.mxu0 %v2394_v39  ;;  %v2446_v39 = vld [vmem:[%s2927_s1 + $0x330] sm:$0xff]  }
  0x4d   : > { %2230 = vmatprep.subr.bf16.mxu0 %v2396_v41  ;;  %2251 = vmatpush3.bf16.msra.mxu1 %v2395_v40  ;;  %v1350_v40 = vcombine.high %v2037_v38, %v2037_v38  ;;  %v1361_v41 = vshrl.u32 %v2037_v38, 16 }
  0x4e   : > { %2252 = vmatprep.subr.bf16.mxu1 %v2397_v42  ;;  %v2448_v42 = vld [vmem:[%s2927_s1 + $0x378] sm:$0xff]  }
  0x50   : > { %2231 = vmatpush3.bf16.msra.mxu0 %v2398_v43  ;;  %v2447_v43 = vld [vmem:[%s2927_s1 + $0x3b0] sm:$0xff]  }
  0x51   : > { %2232 = vmatprep.subr.bf16.mxu0 %v2400_v45  ;;  %2253 = vmatpush3.bf16.msra.mxu1 %v2399_v44  ;;  %v1366_v44 = vshll.u32 %v1350_v40, 16  ;;  %v2449_v45 = vld [vmem:[%s2927_s1 + $0x3f8] sm:$0xff]  }
  0x52   : > { %2254 = vmatprep.subr.bf16.mxu1 %v2401_v47  ;;  %v2450_v47 = vld [vmem:[%s2927_s1 + $0x338] sm:$0xff]  }
  0x54   : > { %2233 = vmatpush3.bf16.msra.mxu0 %v2402_v48  ;;  %v1368_v48 = vsel %vm2601_vm14, %v1361_v41, %v1366_v44 }
  0x55   : > { %2234 = vmatprep.subr.bf16.mxu0 %v2404_v52  ;;  %2255 = vmatpush3.bf16.msra.mxu1 %v2403_v50  ;;  %v1434_v50 = vcombine.low %v2609_v49, %v1368_v48  ;;  %v2451_v52 = vld [vmem:[%s2927_s1 + $0x3b8] sm:$0xff]  }
  0x56   : > { %2256 = vmatprep.subr.bf16.mxu1 %v2405_v53 }
  0x57   : > { %v1441_v53 = vrot.slane %v1434_v50, %v2612_v51 }
  0x58   : > { %2235 = vmatpush3.bf16.msra.mxu0 %v2406_v54 }
  0x59   : > { %2236 = vmatprep.subr.bf16.mxu0 %v2408_v56  ;;  %2257 = vmatpush3.bf16.msra.mxu1 %v2407_v55  ;;  %v1442_v54 = vcombine.high %v1441_v53, %v1441_v53  ;;  %v1449_v55 = vrot.slane %v1441_v53, %v2612_v51 }
  0x5a   : > { %2258 = vmatprep.subr.bf16.mxu1 %v2409_v57 }
  0x5b   : > { %v1456_v56 = vrot.slane %v1442_v54, %v2612_v51  ;;  %v1457_v46 = vcombine.high %v1449_v55, %v1449_v55 }
  0x5c   : > { %2237 = vmatpush3.bf16.msra.mxu0 %v2410_v58 }
  0x5d   : > { %2238 = vmatprep.subr.bf16.mxu0 %v2412_v60  ;;  %2259 = vmatpush3.bf16.msra.mxu1 %v2411_v59  ;;  %v1458_v57 = vcombine.high %v1456_v56, %v1456_v56 }
  0x5e   : > { %2260 = vmatprep.subr.bf16.mxu1 %v2413_v61 }
  0x60   : > { %2239 = vmatpush3.bf16.msra.mxu0 %v2414_v63 }
  0x61   : > { %2240 = vmatprep.subr.bf16.mxu0 %v2416_v1  ;;  %2261 = vmatpush3.bf16.msra.mxu1 %v2415_v2 }
  0x62   : > { %2262 = vmatprep.subr.bf16.mxu1 %v2417_v4 }
  0x64   : > { %2241 = vmatpush3.bf16.msra.mxu0 %v2418_v5 }
  0x65   : > { %2270 = vmatprep.subr.bf16.mxu0 %v2420_v8  ;;  %2263 = vmatpush3.bf16.msra.mxu1 %v2419_v9 }
  0x66   : > { %2292 = vmatprep.subr.bf16.mxu1 %v2421_v11 }
  0x67   : > { %1283 = vmatmul.mubr.bf16.vlgmr.msra.gmra.mrb[8].mxu0 %v1044_v7 }
  0x68   : > { %2271 = vmatpush3.bf16.msra.mxu0 %v2422_v13  ;;  %1323 = vmatmul.mubr.bf16.vlgmr.msra.gmra.mrb[8].mxu1 %v1052_v14 }
  0x69   : > { %2272 = vmatprep.subr.bf16.mxu0 %v2424_v15  ;;  %2293 = vmatpush3.bf16.msra.mxu1 %v2423_v16 }
  0x6a   : > { %2294 = vmatprep.subr.bf16.mxu1 %v2425_v17  ;;  %1687 = vmatprep.mubr.bf16.mxu0 %v1456_v56 }
  0x6b   : > { %1727 = vmatprep.mubr.bf16.mxu1 %v1458_v57 }
  0x6c   : > { %2273 = vmatpush3.bf16.msra.mxu0 %v2426_v18 }
  0x6d   : > { %2274 = vmatprep.subr.bf16.mxu0 %v2428_v19  ;;  %2295 = vmatpush3.bf16.msra.mxu1 %v2427_v20 }
  0x6e   : > { %2296 = vmatprep.subr.bf16.mxu1 %v2429_v21 }
  0x70   : > { %2275 = vmatpush3.bf16.msra.mxu0 %v2430_v22 }
  0x71   : > { %2276 = vmatprep.subr.bf16.mxu0 %v2432_v23  ;;  %2297 = vmatpush3.bf16.msra.mxu1 %v2431_v24 }
  0x72   : > { %2298 = vmatprep.subr.bf16.mxu1 %v2433_v25 }
  0x74   : > { %2277 = vmatpush3.bf16.msra.mxu0 %v2434_v26 }
  0x75   : > { %2278 = vmatprep.subr.bf16.mxu0 %v2436_v27  ;;  %2299 = vmatpush3.bf16.msra.mxu1 %v2435_v28 }
  0x76   : > { %2300 = vmatprep.subr.bf16.mxu1 %v2437_v29 }
  0x78   : > { %2279 = vmatpush3.bf16.msra.mxu0 %v2438_v30 }
  0x79   : > { %2280 = vmatprep.subr.bf16.mxu0 %v2440_v31  ;;  %2301 = vmatpush3.bf16.msra.mxu1 %v2439_v32 }
  0x7a   : > { %2302 = vmatprep.subr.bf16.mxu1 %v2441_v33 }
  0x7c   : > { %2281 = vmatpush3.bf16.msra.mxu0 %v2442_v34 }
  0x7d   : > { %2282 = vmatprep.subr.bf16.mxu0 %v2444_v35  ;;  %2303 = vmatpush3.bf16.msra.mxu1 %v2443_v36 }
  0x7e   : > { %2304 = vmatprep.subr.bf16.mxu1 %v2445_v37 }
  0x80   : > { %2283 = vmatpush3.bf16.msra.mxu0 %v2446_v39 }
  0x81   : > { %2284 = vmatprep.subr.bf16.mxu0 %v2448_v42  ;;  %2305 = vmatpush3.bf16.msra.mxu1 %v2447_v43 }
  0x82   : > { %2306 = vmatprep.subr.bf16.mxu1 %v2449_v45 }
  0x84   : > { %2285 = vmatpush3.bf16.msra.mxu0 %v2450_v47 }
  0x85   : > { %2307 = vmatpush3.bf16.msra.mxu1 %v2451_v52 }
  0x87   : > { %1688 = vmatmul.mubr.bf16.vlgmr.msra.gmra.mrb[12].mxu0 %v1449_v55 }
  0x88   : > { %1728 = vmatmul.mubr.bf16.vlgmr.msra.gmra.mrb[12].mxu1 %v1457_v46 }
  0xfa   : > { %v2154_v49 = vpop.f32.mrb[0].mxu0 }
  0xfb   : > { %v2155_v58 = vpop.f32.mrb[1].mxu0  ;;  %v2176_v59 = vpop.f32.mrb[0].mxu1 }
  0xfc   : > { %v2156_v60 = vadd.f32 %v2155_v58, %v2154_v49  ;;  %v2157_v61 = vpop.f32.mrb[2].mxu0  ;;  %v2177_v62 = vpop.f32.mrb[1].mxu1 }
  0xfd   : > { %v2158_v63 = vpop.f32.mrb[3].mxu0  ;;  %v2178_v0 = vadd.f32 %v2177_v62, %v2176_v59  ;;  %v2179_v1 = vpop.f32.mrb[2].mxu1 }
  0xfe   : > { %v2180_v2 = vpop.f32.mrb[3].mxu1 }
  0xff   : > { %v639_v3 = vadd.f32 %v2178_v0, %v2156_v60 }
 0x11a   : > { %v2198_v4 = vpop.f32.mrb[4].mxu0 }
 0x11b   : > { %v2199_v5 = vpop.f32.mrb[5].mxu0  ;;  %v2220_v51 = vpop.f32.mrb[4].mxu1 }
 0x11c   : > { %v2200_v6 = vadd.f32 %v2199_v5, %v2198_v4  ;;  %v2201_v7 = vpop.f32.mrb[6].mxu0  ;;  %v2221_v8 = vpop.f32.mrb[5].mxu1 }
 0x11d   : > { %v2202_v9 = vpop.f32.mrb[7].mxu0  ;;  %v2222_v11 = vadd.f32 %v2221_v8, %v2220_v51  ;;  %v2223_v12 = vpop.f32.mrb[6].mxu1 }
 0x11e   : > { %v900_v10 = vadd.f32 %v2200_v6, %v639_v3  ;;  %v2224_v13 = vpop.f32.mrb[7].mxu1 }
 0x120   : > { %v940_v14 = vadd.f32 %v2222_v11, %v900_v10 }
 0x13a   : > { %v2242_v15 = vpop.f32.mrb[8].mxu0 }
 0x13b   : > { %v2243_v16 = vpop.f32.mrb[9].mxu0  ;;  %v2264_v17 = vpop.f32.mrb[8].mxu1 }
 0x13c   : > { %v2244_v18 = vadd.f32 %v2243_v16, %v2242_v15  ;;  %v2245_v19 = vpop.f32.mrb[10].mxu0  ;;  %v2265_v20 = vpop.f32.mrb[9].mxu1 }
 0x13d   : > { %v2246_v21 = vpop.f32.mrb[11].mxu0  ;;  %v2266_v22 = vadd.f32 %v2265_v20, %v2264_v17  ;;  %v2267_v23 = vpop.f32.mrb[10].mxu1 }
 0x13e   : > { %v2268_v24 = vpop.f32.mrb[11].mxu1 }
 0x13f   : > { %v1325_v25 = vadd.f32 %v2266_v22, %v2244_v18 }
 0x141   : > { %v1330_v26 = vadd.f32 %v1325_v25, %v940_v14 }
 0x15a   : > { %v2286_v27 = vpop.f32.mrb[12].mxu0 }
 0x15b   : > { %v2287_v28 = vpop.f32.mrb[13].mxu0  ;;  %v2308_v29 = vpop.f32.mrb[12].mxu1 }
 0x15c   : > { %v2288_v30 = vadd.f32 %v2287_v28, %v2286_v27  ;;  %v2289_v31 = vpop.f32.mrb[14].mxu0  ;;  %v2309_v32 = vpop.f32.mrb[13].mxu1 }
 0x15d   : > { %v2290_v33 = vpop.f32.mrb[15].mxu0  ;;  %v2310_v34 = vadd.f32 %v2309_v32, %v2308_v29  ;;  %v2311_v35 = vpop.f32.mrb[14].mxu1 }
 0x15e   : > { %v2312_v36 = vpop.f32.mrb[15].mxu1 }
 0x15f   : > { %v1730_v37 = vadd.f32 %v2310_v34, %v2288_v30 }
 0x161   : > { %v1735_v38 = vadd.f32 %v1730_v37, %v1330_v26 }
 0x163   : > { %v1736_v39 = vmul.f32 0.2, %v1735_v38 }
 0x165   : > { %v1737_v40 = vmax.f32 %v1735_v38, %v1736_v39 }
 0x167   : > { %v1738_v41 = vpack.c.bf16 %v1737_v40, %v1737_v40 }
 0x169   : > { %1739 = vst [vmem:[%s141_s20] sm:$0x3] %v1738_v41 }
 0x16a PF: > { %s12_s9 = sadd.s32 1, %s2458_s9  }
 0x16b   : > { %p9_p4 = scmp.ge.s32.totalorder %s12_s9, 4  }
 0x16d   :  { %11 = sbr.rel (!%p9_p4) target bundleno = 1 (0x1), region = 62 }

</bundles_post_ra>
